<compile_context>
chip_gen: v6e
topology: v6e:2x2x1
jax: 0.10.0
libtpu: 0.0.40
codegen_flags: <defaults>
</compile_context>

<pallas_src>
import functools

import jax
import jax.numpy as jnp
from jax import lax
from jax.experimental import pallas as pl
from jax.experimental.pallas import tpu as pltpu

BN_EPS = 1e-5   # PyTorch BatchNorm2d default
PAD = 2         # pooled-space zero-padding ring (halo for two chained 3x3 convs)


def _round_up(x, m):
    return (x + m - 1) // m * m


def down_kernel(xg_ref, w1_ref, b1_ref, w2_ref, b2_ref, mask_ref, prelu_ref,
                o_ref, pbuf, y1buf, *, Np, Wpad, Hp, C1, C2, margin):
    # ---- MaxPool2d(2): max over the 4 pre-gathered 2x2 window slabs ----------
    pooled = jnp.maximum(jnp.maximum(xg_ref[0, 0], xg_ref[0, 1]),
                         jnp.maximum(xg_ref[0, 2], xg_ref[0, 3]))   # (Np, Cin)
    # aligned interior store (margin % 8 == 0); the margin rows are never used
    # for any kept output, so they are left untouched (no zero fill needed).
    pbuf[pl.ds(margin, Np), :] = pooled.astype(jnp.float32)

    # flat shift of tap (dy, dx) relative to the centre pixel
    shifts = [(dy - 1) * Wpad + (dx - 1) for dy in range(3) for dx in range(3)]

    # ---- conv1 (3x3, BN folded into weights/bias): 9 MXU matmuls -------------
    acc = jnp.zeros((Np, C1), jnp.float32)
    for t, s in enumerate(shifts):
        lhs = pbuf[pl.ds(margin + s, Np), :].astype(jnp.bfloat16)
        acc = acc + jnp.dot(lhs, w1_ref[t], preferred_element_type=jnp.float32)
    y1 = acc + b1_ref[...]
    a1 = prelu_ref[0]
    y1 = jnp.where(y1 >= 0, y1, a1 * y1)
    # conv2's SAME zero-padding of y1 == zero everything outside the Hp x Wp
    # interior (select also kills any NaN computed from the don't-care margins).
    y1 = jnp.where(mask_ref[...] > 0.5, y1, 0.0)
    y1buf[pl.ds(margin, Np), :] = y1

    # ---- conv2 (3x3, BN folded): only the Hp*Wpad rows that are kept ---------
    Nk = Hp * Wpad
    base = margin + PAD * Wpad
    acc2 = jnp.zeros((Nk, C2), jnp.float32)
    for t, s in enumerate(shifts):
        lhs = y1buf[pl.ds(base + s, Nk), :].astype(jnp.bfloat16)
        acc2 = acc2 + jnp.dot(lhs, w2_ref[t], preferred_element_type=jnp.float32)
    y2 = acc2 + b2_ref[...]
    a2 = prelu_ref[1]
    y2 = jnp.where(y2 >= 0, y2, a2 * y2)
    o_ref[0] = y2.astype(o_ref.dtype)


def _fold_bn(w, b, bn):
    """Fold eval-mode BatchNorm into conv weights / bias (host-side)."""
    gamma, beta, mean, var = bn[0], bn[1], bn[2], bn[3]
    scale = gamma * lax.rsqrt(var + BN_EPS)            # (Cout,)
    w_f = w * scale                                    # (3,3,Cin,Cout) * (Cout,)
    b_f = (b.reshape(-1) - mean) * scale + beta        # (Cout,)
    return w_f, b_f


def down_forward(x_nchw, params):
    """Down.forward: NCHW in -> NCHW out (N, C_out, H/2, W/2). Eval-mode BN."""
    B, Cin, H, W = x_nchw.shape
    Hp, Wp = H // 2, W // 2
    C1 = params["w1"].shape[-1]
    C2 = params["w2"].shape[-1]
    Hpad, Wpad = Hp + 2 * PAD, Wp + 2 * PAD
    Np = Hpad * Wpad
    margin = _round_up(Wpad + 1, 8)

    # ---- host-side constant folding of eval BN into the conv params ----
    w1f, b1f = _fold_bn(params["w1"], params["b1"], params["bn1"])
    w2f, b2f = _fold_bn(params["w2"], params["b2"], params["bn2"])
    w1f = w1f.reshape(9, Cin, C1).astype(jnp.bfloat16)
    w2f = w2f.reshape(9, C1, C2).astype(jnp.bfloat16)
    b1f = b1f.reshape(1, C1).astype(jnp.float32)
    b2f = b2f.reshape(1, C2).astype(jnp.float32)
    prelu = params["prelu"].reshape(2).astype(jnp.float32)

    # ---- single fused copy: NCHW -> (B, 4, Np, Cin) with the 2x2 pooling
    #      partners on a leading axis and a 2-ring of zeros in pooled space ----
    x = x_nchw.astype(jnp.bfloat16).reshape(B, Cin, Hp, 2, Wp, 2)
    x = jnp.transpose(x, (0, 3, 5, 2, 4, 1))            # (B, 2, 2, Hp, Wp, Cin)
    x = jnp.pad(x, ((0, 0), (0, 0), (0, 0), (PAD, PAD), (PAD, PAD), (0, 0)))
    xg = x.reshape(B, 4, Np, Cin)

    # interior mask: 1 inside the true Hp x Wp image, 0 in the padding ring
    hh = jnp.arange(Hpad)[:, None]
    ww = jnp.arange(Wpad)[None, :]
    interior = ((hh >= PAD) & (hh < PAD + Hp) & (ww >= PAD) & (ww < PAD + Wp))
    mask = interior.reshape(Np, 1).astype(jnp.float32)

    kernel = functools.partial(down_kernel, Np=Np, Wpad=Wpad, Hp=Hp,
                               C1=C1, C2=C2, margin=margin)

    out_flat = pl.pallas_call(
        kernel,
        out_shape=jax.ShapeDtypeStruct((B, Hp * Wpad, C2), jnp.float32),
        grid=(B,),
        in_specs=[
            pl.BlockSpec((1, 4, Np, Cin), lambda b: (b, 0, 0, 0)),
            pl.BlockSpec((9, Cin, C1), lambda b: (0, 0, 0)),
            pl.BlockSpec((1, C1), lambda b: (0, 0)),
            pl.BlockSpec((9, C1, C2), lambda b: (0, 0, 0)),
            pl.BlockSpec((1, C2), lambda b: (0, 0)),
            pl.BlockSpec((Np, 1), lambda b: (0, 0)),
            pl.BlockSpec(memory_space=pltpu.MemorySpace.SMEM),   # PReLU slopes
        ],
        out_specs=pl.BlockSpec((1, Hp * Wpad, C2), lambda b: (b, 0, 0)),
        scratch_shapes=[
            pltpu.VMEM((2 * margin + Np, Cin), jnp.float32),     # pooled (+margins)
            pltpu.VMEM((2 * margin + Np, C1), jnp.float32),      # y1     (+margins)
        ],
        compiler_params=pltpu.CompilerParams(
            dimension_semantics=("parallel",),
            vmem_limit_bytes=32 * 1024 * 1024,
        ),
    )(xg, w1f, b1f, w2f, b2f, mask, prelu)

    # drop the W padding columns and go back to NCHW (one small copy)
    out = out_flat.reshape(B, Hp, Wpad, C2)[:, :, PAD:PAD + Wp, :]
    return jnp.transpose(out, (0, 3, 1, 2))


def ref_forward(x_nchw, params):
    """Pure-JAX f32 reference of the PyTorch module (eval-mode BN)."""
    x = lax.reduce_window(x_nchw, -jnp.inf, lax.max,
                          (1, 1, 2, 2), (1, 1, 2, 2), "VALID")

    def conv(x, w, b):
        y = lax.conv_general_dilated(x, w, window_strides=(1, 1), padding="SAME",
                                     dimension_numbers=("NCHW", "HWIO", "NCHW"))
        return y + b.reshape(1, -1, 1, 1)

    def bn(x, p):
        g, be, m, v = p[0], p[1], p[2], p[3]
        scale = g / jnp.sqrt(v + BN_EPS)
        return (x - m.reshape(1, -1, 1, 1)) * scale.reshape(1, -1, 1, 1) \
            + be.reshape(1, -1, 1, 1)

    def prelu(x, a):
        return jnp.where(x >= 0, x, a * x)

    y = conv(x, params["w1"], params["b1"][0])
    y = prelu(bn(y, params["bn1"]), params["prelu"][0])
    y = conv(y, params["w2"], params["b2"][0])
    y = prelu(bn(y, params["bn2"]), params["prelu"][1])
    return y


def make_params(key, in_channels, out_channels):
    ks = jax.random.split(key, 12)
    C0, C = in_channels, out_channels

    def bn_params(k):
        k1, k2, k3, k4 = jax.random.split(k, 4)
        return jnp.stack([
            1.0 + 0.1 * jax.random.normal(k1, (C,)),           # gamma
            0.1 * jax.random.normal(k2, (C,)),                 # beta
            0.1 * jax.random.normal(k3, (C,)),                 # running_mean
            1.0 + 0.1 * jnp.abs(jax.random.normal(k4, (C,))),  # running_var
        ]).astype(jnp.float32)

    return {
        "w1": (0.2 * jax.random.normal(ks[0], (3, 3, C0, C))).astype(jnp.float32),
        "b1": (0.1 * jax.random.normal(ks[1], (1, C))).astype(jnp.float32),
        "bn1": bn_params(ks[2]),
        "w2": (0.2 * jax.random.normal(ks[3], (3, 3, C, C))).astype(jnp.float32),
        "b2": (0.1 * jax.random.normal(ks[4], (1, C))).astype(jnp.float32),
        "bn2": bn_params(ks[5]),
        # nn.PReLU() default init: one slope = 0.25 per PReLU layer.
        "prelu": jnp.full((2,), 0.25, jnp.float32),
    }


if __name__ == "__main__":
    key = jax.random.PRNGKey(0)
    k_x, k_p = jax.random.split(key)

    B, Cin, H, W = 2, 4, 16, 16
    Cout = 8

    x = jax.random.normal(k_x, (B, Cin, H, W), jnp.float32)
    params = make_params(k_p, Cin, Cout)

    out = jax.block_until_ready(down_forward(x, params))
    ref = ref_forward(x, params)

    assert out.shape == (B, Cout, H // 2, W // 2), out.shape
    err = jnp.max(jnp.abs(out - ref))
    # Kernel uses bf16 MXU operands (f32 accumulate); compare against the f32
    # reference with a bf16-appropriate tolerance.
    assert jnp.allclose(out, ref, atol=5e-2, rtol=5e-2), f"max abs err {err}"

    print("KERNEL_OK")
</pallas_src>

<mosaic_0001>
module attributes {stable_mosaic.version = 11 : i64} {
  func.func @down_kernel(%arg0: i32, %arg1: memref<1x4x144x4xbf16, #tpu.memory_space<vmem>>, %arg2: memref<9x4x8xbf16, #tpu.memory_space<vmem>>, %arg3: memref<1x8xf32, #tpu.memory_space<vmem>>, %arg4: memref<9x8x8xbf16, #tpu.memory_space<vmem>>, %arg5: memref<1x8xf32, #tpu.memory_space<vmem>>, %arg6: memref<144x1xf32, #tpu.memory_space<vmem>>, %arg7: memref<2xf32, #tpu.memory_space<smem>>, %arg8: memref<1x96x8xf32, #tpu.memory_space<vmem>>, %arg9: memref<176x4xf32, #tpu.memory_space<vmem>>, %arg10: memref<176x8xf32, #tpu.memory_space<vmem>>) attributes {dimension_semantics = [#tpu.dimension_semantics<parallel>], iteration_bounds = array<i64: 2>, scalar_prefetch = 0 : i64, scratch_operands = 2 : i64, tpu.core_type = #tpu.core_type<tc>, window_params = [{transform_indices = @transform_0, window_bounds = array<i64: 1, 4, 144, 4>}, {pipeline_mode = #tpu.pipeline_mode<synchronous>, transform_indices = @transform_1, window_bounds = array<i64: 9, 4, 8>}, {pipeline_mode = #tpu.pipeline_mode<synchronous>, transform_indices = @transform_2, window_bounds = array<i64: 1, 8>}, {pipeline_mode = #tpu.pipeline_mode<synchronous>, transform_indices = @transform_3, window_bounds = array<i64: 9, 8, 8>}, {pipeline_mode = #tpu.pipeline_mode<synchronous>, transform_indices = @transform_4, window_bounds = array<i64: 1, 8>}, {pipeline_mode = #tpu.pipeline_mode<synchronous>, transform_indices = @transform_5, window_bounds = array<i64: 144, 1>}, {transform_indices = @transform_6, window_bounds = array<i64: 2>}, {transform_indices = @transform_7, window_bounds = array<i64: 1, 96, 8>}]} {
    %c0 = arith.constant 0 : index
    %c0_0 = arith.constant 0 : index
    %c0_1 = arith.constant 0 : index
    %c0_2 = arith.constant 0 : index
    %0 = vector.load %arg1[%c0, %c0_0, %c0_1, %c0_2] : memref<1x4x144x4xbf16, #tpu.memory_space<vmem>>, vector<1x1x144x4xbf16>
    %1 = vector.shape_cast %0 : vector<1x1x144x4xbf16> to vector<144x4xbf16>
    %c0_3 = arith.constant 0 : index
    %c1 = arith.constant 1 : index
    %c0_4 = arith.constant 0 : index
    %c0_5 = arith.constant 0 : index
    %2 = vector.load %arg1[%c0_3, %c1, %c0_4, %c0_5] : memref<1x4x144x4xbf16, #tpu.memory_space<vmem>>, vector<1x1x144x4xbf16>
    %3 = vector.shape_cast %2 : vector<1x1x144x4xbf16> to vector<144x4xbf16>
    %4 = arith.maximumf %1, %3 : vector<144x4xbf16>
    %c0_6 = arith.constant 0 : index
    %c2 = arith.constant 2 : index
    %c0_7 = arith.constant 0 : index
    %c0_8 = arith.constant 0 : index
    %5 = vector.load %arg1[%c0_6, %c2, %c0_7, %c0_8] : memref<1x4x144x4xbf16, #tpu.memory_space<vmem>>, vector<1x1x144x4xbf16>
    %6 = vector.shape_cast %5 : vector<1x1x144x4xbf16> to vector<144x4xbf16>
    %c0_9 = arith.constant 0 : index
    %c3 = arith.constant 3 : index
    %c0_10 = arith.constant 0 : index
    %c0_11 = arith.constant 0 : index
    %7 = vector.load %arg1[%c0_9, %c3, %c0_10, %c0_11] : memref<1x4x144x4xbf16, #tpu.memory_space<vmem>>, vector<1x1x144x4xbf16>
    %8 = vector.shape_cast %7 : vector<1x1x144x4xbf16> to vector<144x4xbf16>
    %9 = arith.maximumf %6, %8 : vector<144x4xbf16>
    %10 = arith.maximumf %4, %9 : vector<144x4xbf16>
    %11 = arith.extf %10 : vector<144x4xbf16> to vector<144x4xf32>
    %c16 = arith.constant 16 : index
    %c0_12 = arith.constant 0 : index
    %12 = vector.load %arg9[%c16, %c0_12] : memref<176x4xf32, #tpu.memory_space<vmem>>, vector<144x4xf32>
    tpu.vector_store %arg9[%c16, %c0_12], %11 {strides = array<i32>} : memref<176x4xf32, #tpu.memory_space<vmem>>, vector<144x4xf32>,
    %cst = arith.constant 0.000000e+00 : f32
    %13 = vector.broadcast %cst : f32 to vector<144x8xf32>
    %c3_13 = arith.constant 3 : index
    %c0_14 = arith.constant 0 : index
    %14 = vector.load %arg9[%c3_13, %c0_14] : memref<176x4xf32, #tpu.memory_space<vmem>>, vector<144x4xf32>
    %15 = arith.truncf %14 : vector<144x4xf32> to vector<144x4xbf16>
    %c0_15 = arith.constant 0 : index
    %c0_16 = arith.constant 0 : index
    %c0_17 = arith.constant 0 : index
    %16 = vector.load %arg2[%c0_15, %c0_16, %c0_17] : memref<9x4x8xbf16, #tpu.memory_space<vmem>>, vector<1x4x8xbf16>
    %17 = vector.shape_cast %16 : vector<1x4x8xbf16> to vector<4x8xbf16>
    %cst_18 = arith.constant dense<0.000000e+00> : vector<144x8xf32>
    %18 = tpu.matmul %15, %17, %cst_18 {dimension_numbers = #tpu.dot_dimension_numbers<[1], [0], [0], [1], [0, 0, 1, 1], [], []>} : vector<144x4xbf16>, vector<4x8xbf16>, vector<144x8xf32> -> vector<144x8xf32>
    %19 = arith.addf %13, %18 : vector<144x8xf32>
    %c4 = arith.constant 4 : index
    %c0_19 = arith.constant 0 : index
    %20 = vector.load %arg9[%c4, %c0_19] : memref<176x4xf32, #tpu.memory_space<vmem>>, vector<144x4xf32>
    %21 = arith.truncf %20 : vector<144x4xf32> to vector<144x4xbf16>
    %c1_20 = arith.constant 1 : index
    %c0_21 = arith.constant 0 : index
    %c0_22 = arith.constant 0 : index
    %22 = vector.load %arg2[%c1_20, %c0_21, %c0_22] : memref<9x4x8xbf16, #tpu.memory_space<vmem>>, vector<1x4x8xbf16>
    %23 = vector.shape_cast %22 : vector<1x4x8xbf16> to vector<4x8xbf16>
    %cst_23 = arith.constant dense<0.000000e+00> : vector<144x8xf32>
    %24 = tpu.matmul %21, %23, %cst_23 {dimension_numbers = #tpu.dot_dimension_numbers<[1], [0], [0], [1], [0, 0, 1, 1], [], []>} : vector<144x4xbf16>, vector<4x8xbf16>, vector<144x8xf32> -> vector<144x8xf32>
    %25 = arith.addf %19, %24 : vector<144x8xf32>
    %c5 = arith.constant 5 : index
    %c0_24 = arith.constant 0 : index
    %26 = vector.load %arg9[%c5, %c0_24] : memref<176x4xf32, #tpu.memory_space<vmem>>, vector<144x4xf32>
    %27 = arith.truncf %26 : vector<144x4xf32> to vector<144x4xbf16>
    %c2_25 = arith.constant 2 : index
    %c0_26 = arith.constant 0 : index
    %c0_27 = arith.constant 0 : index
    %28 = vector.load %arg2[%c2_25, %c0_26, %c0_27] : memref<9x4x8xbf16, #tpu.memory_space<vmem>>, vector<1x4x8xbf16>
    %29 = vector.shape_cast %28 : vector<1x4x8xbf16> to vector<4x8xbf16>
    %cst_28 = arith.constant dense<0.000000e+00> : vector<144x8xf32>
    %30 = tpu.matmul %27, %29, %cst_28 {dimension_numbers = #tpu.dot_dimension_numbers<[1], [0], [0], [1], [0, 0, 1, 1], [], []>} : vector<144x4xbf16>, vector<4x8xbf16>, vector<144x8xf32> -> vector<144x8xf32>
    %31 = arith.addf %25, %30 : vector<144x8xf32>
    %c15 = arith.constant 15 : index
    %c0_29 = arith.constant 0 : index
    %32 = vector.load %arg9[%c15, %c0_29] : memref<176x4xf32, #tpu.memory_space<vmem>>, vector<144x4xf32>
    %33 = arith.truncf %32 : vector<144x4xf32> to vector<144x4xbf16>
    %c3_30 = arith.constant 3 : index
    %c0_31 = arith.constant 0 : index
    %c0_32 = arith.constant 0 : index
    %34 = vector.load %arg2[%c3_30, %c0_31, %c0_32] : memref<9x4x8xbf16, #tpu.memory_space<vmem>>, vector<1x4x8xbf16>
    %35 = vector.shape_cast %34 : vector<1x4x8xbf16> to vector<4x8xbf16>
    %cst_33 = arith.constant dense<0.000000e+00> : vector<144x8xf32>
    %36 = tpu.matmul %33, %35, %cst_33 {dimension_numbers = #tpu.dot_dimension_numbers<[1], [0], [0], [1], [0, 0, 1, 1], [], []>} : vector<144x4xbf16>, vector<4x8xbf16>, vector<144x8xf32> -> vector<144x8xf32>
    %37 = arith.addf %31, %36 : vector<144x8xf32>
    %c16_34 = arith.constant 16 : index
    %c0_35 = arith.constant 0 : index
    %38 = vector.load %arg9[%c16_34, %c0_35] : memref<176x4xf32, #tpu.memory_space<vmem>>, vector<144x4xf32>
    %39 = arith.truncf %38 : vector<144x4xf32> to vector<144x4xbf16>
    %c4_36 = arith.constant 4 : index
    %c0_37 = arith.constant 0 : index
    %c0_38 = arith.constant 0 : index
    %40 = vector.load %arg2[%c4_36, %c0_37, %c0_38] : memref<9x4x8xbf16, #tpu.memory_space<vmem>>, vector<1x4x8xbf16>
    %41 = vector.shape_cast %40 : vector<1x4x8xbf16> to vector<4x8xbf16>
    %cst_39 = arith.constant dense<0.000000e+00> : vector<144x8xf32>
    %42 = tpu.matmul %39, %41, %cst_39 {dimension_numbers = #tpu.dot_dimension_numbers<[1], [0], [0], [1], [0, 0, 1, 1], [], []>} : vector<144x4xbf16>, vector<4x8xbf16>, vector<144x8xf32> -> vector<144x8xf32>
    %43 = arith.addf %37, %42 : vector<144x8xf32>
    %c17 = arith.constant 17 : index
    %c0_40 = arith.constant 0 : index
    %44 = vector.load %arg9[%c17, %c0_40] : memref<176x4xf32, #tpu.memory_space<vmem>>, vector<144x4xf32>
    %45 = arith.truncf %44 : vector<144x4xf32> to vector<144x4xbf16>
    %c5_41 = arith.constant 5 : index
    %c0_42 = arith.constant 0 : index
    %c0_43 = arith.constant 0 : index
    %46 = vector.load %arg2[%c5_41, %c0_42, %c0_43] : memref<9x4x8xbf16, #tpu.memory_space<vmem>>, vector<1x4x8xbf16>
    %47 = vector.shape_cast %46 : vector<1x4x8xbf16> to vector<4x8xbf16>
    %cst_44 = arith.constant dense<0.000000e+00> : vector<144x8xf32>
    %48 = tpu.matmul %45, %47, %cst_44 {dimension_numbers = #tpu.dot_dimension_numbers<[1], [0], [0], [1], [0, 0, 1, 1], [], []>} : vector<144x4xbf16>, vector<4x8xbf16>, vector<144x8xf32> -> vector<144x8xf32>
    %49 = arith.addf %43, %48 : vector<144x8xf32>
    %c27 = arith.constant 27 : index
    %c0_45 = arith.constant 0 : index
    %50 = vector.load %arg9[%c27, %c0_45] : memref<176x4xf32, #tpu.memory_space<vmem>>, vector<144x4xf32>
    %51 = arith.truncf %50 : vector<144x4xf32> to vector<144x4xbf16>
    %c6 = arith.constant 6 : index
    %c0_46 = arith.constant 0 : index
    %c0_47 = arith.constant 0 : index
    %52 = vector.load %arg2[%c6, %c0_46, %c0_47] : memref<9x4x8xbf16, #tpu.memory_space<vmem>>, vector<1x4x8xbf16>
    %53 = vector.shape_cast %52 : vector<1x4x8xbf16> to vector<4x8xbf16>
    %cst_48 = arith.constant dense<0.000000e+00> : vector<144x8xf32>
    %54 = tpu.matmul %51, %53, %cst_48 {dimension_numbers = #tpu.dot_dimension_numbers<[1], [0], [0], [1], [0, 0, 1, 1], [], []>} : vector<144x4xbf16>, vector<4x8xbf16>, vector<144x8xf32> -> vector<144x8xf32>
    %55 = arith.addf %49, %54 : vector<144x8xf32>
    %c28 = arith.constant 28 : index
    %c0_49 = arith.constant 0 : index
    %56 = vector.load %arg9[%c28, %c0_49] : memref<176x4xf32, #tpu.memory_space<vmem>>, vector<144x4xf32>
    %57 = arith.truncf %56 : vector<144x4xf32> to vector<144x4xbf16>
    %c7 = arith.constant 7 : index
    %c0_50 = arith.constant 0 : index
    %c0_51 = arith.constant 0 : index
    %58 = vector.load %arg2[%c7, %c0_50, %c0_51] : memref<9x4x8xbf16, #tpu.memory_space<vmem>>, vector<1x4x8xbf16>
    %59 = vector.shape_cast %58 : vector<1x4x8xbf16> to vector<4x8xbf16>
    %cst_52 = arith.constant dense<0.000000e+00> : vector<144x8xf32>
    %60 = tpu.matmul %57, %59, %cst_52 {dimension_numbers = #tpu.dot_dimension_numbers<[1], [0], [0], [1], [0, 0, 1, 1], [], []>} : vector<144x4xbf16>, vector<4x8xbf16>, vector<144x8xf32> -> vector<144x8xf32>
    %61 = arith.addf %55, %60 : vector<144x8xf32>
    %c29 = arith.constant 29 : index
    %c0_53 = arith.constant 0 : index
    %62 = vector.load %arg9[%c29, %c0_53] : memref<176x4xf32, #tpu.memory_space<vmem>>, vector<144x4xf32>
    %63 = arith.truncf %62 : vector<144x4xf32> to vector<144x4xbf16>
    %c8 = arith.constant 8 : index
    %c0_54 = arith.constant 0 : index
    %c0_55 = arith.constant 0 : index
    %64 = vector.load %arg2[%c8, %c0_54, %c0_55] : memref<9x4x8xbf16, #tpu.memory_space<vmem>>, vector<1x4x8xbf16>
    %65 = vector.shape_cast %64 : vector<1x4x8xbf16> to vector<4x8xbf16>
    %cst_56 = arith.constant dense<0.000000e+00> : vector<144x8xf32>
    %66 = tpu.matmul %63, %65, %cst_56 {dimension_numbers = #tpu.dot_dimension_numbers<[1], [0], [0], [1], [0, 0, 1, 1], [], []>} : vector<144x4xbf16>, vector<4x8xbf16>, vector<144x8xf32> -> vector<144x8xf32>
    %67 = arith.addf %61, %66 : vector<144x8xf32>
    %c0_57 = arith.constant 0 : index
    %c0_58 = arith.constant 0 : index
    %68 = vector.load %arg3[%c0_57, %c0_58] : memref<1x8xf32, #tpu.memory_space<vmem>>, vector<1x8xf32>
    %69 = vector.broadcast %68 : vector<1x8xf32> to vector<144x8xf32>
    %70 = arith.addf %67, %69 : vector<144x8xf32>
    %c0_59 = arith.constant 0 : index
    %71 = memref.load %arg7[%c0_59] : memref<2xf32, #tpu.memory_space<smem>>
    %cst_60 = arith.constant 0.000000e+00 : f32
    %72 = vector.broadcast %cst_60 : f32 to vector<144x8xf32>
    %73 = arith.cmpf oge, %70, %72 : vector<144x8xf32>
    %74 = vector.broadcast %71 : f32 to vector<144x8xf32>
    %75 = arith.mulf %74, %70 : vector<144x8xf32>
    %76 = arith.select %73, %70, %75 : vector<144x8xi1>, vector<144x8xf32>
    %c0_61 = arith.constant 0 : index
    %c0_62 = arith.constant 0 : index
    %77 = vector.load %arg6[%c0_61, %c0_62] : memref<144x1xf32, #tpu.memory_space<vmem>>, vector<144x1xf32>
    %cst_63 = arith.constant 5.000000e-01 : f32
    %78 = vector.broadcast %cst_63 : f32 to vector<144x1xf32>
    %79 = arith.cmpf ogt, %77, %78 : vector<144x1xf32>
    %cst_64 = arith.constant 0.000000e+00 : f32
    %80 = vector.shape_cast %79 : vector<144x1xi1> to vector<144x1xi1>
    %81 = vector.broadcast %80 : vector<144x1xi1> to vector<144x8xi1>
    %82 = vector.broadcast %cst_64 : f32 to vector<144x8xf32>
    %83 = arith.select %81, %76, %82 : vector<144x8xi1>, vector<144x8xf32>
    %c16_65 = arith.constant 16 : index
    %c0_66 = arith.constant 0 : index
    %84 = vector.load %arg10[%c16_65, %c0_66] : memref<176x8xf32, #tpu.memory_space<vmem>>, vector<144x8xf32>
    tpu.vector_store %arg10[%c16_65, %c0_66], %83 {strides = array<i32>} : memref<176x8xf32, #tpu.memory_space<vmem>>, vector<144x8xf32>,
    %cst_67 = arith.constant 0.000000e+00 : f32
    %85 = vector.broadcast %cst_67 : f32 to vector<96x8xf32>
    %c27_68 = arith.constant 27 : index
    %c0_69 = arith.constant 0 : index
    %86 = vector.load %arg10[%c27_68, %c0_69] : memref<176x8xf32, #tpu.memory_space<vmem>>, vector<96x8xf32>
    %87 = arith.truncf %86 : vector<96x8xf32> to vector<96x8xbf16>
    %c0_70 = arith.constant 0 : index
    %c0_71 = arith.constant 0 : index
    %c0_72 = arith.constant 0 : index
    %88 = vector.load %arg4[%c0_70, %c0_71, %c0_72] : memref<9x8x8xbf16, #tpu.memory_space<vmem>>, vector<1x8x8xbf16>
    %89 = vector.shape_cast %88 : vector<1x8x8xbf16> to vector<8x8xbf16>
    %cst_73 = arith.constant dense<0.000000e+00> : vector<96x8xf32>
    %90 = tpu.matmul %87, %89, %cst_73 {dimension_numbers = #tpu.dot_dimension_numbers<[1], [0], [0], [1], [0, 0, 1, 1], [], []>} : vector<96x8xbf16>, vector<8x8xbf16>, vector<96x8xf32> -> vector<96x8xf32>
    %91 = arith.addf %85, %90 : vector<96x8xf32>
    %c28_74 = arith.constant 28 : index
    %c0_75 = arith.constant 0 : index
    %92 = vector.load %arg10[%c28_74, %c0_75] : memref<176x8xf32, #tpu.memory_space<vmem>>, vector<96x8xf32>
    %93 = arith.truncf %92 : vector<96x8xf32> to vector<96x8xbf16>
    %c1_76 = arith.constant 1 : index
    %c0_77 = arith.constant 0 : index
    %c0_78 = arith.constant 0 : index
    %94 = vector.load %arg4[%c1_76, %c0_77, %c0_78] : memref<9x8x8xbf16, #tpu.memory_space<vmem>>, vector<1x8x8xbf16>
    %95 = vector.shape_cast %94 : vector<1x8x8xbf16> to vector<8x8xbf16>
    %cst_79 = arith.constant dense<0.000000e+00> : vector<96x8xf32>
    %96 = tpu.matmul %93, %95, %cst_79 {dimension_numbers = #tpu.dot_dimension_numbers<[1], [0], [0], [1], [0, 0, 1, 1], [], []>} : vector<96x8xbf16>, vector<8x8xbf16>, vector<96x8xf32> -> vector<96x8xf32>
    %97 = arith.addf %91, %96 : vector<96x8xf32>
    %c29_80 = arith.constant 29 : index
    %c0_81 = arith.constant 0 : index
    %98 = vector.load %arg10[%c29_80, %c0_81] : memref<176x8xf32, #tpu.memory_space<vmem>>, vector<96x8xf32>
    %99 = arith.truncf %98 : vector<96x8xf32> to vector<96x8xbf16>
    %c2_82 = arith.constant 2 : index
    %c0_83 = arith.constant 0 : index
    %c0_84 = arith.constant 0 : index
    %100 = vector.load %arg4[%c2_82, %c0_83, %c0_84] : memref<9x8x8xbf16, #tpu.memory_space<vmem>>, vector<1x8x8xbf16>
    %101 = vector.shape_cast %100 : vector<1x8x8xbf16> to vector<8x8xbf16>
    %cst_85 = arith.constant dense<0.000000e+00> : vector<96x8xf32>
    %102 = tpu.matmul %99, %101, %cst_85 {dimension_numbers = #tpu.dot_dimension_numbers<[1], [0], [0], [1], [0, 0, 1, 1], [], []>} : vector<96x8xbf16>, vector<8x8xbf16>, vector<96x8xf32> -> vector<96x8xf32>
    %103 = arith.addf %97, %102 : vector<96x8xf32>
    %c39 = arith.constant 39 : index
    %c0_86 = arith.constant 0 : index
    %104 = vector.load %arg10[%c39, %c0_86] : memref<176x8xf32, #tpu.memory_space<vmem>>, vector<96x8xf32>
    %105 = arith.truncf %104 : vector<96x8xf32> to vector<96x8xbf16>
    %c3_87 = arith.constant 3 : index
    %c0_88 = arith.constant 0 : index
    %c0_89 = arith.constant 0 : index
    %106 = vector.load %arg4[%c3_87, %c0_88, %c0_89] : memref<9x8x8xbf16, #tpu.memory_space<vmem>>, vector<1x8x8xbf16>
    %107 = vector.shape_cast %106 : vector<1x8x8xbf16> to vector<8x8xbf16>
    %cst_90 = arith.constant dense<0.000000e+00> : vector<96x8xf32>
    %108 = tpu.matmul %105, %107, %cst_90 {dimension_numbers = #tpu.dot_dimension_numbers<[1], [0], [0], [1], [0, 0, 1, 1], [], []>} : vector<96x8xbf16>, vector<8x8xbf16>, vector<96x8xf32> -> vector<96x8xf32>
    %109 = arith.addf %103, %108 : vector<96x8xf32>
    %c40 = arith.constant 40 : index
    %c0_91 = arith.constant 0 : index
    %110 = vector.load %arg10[%c40, %c0_91] : memref<176x8xf32, #tpu.memory_space<vmem>>, vector<96x8xf32>
    %111 = arith.truncf %110 : vector<96x8xf32> to vector<96x8xbf16>
    %c4_92 = arith.constant 4 : index
    %c0_93 = arith.constant 0 : index
    %c0_94 = arith.constant 0 : index
    %112 = vector.load %arg4[%c4_92, %c0_93, %c0_94] : memref<9x8x8xbf16, #tpu.memory_space<vmem>>, vector<1x8x8xbf16>
    %113 = vector.shape_cast %112 : vector<1x8x8xbf16> to vector<8x8xbf16>
    %cst_95 = arith.constant dense<0.000000e+00> : vector<96x8xf32>
    %114 = tpu.matmul %111, %113, %cst_95 {dimension_numbers = #tpu.dot_dimension_numbers<[1], [0], [0], [1], [0, 0, 1, 1], [], []>} : vector<96x8xbf16>, vector<8x8xbf16>, vector<96x8xf32> -> vector<96x8xf32>
    %115 = arith.addf %109, %114 : vector<96x8xf32>
    %c41 = arith.constant 41 : index
    %c0_96 = arith.constant 0 : index
    %116 = vector.load %arg10[%c41, %c0_96] : memref<176x8xf32, #tpu.memory_space<vmem>>, vector<96x8xf32>
    %117 = arith.truncf %116 : vector<96x8xf32> to vector<96x8xbf16>
    %c5_97 = arith.constant 5 : index
    %c0_98 = arith.constant 0 : index
    %c0_99 = arith.constant 0 : index
    %118 = vector.load %arg4[%c5_97, %c0_98, %c0_99] : memref<9x8x8xbf16, #tpu.memory_space<vmem>>, vector<1x8x8xbf16>
    %119 = vector.shape_cast %118 : vector<1x8x8xbf16> to vector<8x8xbf16>
    %cst_100 = arith.constant dense<0.000000e+00> : vector<96x8xf32>
    %120 = tpu.matmul %117, %119, %cst_100 {dimension_numbers = #tpu.dot_dimension_numbers<[1], [0], [0], [1], [0, 0, 1, 1], [], []>} : vector<96x8xbf16>, vector<8x8xbf16>, vector<96x8xf32> -> vector<96x8xf32>
    %121 = arith.addf %115, %120 : vector<96x8xf32>
    %c51 = arith.constant 51 : index
    %c0_101 = arith.constant 0 : index
    %122 = vector.load %arg10[%c51, %c0_101] : memref<176x8xf32, #tpu.memory_space<vmem>>, vector<96x8xf32>
    %123 = arith.truncf %122 : vector<96x8xf32> to vector<96x8xbf16>
    %c6_102 = arith.constant 6 : index
    %c0_103 = arith.constant 0 : index
    %c0_104 = arith.constant 0 : index
    %124 = vector.load %arg4[%c6_102, %c0_103, %c0_104] : memref<9x8x8xbf16, #tpu.memory_space<vmem>>, vector<1x8x8xbf16>
    %125 = vector.shape_cast %124 : vector<1x8x8xbf16> to vector<8x8xbf16>
    %cst_105 = arith.constant dense<0.000000e+00> : vector<96x8xf32>
    %126 = tpu.matmul %123, %125, %cst_105 {dimension_numbers = #tpu.dot_dimension_numbers<[1], [0], [0], [1], [0, 0, 1, 1], [], []>} : vector<96x8xbf16>, vector<8x8xbf16>, vector<96x8xf32> -> vector<96x8xf32>
    %127 = arith.addf %121, %126 : vector<96x8xf32>
    %c52 = arith.constant 52 : index
    %c0_106 = arith.constant 0 : index
    %128 = vector.load %arg10[%c52, %c0_106] : memref<176x8xf32, #tpu.memory_space<vmem>>, vector<96x8xf32>
    %129 = arith.truncf %128 : vector<96x8xf32> to vector<96x8xbf16>
    %c7_107 = arith.constant 7 : index
    %c0_108 = arith.constant 0 : index
    %c0_109 = arith.constant 0 : index
    %130 = vector.load %arg4[%c7_107, %c0_108, %c0_109] : memref<9x8x8xbf16, #tpu.memory_space<vmem>>, vector<1x8x8xbf16>
    %131 = vector.shape_cast %130 : vector<1x8x8xbf16> to vector<8x8xbf16>
    %cst_110 = arith.constant dense<0.000000e+00> : vector<96x8xf32>
    %132 = tpu.matmul %129, %131, %cst_110 {dimension_numbers = #tpu.dot_dimension_numbers<[1], [0], [0], [1], [0, 0, 1, 1], [], []>} : vector<96x8xbf16>, vector<8x8xbf16>, vector<96x8xf32> -> vector<96x8xf32>
    %133 = arith.addf %127, %132 : vector<96x8xf32>
    %c53 = arith.constant 53 : index
    %c0_111 = arith.constant 0 : index
    %134 = vector.load %arg10[%c53, %c0_111] : memref<176x8xf32, #tpu.memory_space<vmem>>, vector<96x8xf32>
    %135 = arith.truncf %134 : vector<96x8xf32> to vector<96x8xbf16>
    %c8_112 = arith.constant 8 : index
    %c0_113 = arith.constant 0 : index
    %c0_114 = arith.constant 0 : index
    %136 = vector.load %arg4[%c8_112, %c0_113, %c0_114] : memref<9x8x8xbf16, #tpu.memory_space<vmem>>, vector<1x8x8xbf16>
    %137 = vector.shape_cast %136 : vector<1x8x8xbf16> to vector<8x8xbf16>
    %cst_115 = arith.constant dense<0.000000e+00> : vector<96x8xf32>
    %138 = tpu.matmul %135, %137, %cst_115 {dimension_numbers = #tpu.dot_dimension_numbers<[1], [0], [0], [1], [0, 0, 1, 1], [], []>} : vector<96x8xbf16>, vector<8x8xbf16>, vector<96x8xf32> -> vector<96x8xf32>
    %139 = arith.addf %133, %138 : vector<96x8xf32>
    %c0_116 = arith.constant 0 : index
    %c0_117 = arith.constant 0 : index
    %140 = vector.load %arg5[%c0_116, %c0_117] : memref<1x8xf32, #tpu.memory_space<vmem>>, vector<1x8xf32>
    %141 = vector.broadcast %140 : vector<1x8xf32> to vector<96x8xf32>
    %142 = arith.addf %139, %141 : vector<96x8xf32>
    %c1_118 = arith.constant 1 : index
    %143 = memref.load %arg7[%c1_118] : memref<2xf32, #tpu.memory_space<smem>>
    %cst_119 = arith.constant 0.000000e+00 : f32
    %144 = vector.broadcast %cst_119 : f32 to vector<96x8xf32>
    %145 = arith.cmpf oge, %142, %144 : vector<96x8xf32>
    %146 = vector.broadcast %143 : f32 to vector<96x8xf32>
    %147 = arith.mulf %146, %142 : vector<96x8xf32>
    %148 = arith.select %145, %142, %147 : vector<96x8xi1>, vector<96x8xf32>
    %c0_120 = arith.constant 0 : index
    %c0_121 = arith.constant 0 : index
    %c0_122 = arith.constant 0 : index
    %149 = vector.load %arg8[%c0_120, %c0_121, %c0_122] : memref<1x96x8xf32, #tpu.memory_space<vmem>>, vector<1x96x8xf32>
    %150 = vector.shape_cast %149 : vector<1x96x8xf32> to vector<96x8xf32>
    %151 = vector.shape_cast %148 : vector<96x8xf32> to vector<1x96x8xf32>
    tpu.vector_store %arg8[%c0_120, %c0_121, %c0_122], %151 {strides = array<i32>} : memref<1x96x8xf32, #tpu.memory_space<vmem>>, vector<1x96x8xf32>,
    return
  }
  func.func @transform_0(%arg0: i32) -> (i32, i32, i32, i32) {
    %c0_i32 = arith.constant 0 : i32
    %c0_i32_0 = arith.constant 0 : i32
    %c0_i32_1 = arith.constant 0 : i32
    %c0_i32_2 = arith.constant 0 : i32
    return %arg0, %c0_i32, %c0_i32_0, %c0_i32_1 : i32, i32, i32, i32
  }
  func.func @transform_1(%arg0: i32) -> (i32, i32, i32) {
    %c0_i32 = arith.constant 0 : i32
    %c0_i32_0 = arith.constant 0 : i32
    %c0_i32_1 = arith.constant 0 : i32
    %c0_i32_2 = arith.constant 0 : i32
    return %c0_i32, %c0_i32_0, %c0_i32_1 : i32, i32, i32
  }
  func.func @transform_2(%arg0: i32) -> (i32, i32) {
    %c0_i32 = arith.constant 0 : i32
    %c0_i32_0 = arith.constant 0 : i32
    %c0_i32_1 = arith.constant 0 : i32
    return %c0_i32, %c0_i32_0 : i32, i32
  }
  func.func @transform_3(%arg0: i32) -> (i32, i32, i32) {
    %c0_i32 = arith.constant 0 : i32
    %c0_i32_0 = arith.constant 0 : i32
    %c0_i32_1 = arith.constant 0 : i32
    %c0_i32_2 = arith.constant 0 : i32
    return %c0_i32, %c0_i32_0, %c0_i32_1 : i32, i32, i32
  }
  func.func @transform_4(%arg0: i32) -> (i32, i32) {
    %c0_i32 = arith.constant 0 : i32
    %c0_i32_0 = arith.constant 0 : i32
    %c0_i32_1 = arith.constant 0 : i32
    return %c0_i32, %c0_i32_0 : i32, i32
  }
  func.func @transform_5(%arg0: i32) -> (i32, i32) {
    %c0_i32 = arith.constant 0 : i32
    %c0_i32_0 = arith.constant 0 : i32
    %c0_i32_1 = arith.constant 0 : i32
    return %c0_i32, %c0_i32_0 : i32, i32
  }
  func.func @transform_6(%arg0: i32) -> i32 {
    %c0_i32 = arith.constant 0 : i32
    %c0_i32_0 = arith.constant 0 : i32
    return %c0_i32 : i32
  }
  func.func @transform_7(%arg0: i32) -> (i32, i32, i32) {
    %c0_i32 = arith.constant 0 : i32
    %c0_i32_0 = arith.constant 0 : i32
    %c0_i32_1 = arith.constant 0 : i32
    return %arg0, %c0_i32, %c0_i32_0 : i32, i32, i32
  }
}

</mosaic_0001>

<bundles_post_ra>
// kernel: tpu_custom_call.1
= control target key start
LH: loop header
LB: loop body
LE: loop exit
PB: predicated region body
PF: predicated region fallthrough
CT: control target
= control target key end

     0   :  { %12 = vsyncpa [#allocation5], 0  ;;  %s4570_s24 = smov 0   ;;  %s5980_s0 = inlined_call_operand.vmem [shape: bf16[2,4,144,4], index: 0, kind: input, shape index: {}]   ;;  %s5981_s1 = inlined_call_operand.vmem [shape: bf16[9,4,8], index: 1, kind: input, shape index: {}]   ;;  %s5982_s2 = inlined_call_operand.vmem [shape: f32[1,8], index: 2, kind: input, shape index: {}]   ;;  %s5983_s3 = inlined_call_operand.vmem [shape: bf16[9,8,8], index: 3, kind: input, shape index: {}]   ;;  %s5984_s4 = inlined_call_operand.vmem [shape: f32[1,8], index: 4, kind: input, shape index: {}]   ;;  %s5985_s5 = inlined_call_operand.vmem [shape: f32[144,1], index: 5, kind: input, shape index: {}]   ;;  %s5986_s6 = inlined_call_operand.vmem [shape: f32[2], index: 6, kind: input, shape index: {}]   ;;  %s5987_s7 = inlined_call_operand.vmem [shape: f32[2,96,8], index: 7, kind: output, shape index: {}]  }
   0x1 LB: > { %s4576_s25 = sadd.s32 4294967295, %s4524_s24   ;;  %p3626_p0 = scmp.ge.s32.totalorder %s4524_s24, 1  ;;  %s4524_s24 = sphi %s4570_s24, %s18_s24  }
   0x2   : > { %p201_p1 = scmp.lt.s32.totalorder %s4524_s24, 3  ;;  %s229_s28 = sshll.u32 %s5986_s6, 4  ;;  %s230_s28 = int_to_ptr.vmem [resolvable:$true] %s229_s28 }
   0x3   : > { %p4483_p3 = scmp.eq.s32.totalorder %s4576_s25, 0  ;;  %s4499_s30 = scalar_lea.vmem %s230_s28, 16 }
   0x4   : > { %p4583_p2 = pnand %p3626_p0, %p201_p1  ;;  %p4500_p6 = scmp.ne.s32.totalorder %s230_s28, %s4499_s30 }
   0x5   : > { %p4507_p10 = scmp.lt.s32.totalorder %s230_s28, %s230_s28  ;;  %p4508_p11 = scmp.lt.s32.totalorder %s4499_s30, %s4499_s30 }
   0x6   : > { %p4479_p4 = pneg %p4583_p2 }
   0x7   : > { %p4509_p12 = por %p4508_p11, %p4507_p10 }
   0x8   : > { %p4480_p5 = pnand %p4483_p3, %p4479_p4 }
   0xa   : > { %p4501_p7 = pneg %p4480_p5 }
   0xc   : > { %p4502_p8 = pnand %p4501_p7, %p4500_p6 }
   0xe   : > { %p4503_p9 = pneg %p4502_p8 }
  0x10   : > { %p4510_p13 = pnand %p4509_p12, %p4503_p9 }
  0x12   : > { %4513 = shalt.err (!%p4510_p13)
}
  0x13   : > { %s4526_s8 = smov [#allocation4]   ;;  %250 = sbr.rel (%p4583_p2) target bundleno = 933 (0x3a5), region = 48 }
  0x14   : > { %4482 = dma.vmem_to_smem (!%p4480_p5), %s230_s28, 16, %s4526_s8, [#allocation5]  }
  0x18   : > { %4519 = dma.done.wait (%p4483_p3), [#allocation5], 16  }
  0x19   : > { %4521 = vsyncadd (%p4483_p3), [#allocation5], 4294967280 }
  0x1a   : > { %256 = sfence }
  0x1b   : > { %v3687_v0 = vld [vmem:[%s5981_s1 + $0x2] sm:$0x3]  ;;  %vm544_vm0 = vcmask 1041408   ;;  %v487_v1 = vld [vmem:[%s5981_s1] sm:$0x3]  ;;  %v5988_v2 = vmov 0.0  }
  0x1c   : > { %3996 = vmatprep.subr.bf16.mxu0 %v5988_v2  ;;  %v546_v3 = vsel %vm544_vm0, %v3687_v0, 0  ;;  %4034 = vmatprep.subr.bf16.mxu1 %v5988_v2  ;;  %v681_v4 = vsel %vm544_vm0, %v487_v1, 0  ;;  %p283_p0 = scmp.lt.s32.totalorder %s4576_s25, 1  ;;  %vm4528_vm1 = vmmov 0   ;;  %vm441_vm2 = vcmask 31744   ;;  %v488_v61 = vld [vmem:[#allocation2 + $0x4] sm:$0xff] }
  0x1d   : > { %3997 = vmatpush3.bf16.msra.mxu0 %v546_v3  ;;  %4035 = vmatpush3.bf16.msra.mxu1 %v681_v4  ;;  %v3706_v56 = vld [vmem:[%s5981_s1 + $0x4] sm:$0x3]  ;;  %s2087_s12 = sld [smem:[#allocation4]] }
  0x1e   : > { %3998 = vmatprep.mubr.msk.bf16.mxu0 %vm4528_vm1, %v5988_v2  ;;  %4036 = vmatprep.mubr.msk.bf16.mxu1 %vm4528_vm1, %v5988_v2  ;;  %s6021_s25 = smov (!%p283_p0, %s4576_s25), 1  ;;  %v460_v62 = vld [vmem:[#allocation2 + $0x3] sm:$0xff]  ;;  %s3840_s27 = sld [smem:[#allocation4 + $0x1]] }
  0x1f   : > { %4072 = vmatprep.subr.bf16.mxu0 %v5988_v2  ;;  %4110 = vmatprep.subr.bf16.mxu1 %v5988_v2  ;;  %s4473_s13 = smul.u32 288, %s6021_s25 }
  0x20   : > { %s4474_s30 = smul.u32 96, %s6021_s25 }
  0x21   : > { %s4622_s16 = scalar_lea.vmem %s5980_s0, %s4473_s13 }
  0x22   : > { %v294_v5 = vld [vmem:[%s4622_s16] sm:$0xf]  ;;  %v3633_v6 = vld [vmem:[%s4622_s16 + $0x48] sm:$0xf]  ;;  %v3651_v7 = vld [vmem:[%s4622_s16 + $0x90] sm:$0xf]  ;;  %s5914_s9 = scalar_lea.vmem %s5987_s7, %s4474_s30 }
  0x23   : > { %v331_v8 = vmax.bf16 %v3633_v6, %v294_v5  ;;  %v3669_v9 = vld [vmem:[%s4622_s16 + $0xd8] sm:$0xf]  ;;  %v295_v10 = vld [vmem:[%s4622_s16 + $0x4] sm:$0xf]  ;;  %v296_v11 = vld [vmem:[%s4622_s16 + $0x8] sm:$0xf] }
  0x24   : > { %v387_v12 = vmax.bf16 %v3669_v9, %v3651_v7  ;;  %v3634_v13 = vld [vmem:[%s4622_s16 + $0x4c] sm:$0xf]  ;;  %v3635_v14 = vld [vmem:[%s4622_s16 + $0x50] sm:$0xf]  ;;  %v3652_v15 = vld [vmem:[%s4622_s16 + $0x94] sm:$0xf] }
  0x25   : > { %v332_v16 = vmax.bf16 %v3634_v13, %v295_v10  ;;  %v333_v17 = vmax.bf16 %v3635_v14, %v296_v11  ;;  %v3653_v18 = vld [vmem:[%s4622_s16 + $0x98] sm:$0xf]  ;;  %v3670_v19 = vld [vmem:[%s4622_s16 + $0xdc] sm:$0xf]  ;;  %v3671_v20 = vld [vmem:[%s4622_s16 + $0xe0] sm:$0xf] }
  0x26   : > { %v405_v21 = vmax.bf16 %v387_v12, %v331_v8  ;;  %v388_v22 = vmax.bf16 %v3670_v19, %v3652_v15  ;;  %v389_v23 = vmax.bf16 %v3671_v20, %v3653_v18  ;;  %v297_v24 = vld [vmem:[%s4622_s16 + $0xc] sm:$0xf]  ;;  %v298_v25 = vld [vmem:[%s4622_s16 + $0x10] sm:$0xf]  ;;  %v3636_v26 = vld [vmem:[%s4622_s16 + $0x54] sm:$0xf] }
  0x27   : > { %v3637_v27 = vld [vmem:[%s4622_s16 + $0x58] sm:$0xf]  ;;  %v334_v28 = vmax.bf16 %v3636_v26, %v297_v24  ;;  %v3654_v29 = vld [vmem:[%s4622_s16 + $0x9c] sm:$0xf]  ;;  %v3655_v30 = vld [vmem:[%s4622_s16 + $0xa0] sm:$0xf] }
  0x28   : > { %v423_v31 = vunpack.c.l.bf16 %v405_v21  ;;  %v406_v32 = vmax.bf16 %v388_v22, %v332_v16  ;;  %v407_v33 = vmax.bf16 %v389_v23, %v333_v17  ;;  %v335_v34 = vmax.bf16 %v3637_v27, %v298_v25  ;;  %v3672_v35 = vld [vmem:[%s4622_s16 + $0xe4] sm:$0xf]  ;;  %v3673_v36 = vld [vmem:[%s4622_s16 + $0xe8] sm:$0xf]  ;;  %v299_v37 = vld [vmem:[%s4622_s16 + $0x14] sm:$0xf] }
  0x29   : > { %v390_v38 = vmax.bf16 %v3672_v35, %v3654_v29  ;;  %v391_v39 = vmax.bf16 %v3673_v36, %v3655_v30  ;;  %v300_v40 = vld [vmem:[%s4622_s16 + $0x18] sm:$0xf]  ;;  %v3638_v41 = vld [vmem:[%s4622_s16 + $0x5c] sm:$0xf]  ;;  %v3639_v42 = vld [vmem:[%s4622_s16 + $0x60] sm:$0xf] }
  0x2a   : > { %442 = vst.msk [vmem:[#allocation2 + $0x10] sm:$0xff] %vm441_vm2, %v423_v31  ;;  %v424_v43 = vunpack.c.l.bf16 %v406_v32  ;;  %v425_v44 = vunpack.c.l.bf16 %v407_v33  ;;  %v336_v45 = vmax.bf16 %v3638_v41, %v299_v37  ;;  %v337_v46 = vmax.bf16 %v3639_v42, %v300_v40  ;;  %v3656_v47 = vld [vmem:[%s4622_s16 + $0xa4] sm:$0xf]  ;;  %v3657_v48 = vld [vmem:[%s4622_s16 + $0xa8] sm:$0xf] }
  0x2b   : > { %v3674_v49 = vld [vmem:[%s4622_s16 + $0xec] sm:$0xf]  ;;  %v408_v50 = vmax.bf16 %v390_v38, %v334_v28  ;;  %v409_v51 = vmax.bf16 %v391_v39, %v335_v34  ;;  %v3675_v52 = vld [vmem:[%s4622_s16 + $0xf0] sm:$0xf]  ;;  %v301_v54 = vld [vmem:[%s4622_s16 + $0x1c] sm:$0xf] }
  0x2c   : > { %v392_v53 = vmax.bf16 %v3674_v49, %v3656_v47  ;;  %v302_v55 = vld [vmem:[%s4622_s16 + $0x20] sm:$0xf]  ;;  %443 = vst.msk [vmem:[#allocation2 + $0x18] sm:$0xff] %vm441_vm2, %v424_v43  ;;  %444 = vst.msk [vmem:[#allocation2 + $0x20] sm:$0xff] %vm441_vm2, %v425_v44  ;;  %v393_v57 = vmax.bf16 %v3675_v52, %v3657_v48  ;;  %v3640_v58 = vld [vmem:[%s4622_s16 + $0x64] sm:$0xf] }
  0x2d   : > { %v3641_v59 = vld [vmem:[%s4622_s16 + $0x68] sm:$0xf]  ;;  %v3658_v60 = vld [vmem:[%s4622_s16 + $0xac] sm:$0xf]  ;;  %v426_v63 = vunpack.c.l.bf16 %v408_v50  ;;  %v427_v0 = vunpack.c.l.bf16 %v409_v51  ;;  %v338_v3 = vmax.bf16 %v3640_v58, %v301_v54  ;;  %v3659_v4 = vld [vmem:[%s4622_s16 + $0xb0] sm:$0xf] }
  0x2e   : > { %v410_v1 = vmax.bf16 %v392_v53, %v336_v45  ;;  %v3676_v5 = vld [vmem:[%s4622_s16 + $0xf4] sm:$0xf]  ;;  %v3677_v6 = vld [vmem:[%s4622_s16 + $0xf8] sm:$0xf]  ;;  %v411_v7 = vmax.bf16 %v393_v57, %v337_v46  ;;  %v339_v8 = vmax.bf16 %v3641_v59, %v302_v55  ;;  %v303_v11 = vld [vmem:[%s4622_s16 + $0x24] sm:$0xf] }
  0x2f   : > { %v394_v9 = vmax.bf16 %v3676_v5, %v3658_v60  ;;  %v395_v10 = vmax.bf16 %v3677_v6, %v3659_v4  ;;  %v304_v12 = vld [vmem:[%s4622_s16 + $0x28] sm:$0xf]  ;;  %v3642_v13 = vld [vmem:[%s4622_s16 + $0x6c] sm:$0xf]  ;;  %v3716_v14 = vld [vmem:[%s5981_s1 + $0x6] sm:$0x3] }
  0x30   : > { %445 = vst.msk [vmem:[#allocation2 + $0x28] sm:$0xff] %vm441_vm2, %v426_v63  ;;  %446 = vst.msk [vmem:[#allocation2 + $0x30] sm:$0xff] %vm441_vm2, %v427_v0  ;;  %v428_v15 = vunpack.c.l.bf16 %v410_v1  ;;  %v3643_v16 = vld [vmem:[%s4622_s16 + $0x70] sm:$0xf]  ;;  %v340_v17 = vmax.bf16 %v3642_v13, %v303_v11  ;;  %v3660_v18 = vld [vmem:[%s4622_s16 + $0xb4] sm:$0xf]  ;;  %v429_v20 = vunpack.c.l.bf16 %v411_v7 }
  0x31   : > { %v3661_v19 = vld [vmem:[%s4622_s16 + $0xb8] sm:$0xf]  ;;  %v412_v21 = vmax.bf16 %v394_v9, %v338_v3  ;;  %v413_v22 = vmax.bf16 %v395_v10, %v339_v8  ;;  %v341_v23 = vmax.bf16 %v3643_v16, %v304_v12  ;;  %v3678_v24 = vld [vmem:[%s4622_s16 + $0xfc] sm:$0xf]  ;;  %v3679_v25 = vld [vmem:[%s4622_s16 + $0x100] sm:$0xf] }
  0x32   : > { %v305_v26 = vld [vmem:[%s4622_s16 + $0x2c] sm:$0xf]  ;;  %v845_v29 = vsel %vm544_vm0, %v3706_v56, 0  ;;  %447 = vst.msk [vmem:[#allocation2 + $0x38] sm:$0xff] %vm441_vm2, %v428_v15  ;;  %v396_v30 = vmax.bf16 %v3678_v24, %v3660_v18  ;;  %v397_v31 = vmax.bf16 %v3679_v25, %v3661_v19  ;;  %v306_v32 = vld [vmem:[%s4622_s16 + $0x30] sm:$0xf] }
  0x33   : > { %v489_v27 = vld [vmem:[#allocation2 + $0xc] sm:$0xff]  ;;  %448 = vst.msk [vmem:[#allocation2 + $0x40] sm:$0xff] %vm441_vm2, %v429_v20  ;;  %v430_v35 = vunpack.c.l.bf16 %v412_v21  ;;  %v431_v36 = vunpack.c.l.bf16 %v413_v22  ;;  %v3644_v37 = vld [vmem:[%s4622_s16 + $0x74] sm:$0xf]  ;;  %v3645_v38 = vld [vmem:[%s4622_s16 + $0x78] sm:$0xf] }
  0x34   : > { %v461_v28 = vld [vmem:[#allocation2 + $0xb] sm:$0xff]  ;;  %v506_v33 = vpack.c.bf16 %v489_v27, %v488_v61  ;;  %v3662_v39 = vld [vmem:[%s4622_s16 + $0xbc] sm:$0xf]  ;;  %v490_v40 = vld [vmem:[#allocation2 + $0x14] sm:$0xff]  ;;  %v414_v41 = vmax.bf16 %v396_v30, %v340_v17  ;;  %v415_v42 = vmax.bf16 %v397_v31, %v341_v23  ;;  %v342_v43 = vmax.bf16 %v3644_v37, %v305_v26 }
  0x35   : > { %v478_v34 = vpack.c.bf16 %v461_v28, %v460_v62  ;;  %v1027_v44 = vsel %vm544_vm0, %v3716_v14, 0  ;;  %v4690_v45 = vld [vmem:[#allocation2 + $0x1c] sm:$0xff]  ;;  %449 = vst.msk [vmem:[#allocation2 + $0x48] sm:$0xff] %vm441_vm2, %v430_v35  ;;  %450 = vst.msk [vmem:[#allocation2 + $0x50] sm:$0xff] %vm441_vm2, %v431_v36  ;;  %v343_v46 = vmax.bf16 %v3645_v38, %v306_v32  ;;  %v3680_v48 = vld [vmem:[%s4622_s16 + $0x104] sm:$0xf] }
  0x36   : > { %3999 = vmatmul.mubr.msk.bf16.vlgmr.msra.gmra.mxu0 %vm441_vm2, %v506_v33  ;;  %v3663_v47 = vld [vmem:[%s4622_s16 + $0xc0] sm:$0xf]  ;;  %v462_v49 = vld [vmem:[#allocation2 + $0x13] sm:$0xff]  ;;  %v432_v51 = vunpack.c.l.bf16 %v414_v41  ;;  %v433_v52 = vunpack.c.l.bf16 %v415_v42  ;;  %v3681_v53 = vld [vmem:[%s4622_s16 + $0x108] sm:$0xf]  ;;  %v398_v54 = vmax.bf16 %v3680_v48, %v3662_v39  ;;  %v507_v61 = vpack.c.bf16 %v4690_v45, %v490_v40 }
  0x37   : > { %4037 = vmatmul.mubr.msk.bf16.vlgmr.msra.gmra.mxu1 %vm441_vm2, %v478_v34  ;;  %4073 = vmatpush3.bf16.msra.mxu0 %v845_v29  ;;  %v4698_v50 = vld [vmem:[#allocation2 + $0x1b] sm:$0xff]  ;;  %v399_v55 = vmax.bf16 %v3681_v53, %v3663_v47  ;;  %v307_v56 = vld [vmem:[%s4622_s16 + $0x34] sm:$0xf]  ;;  %v3664_v0 = vld [vmem:[%s4622_s16 + $0xc4] sm:$0xf] }
  0x38   : > { %4002 = vmatprep.mubr.msk.bf16.mxu0 %vm4528_vm1, %v5988_v2  ;;  %4040 = vmatprep.mubr.msk.bf16.mxu1 %vm4528_vm1, %v5988_v2  ;;  %v308_v57 = vld [vmem:[%s4622_s16 + $0x38] sm:$0xf]  ;;  %451 = vst.msk [vmem:[#allocation2 + $0x58] sm:$0xff] %vm441_vm2, %v432_v51  ;;  %452 = vst.msk [vmem:[#allocation2 + $0x60] sm:$0xff] %vm441_vm2, %v433_v52  ;;  %v416_v58 = vmax.bf16 %v398_v54, %v342_v43  ;;  %v3646_v59 = vld [vmem:[%s4622_s16 + $0x7c] sm:$0xf]  ;;  %v479_v62 = vpack.c.bf16 %v4698_v50, %v462_v49 }
  0x39   : > { %4111 = vmatpush3.bf16.msra.mxu1 %v1027_v44  ;;  %v3647_v60 = vld [vmem:[%s4622_s16 + $0x80] sm:$0xf]  ;;  %4148 = vmatprep.subr.bf16.mxu0 %v5988_v2  ;;  %v417_v63 = vmax.bf16 %v399_v55, %v343_v46  ;;  %v344_v3 = vmax.bf16 %v3646_v59, %v307_v56  ;;  %v3665_v5 = vld [vmem:[%s4622_s16 + $0xc8] sm:$0xf]  ;;  %v3682_v7 = vld [vmem:[%s4622_s16 + $0x10c] sm:$0xf] }
  0x3a   : > { %4186 = vmatprep.subr.bf16.mxu1 %v5988_v2  ;;  %v434_v1 = vunpack.c.l.bf16 %v416_v58  ;;  %v345_v4 = vmax.bf16 %v3647_v60, %v308_v57  ;;  %v3683_v8 = vld [vmem:[%s4622_s16 + $0x110] sm:$0xf]  ;;  %v4717_v9 = vld [vmem:[#allocation2 + $0x24] sm:$0xff]  ;;  %v400_v12 = vmax.bf16 %v3682_v7, %v3664_v0  ;;  %v309_v14 = vld [vmem:[%s4622_s16 + $0x3c] sm:$0xf] }
  0x3b   : > { %v435_v6 = vunpack.c.l.bf16 %v417_v63  ;;  %v4719_v10 = vld [vmem:[#allocation2 + $0x2c] sm:$0xff]  ;;  %v4721_v11 = vld [vmem:[#allocation2 + $0x23] sm:$0xff]  ;;  %v401_v13 = vmax.bf16 %v3683_v8, %v3665_v5  ;;  %v3684_v27 = vld [vmem:[%s4622_s16 + $0x114] sm:$0xf] }
  0x3c   : > { %453 = vst.msk [vmem:[#allocation2 + $0x68] sm:$0xff] %vm441_vm2, %v434_v1  ;;  %v4727_v15 = vld [vmem:[#allocation2 + $0x2b] sm:$0xff]  ;;  %v310_v16 = vld [vmem:[%s4622_s16 + $0x40] sm:$0xf]  ;;  %v3648_v17 = vld [vmem:[%s4622_s16 + $0x84] sm:$0xf]  ;;  %v418_v18 = vmax.bf16 %v400_v12, %v344_v3  ;;  %v508_v29 = vpack.c.bf16 %v4719_v10, %v4717_v9 }
  0x3d   : > { %454 = vst.msk [vmem:[#allocation2 + $0x70] sm:$0xff] %vm441_vm2, %v435_v6  ;;  %v419_v19 = vmax.bf16 %v401_v13, %v345_v4  ;;  %v3649_v20 = vld [vmem:[%s4622_s16 + $0x88] sm:$0xf]  ;;  %v3666_v21 = vld [vmem:[%s4622_s16 + $0xcc] sm:$0xf]  ;;  %v346_v23 = vmax.bf16 %v3648_v17, %v309_v14  ;;  %v480_v30 = vpack.c.bf16 %v4727_v15, %v4721_v11  ;;  %v4749_v35 = vld [vmem:[#allocation2 + $0x34] sm:$0xff] }
  0x3e   : > { %4003 = vmatmul.mubr.msk.bf16.gmra.mxu0 %vm441_vm2, %v507_v61  ;;  %v3667_v22 = vld [vmem:[%s4622_s16 + $0xd0] sm:$0xf]  ;;  %v347_v24 = vmax.bf16 %v3649_v20, %v310_v16  ;;  %v436_v25 = vunpack.c.l.bf16 %v418_v18  ;;  %v3685_v28 = vld [vmem:[%s4622_s16 + $0x118] sm:$0xf]  ;;  %v402_v31 = vmax.bf16 %v3684_v27, %v3666_v21  ;;  %v4755_v38 = vld [vmem:[#allocation2 + $0x3c] sm:$0xff] }
  0x3f   : > { %4041 = vmatmul.mubr.msk.bf16.gmra.mxu1 %vm441_vm2, %v479_v62  ;;  %4006 = vmatprep.mubr.msk.bf16.mxu0 %vm4528_vm1, %v5988_v2  ;;  %v437_v26 = vunpack.c.l.bf16 %v419_v19  ;;  %v403_v32 = vmax.bf16 %v3685_v28, %v3667_v22  ;;  %v4757_v39 = vld [vmem:[#allocation2 + $0x33] sm:$0xff]  ;;  %v4759_v40 = vld [vmem:[#allocation2 + $0x3b] sm:$0xff]  ;;  %v509_v41 = vpack.c.bf16 %v4755_v38, %v4749_v35  ;;  %v4769_v43 = vld [vmem:[#allocation2 + $0x44] sm:$0xff] }
  0x40   : > { %4044 = vmatprep.mubr.msk.bf16.mxu1 %vm4528_vm1, %v5988_v2  ;;  %455 = vst.msk [vmem:[#allocation2 + $0x78] sm:$0xff] %vm441_vm2, %v436_v25  ;;  %v420_v33 = vmax.bf16 %v402_v31, %v346_v23  ;;  %v481_v42 = vpack.c.bf16 %v4759_v40, %v4757_v39  ;;  %v4771_v44 = vld [vmem:[#allocation2 + $0x4c] sm:$0xff]  ;;  %v4777_v46 = vld [vmem:[#allocation2 + $0x43] sm:$0xff]  ;;  %v3668_v51 = vld [vmem:[%s4622_s16 + $0xd4] sm:$0xf] }
  0x41   : > { %456 = vst.msk [vmem:[#allocation2 + $0x80] sm:$0xff] %vm441_vm2, %v437_v26  ;;  %v421_v34 = vmax.bf16 %v403_v32, %v347_v24  ;;  %v4779_v47 = vld [vmem:[#allocation2 + $0x4b] sm:$0xff]  ;;  %v311_v48 = vld [vmem:[%s4622_s16 + $0x44] sm:$0xf]  ;;  %v510_v52 = vpack.c.bf16 %v4771_v44, %v4769_v43  ;;  %v3686_v55 = vld [vmem:[%s4622_s16 + $0x11c] sm:$0xf] }
  0x42   : > { %v438_v36 = vunpack.c.l.bf16 %v420_v33  ;;  %v3650_v49 = vld [vmem:[%s4622_s16 + $0x8c] sm:$0xf]  ;;  %v482_v53 = vpack.c.bf16 %v4779_v47, %v4777_v46  ;;  %v404_v56 = vmax.bf16 %v3686_v55, %v3668_v51  ;;  %v4791_v58 = vld [vmem:[#allocation2 + $0x54] sm:$0xff]  ;;  %v4797_v59 = vld [vmem:[#allocation2 + $0x5c] sm:$0xff] }
  0x43   : > { %v439_v37 = vunpack.c.l.bf16 %v421_v34  ;;  %v348_v54 = vmax.bf16 %v3650_v49, %v311_v48  ;;  %v4799_v60 = vld [vmem:[#allocation2 + $0x53] sm:$0xff]  ;;  %v4801_v61 = vld [vmem:[#allocation2 + $0x5b] sm:$0xff]  ;;  %v511_v63 = vpack.c.bf16 %v4797_v59, %v4791_v58  ;;  %v4810_v1 = vld [vmem:[#allocation2 + $0x64] sm:$0xff] }
  0x44   : > { %457 = vst.msk [vmem:[#allocation2 + $0x88] sm:$0xff] %vm441_vm2, %v438_v36  ;;  %v483_v0 = vpack.c.bf16 %v4801_v61, %v4799_v60  ;;  %v4816_v3 = vld [vmem:[#allocation2 + $0x6c] sm:$0xff]  ;;  %v4818_v4 = vld [vmem:[#allocation2 + $0x63] sm:$0xff]  ;;  %v971_v27 = vld [vmem:[#allocation2 + $0x17] sm:$0xff] }
  0x45   : > { %458 = vst.msk [vmem:[#allocation2 + $0x90] sm:$0xff] %vm441_vm2, %v439_v37  ;;  %v422_v57 = vmax.bf16 %v404_v56, %v348_v54  ;;  %v4820_v5 = vld [vmem:[#allocation2 + $0x6b] sm:$0xff]  ;;  %v512_v6 = vpack.c.bf16 %v4816_v3, %v4810_v1  ;;  %v3726_v28 = vld [vmem:[%s5981_s1 + $0x8] sm:$0x3]  ;;  %v790_v34 = vld [vmem:[#allocation2 + $0x15] sm:$0xff] }
  0x46   : > { %4007 = vmatmul.mubr.msk.bf16.gmra.mxu0 %vm441_vm2, %v508_v29  ;;  %v484_v7 = vpack.c.bf16 %v4820_v5, %v4818_v4  ;;  %v788_v24 = vld [vmem:[#allocation2 + $0x5] sm:$0xff]  ;;  %v789_v25 = vld [vmem:[#allocation2 + $0xd] sm:$0xff]  ;;  %v1209_v32 = vsel %vm544_vm0, %v3726_v28, 0  ;;  %v4880_v36 = vld [vmem:[#allocation2 + $0x1d] sm:$0xff] }
  0x47   : > { %4045 = vmatmul.mubr.msk.bf16.gmra.mxu1 %vm441_vm2, %v480_v30  ;;  %4010 = vmatprep.mubr.msk.bf16.mxu0 %vm4528_vm1, %v5988_v2  ;;  %v440_v62 = vunpack.c.l.bf16 %v422_v57  ;;  %v4828_v8 = vld [vmem:[#allocation2 + $0x74] sm:$0xff]  ;;  %v806_v29 = vpack.c.bf16 %v789_v25, %v788_v24  ;;  %v3736_v31 = vld [vmem:[%s5981_s1 + $0xa] sm:$0x3]  ;;  %v972_v37 = vld [vmem:[#allocation2 + $0x1f] sm:$0xff] }
  0x48   : > { %4048 = vmatprep.mubr.msk.bf16.mxu1 %vm4528_vm1, %v5988_v2  ;;  %v4834_v12 = vld [vmem:[#allocation2 + $0x7c] sm:$0xff]  ;;  %v4836_v13 = vld [vmem:[#allocation2 + $0x73] sm:$0xff]  ;;  %v1391_v33 = vsel %vm544_vm0, %v3736_v31, 0  ;;  %v4889_v49 = vld [vmem:[#allocation2 + $0x25] sm:$0xff] }
  0x49   : > { %459 = vst.msk [vmem:[#allocation2 + $0x98] sm:$0xff] %vm441_vm2, %v440_v62  ;;  %v4838_v14 = vld [vmem:[#allocation2 + $0x7b] sm:$0xff]  ;;  %v513_v16 = vpack.c.bf16 %v4834_v12, %v4828_v8  ;;  %v970_v26 = vld [vmem:[#allocation2 + $0xf] sm:$0xff]  ;;  %v981_v28 = vld [vmem:[#allocation2 + $0x67] sm:$0xff] }
  0x4a   : > { %v485_v17 = vpack.c.bf16 %v4838_v14, %v4836_v13  ;;  %v988_v30 = vpack.c.bf16 %v971_v27, %v970_v26  ;;  %v4893_v51 = vld [vmem:[#allocation2 + $0x2d] sm:$0xff]  ;;  %v4901_v56 = vld [vmem:[#allocation2 + $0x35] sm:$0xff]  ;;  %v4905_v57 = vld [vmem:[#allocation2 + $0x3d] sm:$0xff] }
  0x4b   : > { %v4846_v18 = vld [vmem:[#allocation2 + $0x84] sm:$0xff]  ;;  %v808_v54 = vpack.c.bf16 %v4893_v51, %v4889_v49  ;;  %v4925_v25 = vld [vmem:[#allocation2 + $0x55] sm:$0xff] }
  0x4c   : > { %v4852_v19 = vld [vmem:[#allocation2 + $0x8c] sm:$0xff]  ;;  %v4854_v20 = vld [vmem:[#allocation2 + $0x83] sm:$0xff] }
  0x4d   : > { %v4856_v21 = vld [vmem:[#allocation2 + $0x8b] sm:$0xff]  ;;  %v514_v22 = vpack.c.bf16 %v4852_v19, %v4846_v18  ;;  %v976_v62 = vld [vmem:[#allocation2 + $0x3f] sm:$0xff] }
  0x4e   : > { %4011 = vmatmul.mubr.msk.bf16.gmra.mxu0 %vm441_vm2, %v509_v41  ;;  %v486_v23 = vpack.c.bf16 %v4856_v21, %v4854_v20  ;;  %v973_v41 = vld [vmem:[#allocation2 + $0x27] sm:$0xff]  ;;  %v4929_v26 = vld [vmem:[#allocation2 + $0x5d] sm:$0xff] }
  0x4f   : > { %4049 = vmatmul.mubr.msk.bf16.gmra.mxu1 %vm441_vm2, %v481_v42  ;;  %4014 = vmatprep.mubr.msk.bf16.mxu0 %vm4528_vm1, %v5988_v2  ;;  %v807_v42 = vpack.c.bf16 %v4880_v36, %v790_v34  ;;  %v989_v48 = vpack.c.bf16 %v973_v41, %v972_v37  ;;  %v980_v27 = vld [vmem:[#allocation2 + $0x5f] sm:$0xff]  ;;  %v983_v34 = vld [vmem:[#allocation2 + $0x77] sm:$0xff] }
  0x50   : > { %4052 = vmatprep.mubr.msk.bf16.mxu1 %vm4528_vm1, %v5988_v2  ;;  %v4937_v31 = vld [vmem:[#allocation2 + $0x65] sm:$0xff] }
  0x56   : > { %4015 = vmatmul.mubr.msk.bf16.gmra.mxu0 %vm441_vm2, %v510_v52  ;;  %v974_v52 = vld [vmem:[#allocation2 + $0x2f] sm:$0xff] }
  0x57   : > { %4053 = vmatmul.mubr.msk.bf16.gmra.mxu1 %vm441_vm2, %v482_v53  ;;  %4018 = vmatprep.mubr.msk.bf16.mxu0 %vm4528_vm1, %v5988_v2  ;;  %v975_v53 = vld [vmem:[#allocation2 + $0x37] sm:$0xff] }
  0x58   : > { %4056 = vmatprep.mubr.msk.bf16.mxu1 %vm4528_vm1, %v5988_v2  ;;  %v990_v55 = vpack.c.bf16 %v975_v53, %v974_v52  ;;  %v984_v52 = vld [vmem:[#allocation2 + $0x7f] sm:$0xff]  ;;  %v985_v53 = vld [vmem:[#allocation2 + $0x87] sm:$0xff] }
  0x5e   : > { %4019 = vmatmul.mubr.msk.bf16.gmra.mxu0 %vm441_vm2, %v511_v63  ;;  %v977_v63 = vld [vmem:[#allocation2 + $0x47] sm:$0xff] }
  0x5f   : > { %4057 = vmatmul.mubr.msk.bf16.gmra.mxu1 %vm441_vm2, %v483_v0  ;;  %4022 = vmatprep.mubr.msk.bf16.mxu0 %vm4528_vm1, %v5988_v2  ;;  %v809_v0 = vpack.c.bf16 %v4905_v57, %v4901_v56 }
  0x60   : > { %4060 = vmatprep.mubr.msk.bf16.mxu1 %vm4528_vm1, %v5988_v2 }
  0x66   : > { %4023 = vmatmul.mubr.msk.bf16.gmra.mxu0 %vm441_vm2, %v512_v6  ;;  %v991_v6 = vpack.c.bf16 %v977_v63, %v976_v62  ;;  %v4961_v62 = vld [vmem:[#allocation2 + $0x85] sm:$0xff]  ;;  %v4965_v63 = vld [vmem:[#allocation2 + $0x8d] sm:$0xff] }
  0x67   : > { %4061 = vmatmul.mubr.msk.bf16.gmra.mxu1 %vm441_vm2, %v484_v7  ;;  %4026 = vmatprep.mubr.msk.bf16.mxu0 %vm4528_vm1, %v5988_v2  ;;  %v4913_v7 = vld [vmem:[#allocation2 + $0x45] sm:$0xff] }
  0x68   : > { %4064 = vmatprep.mubr.msk.bf16.mxu1 %vm4528_vm1, %v5988_v2 }
  0x6e   : > { %4027 = vmatmul.mubr.msk.bf16.gmra.mxu0 %vm441_vm2, %v513_v16  ;;  %v4917_v16 = vld [vmem:[#allocation2 + $0x4d] sm:$0xff] }
  0x6f   : > { %4065 = vmatmul.mubr.msk.bf16.gmra.mxu1 %vm441_vm2, %v485_v17  ;;  %4030 = vmatprep.mubr.msk.bf16.mxu0 %vm4528_vm1, %v5988_v2  ;;  %v978_v17 = vld [vmem:[#allocation2 + $0x4f] sm:$0xff] }
  0x70   : > { %4068 = vmatprep.mubr.msk.bf16.mxu1 %vm4528_vm1, %v5988_v2 }
  0x76   : > { %4031 = vmatmul.mubr.msk.bf16.gmra.mxu0 %vm441_vm2, %v514_v22  ;;  %v979_v22 = vld [vmem:[#allocation2 + $0x57] sm:$0xff] }
  0x77   : > { %4069 = vmatmul.mubr.msk.bf16.gmra.mxu1 %vm441_vm2, %v486_v23  ;;  %4074 = vmatprep.mubr.msk.bf16.mxu0 %vm4528_vm1, %v5988_v2  ;;  %v810_v23 = vpack.c.bf16 %v4917_v16, %v4913_v7  ;;  %v992_v24 = vpack.c.bf16 %v979_v22, %v978_v17  ;;  %v814_v17 = vpack.c.bf16 %v4965_v63, %v4961_v62 }
  0x78   : > { %4112 = vmatprep.mubr.msk.bf16.mxu1 %vm4528_vm1, %v5988_v2 }
  0x7e   : > { %4075 = vmatmul.mubr.msk.bf16.vlgmr.msra.gmra.mxu0 %vm441_vm2, %v806_v29  ;;  %v811_v29 = vpack.c.bf16 %v4929_v26, %v4925_v25 }
  0x7f   : > { %4113 = vmatmul.mubr.msk.bf16.vlgmr.msra.gmra.mxu1 %vm441_vm2, %v988_v30  ;;  %4149 = vmatpush3.bf16.msra.mxu0 %v1209_v32  ;;  %v993_v30 = vpack.c.bf16 %v981_v28, %v980_v27  ;;  %v4941_v32 = vld [vmem:[#allocation2 + $0x6d] sm:$0xff]  ;;  %v1335_v28 = vld [vmem:[#allocation2 + $0x19] sm:$0xff] }
  0x80   : > { %4078 = vmatprep.mubr.msk.bf16.mxu0 %vm4528_vm1, %v5988_v2  ;;  %4116 = vmatprep.mubr.msk.bf16.mxu1 %vm4528_vm1, %v5988_v2  ;;  %v812_v37 = vpack.c.bf16 %v4941_v32, %v4937_v31  ;;  %v1334_v27 = vld [vmem:[#allocation2 + $0x11] sm:$0xff] }
  0x81   : > { %4187 = vmatpush3.bf16.msra.mxu1 %v1391_v33  ;;  %4224 = vmatprep.subr.bf16.mxu0 %v5988_v2  ;;  %v982_v33 = vld [vmem:[#allocation2 + $0x6f] sm:$0xff] }
  0x82   : > { %4262 = vmatprep.subr.bf16.mxu1 %v5988_v2  ;;  %v994_v41 = vpack.c.bf16 %v983_v34, %v982_v33  ;;  %v1352_v33 = vpack.c.bf16 %v1335_v28, %v1334_v27  ;;  %v3756_v34 = vld [vmem:[%s5981_s1 + $0xe] sm:$0x3] }
  0x86   : > { %4079 = vmatmul.mubr.msk.bf16.gmra.mxu0 %vm441_vm2, %v807_v42  ;;  %v4949_v42 = vld [vmem:[#allocation2 + $0x75] sm:$0xff] }
  0x87   : > { %4117 = vmatmul.mubr.msk.bf16.gmra.mxu1 %vm441_vm2, %v989_v48  ;;  %4082 = vmatprep.mubr.msk.bf16.mxu0 %vm4528_vm1, %v5988_v2  ;;  %v4953_v48 = vld [vmem:[#allocation2 + $0x7d] sm:$0xff] }
  0x88   : > { %4120 = vmatprep.mubr.msk.bf16.mxu1 %vm4528_vm1, %v5988_v2 }
  0x8e   : > { %4083 = vmatmul.mubr.msk.bf16.gmra.mxu0 %vm441_vm2, %v808_v54  ;;  %v813_v54 = vpack.c.bf16 %v4953_v48, %v4949_v42 }
  0x8f   : > { %4121 = vmatmul.mubr.msk.bf16.gmra.mxu1 %vm441_vm2, %v990_v55  ;;  %4086 = vmatprep.mubr.msk.bf16.mxu0 %vm4528_vm1, %v5988_v2  ;;  %v995_v55 = vpack.c.bf16 %v985_v53, %v984_v52  ;;  %v1154_v52 = vld [vmem:[#allocation2 + $0x20] sm:$0xff]  ;;  %v1155_v53 = vld [vmem:[#allocation2 + $0x28] sm:$0xff] }
  0x90   : > { %4124 = vmatprep.mubr.msk.bf16.mxu1 %vm4528_vm1, %v5988_v2 }
  0x96   : > { %4087 = vmatmul.mubr.msk.bf16.gmra.mxu0 %vm441_vm2, %v809_v0  ;;  %v986_v0 = vld [vmem:[#allocation2 + $0x8f] sm:$0xff] }
  0x97   : > { %4125 = vmatmul.mubr.msk.bf16.gmra.mxu1 %vm441_vm2, %v991_v6  ;;  %4090 = vmatprep.mubr.msk.bf16.mxu0 %vm4528_vm1, %v5988_v2  ;;  %v987_v6 = vld [vmem:[#allocation2 + $0x97] sm:$0xff] }
  0x98   : > { %4128 = vmatprep.mubr.msk.bf16.mxu1 %vm4528_vm1, %v5988_v2  ;;  %v996_v22 = vpack.c.bf16 %v987_v6, %v986_v0  ;;  %v1171_v0 = vpack.c.bf16 %v1155_v53, %v1154_v52  ;;  %v1160_v52 = vld [vmem:[#allocation2 + $0x50] sm:$0xff]  ;;  %v1161_v53 = vld [vmem:[#allocation2 + $0x58] sm:$0xff] }
  0x9e   : > { %4091 = vmatmul.mubr.msk.bf16.gmra.mxu0 %vm441_vm2, %v810_v23  ;;  %v1152_v23 = vld [vmem:[#allocation2 + $0x10] sm:$0xff] }
  0x9f   : > { %4129 = vmatmul.mubr.msk.bf16.gmra.mxu1 %vm441_vm2, %v992_v24  ;;  %4094 = vmatprep.mubr.msk.bf16.mxu0 %vm4528_vm1, %v5988_v2  ;;  %v1153_v24 = vld [vmem:[#allocation2 + $0x18] sm:$0xff] }
  0xa0   : > { %4132 = vmatprep.mubr.msk.bf16.mxu1 %vm4528_vm1, %v5988_v2 }
  0xa6   : > { %4095 = vmatmul.mubr.msk.bf16.gmra.mxu0 %vm441_vm2, %v811_v29  ;;  %v3746_v29 = vld [vmem:[%s5981_s1 + $0xc] sm:$0x3] }
  0xa7   : > { %4133 = vmatmul.mubr.msk.bf16.gmra.mxu1 %vm441_vm2, %v993_v30  ;;  %4098 = vmatprep.mubr.msk.bf16.mxu0 %vm4528_vm1, %v5988_v2  ;;  %v1170_v30 = vpack.c.bf16 %v1153_v24, %v1152_v23  ;;  %v1338_v23 = vld [vmem:[#allocation2 + $0x31] sm:$0xff]  ;;  %v1339_v24 = vld [vmem:[#allocation2 + $0x39] sm:$0xff] }
  0xa8   : > { %4136 = vmatprep.mubr.msk.bf16.mxu1 %vm4528_vm1, %v5988_v2  ;;  %v1354_v28 = vpack.c.bf16 %v1339_v24, %v1338_v23  ;;  %v1344_v23 = vld [vmem:[#allocation2 + $0x61] sm:$0xff]  ;;  %v1345_v24 = vld [vmem:[#allocation2 + $0x69] sm:$0xff] }
  0xae   : > { %4099 = vmatmul.mubr.msk.bf16.gmra.mxu0 %vm441_vm2, %v812_v37  ;;  %v1573_v37 = vsel %vm544_vm0, %v3746_v29, 0  ;;  %v1158_v29 = vld [vmem:[#allocation2 + $0x40] sm:$0xff] }
  0xaf   : > { %4137 = vmatmul.mubr.msk.bf16.gmra.mxu1 %vm441_vm2, %v994_v41  ;;  %4102 = vmatprep.mubr.msk.bf16.mxu0 %vm4528_vm1, %v5988_v2  ;;  %v1755_v41 = vsel %vm544_vm0, %v3756_v34, 0  ;;  %v1341_v34 = vld [vmem:[#allocation2 + $0x49] sm:$0xff] }
  0xb0   : > { %4140 = vmatprep.mubr.msk.bf16.mxu1 %vm4528_vm1, %v5988_v2 }
  0xb6   : > { %4103 = vmatmul.mubr.msk.bf16.gmra.mxu0 %vm441_vm2, %v813_v54  ;;  %v1336_v54 = vld [vmem:[#allocation2 + $0x21] sm:$0xff] }
  0xb7   : > { %4141 = vmatmul.mubr.msk.bf16.gmra.mxu1 %vm441_vm2, %v995_v55  ;;  %4106 = vmatprep.mubr.msk.bf16.mxu0 %vm4528_vm1, %v5988_v2  ;;  %v1337_v55 = vld [vmem:[#allocation2 + $0x29] sm:$0xff] }
  0xb8   : > { %4144 = vmatprep.mubr.msk.bf16.mxu1 %vm4528_vm1, %v5988_v2  ;;  %v1353_v6 = vpack.c.bf16 %v1337_v55, %v1336_v54  ;;  %v1342_v54 = vld [vmem:[#allocation2 + $0x51] sm:$0xff]  ;;  %v1343_v55 = vld [vmem:[#allocation2 + $0x59] sm:$0xff] }
  0xbe   : > { %4107 = vmatmul.mubr.msk.bf16.gmra.mxu0 %vm441_vm2, %v814_v17  ;;  %v1156_v17 = vld [vmem:[#allocation2 + $0x30] sm:$0xff] }
  0xbf   : > { %4145 = vmatmul.mubr.msk.bf16.gmra.mxu1 %vm441_vm2, %v996_v22  ;;  %4150 = vmatprep.mubr.msk.bf16.mxu0 %vm4528_vm1, %v5988_v2  ;;  %v1157_v22 = vld [vmem:[#allocation2 + $0x38] sm:$0xff] }
  0xc0   : > { %4188 = vmatprep.mubr.msk.bf16.mxu1 %vm4528_vm1, %v5988_v2  ;;  %v1172_v27 = vpack.c.bf16 %v1157_v22, %v1156_v17  ;;  %v1162_v17 = vld [vmem:[#allocation2 + $0x60] sm:$0xff]  ;;  %v1163_v22 = vld [vmem:[#allocation2 + $0x68] sm:$0xff] }
  0xc6   : > { %4151 = vmatmul.mubr.msk.bf16.vlgmr.msra.gmra.mxu0 %vm441_vm2, %v1170_v30  ;;  %v1159_v30 = vld [vmem:[#allocation2 + $0x48] sm:$0xff] }
  0xc7   : > { %4189 = vmatmul.mubr.msk.bf16.vlgmr.msra.gmra.mxu1 %vm441_vm2, %v1352_v33  ;;  %4225 = vmatpush3.bf16.msra.mxu0 %v1573_v37  ;;  %v1340_v33 = vld [vmem:[#allocation2 + $0x41] sm:$0xff]  ;;  %v1173_v37 = vpack.c.bf16 %v1159_v30, %v1158_v29  ;;  %v1164_v29 = vld [vmem:[#allocation2 + $0x70] sm:$0xff]  ;;  %v1165_v30 = vld [vmem:[#allocation2 + $0x78] sm:$0xff] }
  0xc8   : > { %4154 = vmatprep.mubr.msk.bf16.mxu0 %vm4528_vm1, %v5988_v2  ;;  %4192 = vmatprep.mubr.msk.bf16.mxu1 %vm4528_vm1, %v5988_v2 }
  0xc9   : > { %4263 = vmatpush3.bf16.msra.mxu1 %v1755_v41  ;;  %4300 = vmatprep.subr.bf16.mxu0 %v5988_v2  ;;  %v1355_v41 = vpack.c.bf16 %v1341_v34, %v1340_v33  ;;  %v1346_v33 = vld [vmem:[#allocation2 + $0x71] sm:$0xff]  ;;  %v1347_v34 = vld [vmem:[#allocation2 + $0x79] sm:$0xff] }
  0xce   : > { %4155 = vmatmul.mubr.msk.bf16.gmra.mxu0 %vm441_vm2, %v1171_v0  ;;  %v1174_v0 = vpack.c.bf16 %v1161_v53, %v1160_v52 }
  0xcf   : > { %4193 = vmatmul.mubr.msk.bf16.gmra.mxu1 %vm441_vm2, %v1353_v6  ;;  %4158 = vmatprep.mubr.msk.bf16.mxu0 %vm4528_vm1, %v5988_v2  ;;  %v1356_v6 = vpack.c.bf16 %v1343_v55, %v1342_v54  ;;  %v1166_v54 = vld [vmem:[#allocation2 + $0x80] sm:$0xff]  ;;  %v1167_v55 = vld [vmem:[#allocation2 + $0x88] sm:$0xff] }
  0xd0   : > { %4196 = vmatprep.mubr.msk.bf16.mxu1 %vm4528_vm1, %v5988_v2 }
  0xd6   : > { %4159 = vmatmul.mubr.msk.bf16.gmra.mxu0 %vm441_vm2, %v1172_v27  ;;  %v1175_v27 = vpack.c.bf16 %v1163_v22, %v1162_v17 }
  0xd7   : > { %4197 = vmatmul.mubr.msk.bf16.gmra.mxu1 %vm441_vm2, %v1354_v28  ;;  %4162 = vmatprep.mubr.msk.bf16.mxu0 %vm4528_vm1, %v5988_v2  ;;  %v1357_v28 = vpack.c.bf16 %v1345_v24, %v1344_v23 }
  0xd8   : > { %4200 = vmatprep.mubr.msk.bf16.mxu1 %vm4528_vm1, %v5988_v2 }
  0xde   : > { %4163 = vmatmul.mubr.msk.bf16.gmra.mxu0 %vm441_vm2, %v1173_v37  ;;  %v1176_v37 = vpack.c.bf16 %v1165_v30, %v1164_v29 }
  0xdf   : > { %4201 = vmatmul.mubr.msk.bf16.gmra.mxu1 %vm441_vm2, %v1355_v41  ;;  %4166 = vmatprep.mubr.msk.bf16.mxu0 %vm4528_vm1, %v5988_v2  ;;  %v1358_v41 = vpack.c.bf16 %v1347_v34, %v1346_v33 }
  0xe0   : > { %4204 = vmatprep.mubr.msk.bf16.mxu1 %vm4528_vm1, %v5988_v2 }
  0xe6   : > { %4167 = vmatmul.mubr.msk.bf16.gmra.mxu0 %vm441_vm2, %v1174_v0  ;;  %v1348_v0 = vld [vmem:[#allocation2 + $0x81] sm:$0xff] }
  0xe7   : > { %4205 = vmatmul.mubr.msk.bf16.gmra.mxu1 %vm441_vm2, %v1356_v6  ;;  %4170 = vmatprep.mubr.msk.bf16.mxu0 %vm4528_vm1, %v5988_v2  ;;  %v1349_v6 = vld [vmem:[#allocation2 + $0x89] sm:$0xff] }
  0xe8   : > { %4208 = vmatprep.mubr.msk.bf16.mxu1 %vm4528_vm1, %v5988_v2 }
  0xee   : > { %4171 = vmatmul.mubr.msk.bf16.gmra.mxu0 %vm441_vm2, %v1175_v27  ;;  %v1177_v27 = vpack.c.bf16 %v1167_v55, %v1166_v54  ;;  %v1169_v54 = vld [vmem:[#allocation2 + $0x98] sm:$0xff] }
  0xef   : > { %4209 = vmatmul.mubr.msk.bf16.gmra.mxu1 %vm441_vm2, %v1357_v28  ;;  %4174 = vmatprep.mubr.msk.bf16.mxu0 %vm4528_vm1, %v5988_v2  ;;  %v1359_v28 = vpack.c.bf16 %v1349_v6, %v1348_v0  ;;  %v1350_v55 = vld [vmem:[#allocation2 + $0x91] sm:$0xff]  ;;  %v1351_v0 = vld [vmem:[#allocation2 + $0x99] sm:$0xff] }
  0xf0   : > { %4212 = vmatprep.mubr.msk.bf16.mxu1 %vm4528_vm1, %v5988_v2 }
  0xf6   : > { %v582_v52 = vpop.f32.mrf.mxu0  ;;  %4175 = vmatmul.mubr.msk.bf16.gmra.mxu0 %vm441_vm2, %v1176_v37 }
  0xf7   : > { %v717_v53 = vpop.f32.mrf.mxu1  ;;  %4213 = vmatmul.mubr.msk.bf16.gmra.mxu1 %vm441_vm2, %v1358_v41  ;;  %4178 = vmatprep.mubr.msk.bf16.mxu0 %vm4528_vm1, %v5988_v2  ;;  %v1168_v41 = vld [vmem:[#allocation2 + $0x90] sm:$0xff]  ;;  %v2144_v52 = vld [vmem:[%s5985_s5 + $0x8] sm:$0xff] }
  0xf8   : > { %4216 = vmatprep.mubr.msk.bf16.mxu1 %vm4528_vm1, %v5988_v2  ;;  %v4000_v17 = vpop.f32.mrf.mxu0  ;;  %vm2162_vm3 = vcmp.gt.f32.partialorder %v2144_v52, 0.5 }
  0xf9   : > { %v4038_v22 = vpop.f32.mrf.mxu1 }
  0xfa   : > { %v585_v23 = vpop.f32.mrf.mxu0  ;;  %v4529_v22 = vmov 0  }
  0xfb   : > { %v720_v24 = vpop.f32.mrf.mxu1  ;;  %4497 = vset.pattern.permute.xlu0 %v4529_v22  ;;  %4498 = vset.pattern.permute.xlu1 %v4529_v22 }
  0xfc   : > { %v5028_v29 = vadd.f32 %v720_v24, %v585_v23  ;;  %v4001_v30 = vpop.f32.mrf.mxu0  ;;  %v2180_v23 = vsel %vm2162_vm3, 1, %v4529_v22 }
  0xfd   : > { %v4039_v33 = vpop.f32.mrf.mxu1  ;;  %2201 = vperm.xlu0 %4497, %v2180_v23   ;;  %v1360_v30 = vpack.c.bf16 %v1351_v0, %v1350_v55  ;;  %v5991_v55 = vmov 0.0  }
  0xfe   : > { %v590_v34 = vpop.f32.mrf.mxu0  ;;  %4179 = vmatmul.mubr.msk.bf16.gmra.mxu0 %vm441_vm2, %v1177_v27  ;;  %v2145_v33 = vld [vmem:[%s5985_s5 + $0x10] sm:$0xff] }
  0xff   : > { %v725_v37 = vpop.f32.mrf.mxu1  ;;  %4217 = vmatmul.mubr.msk.bf16.gmra.mxu1 %vm441_vm2, %v1359_v28  ;;  %4182 = vmatprep.mubr.msk.bf16.mxu0 %vm4528_vm1, %v5988_v2  ;;  %v1178_v28 = vpack.c.bf16 %v1169_v54, %v1168_v41  ;;  %vm2163_vm4 = vcmp.gt.f32.partialorder %v2145_v33, 0.5  ;;  %v2148_v41 = vld [vmem:[%s5985_s5 + $0x28] sm:$0xff]  ;;  %v1716_v33 = vpack.c.bf16 %v4717_v9, %v4690_v45 }
 0x100   : > { %v5035_v53 = vadd.f32 %v725_v37, %v590_v34  ;;  %4220 = vmatprep.mubr.msk.bf16.mxu1 %vm4528_vm1, %v5988_v2  ;;  %v4004_v6 = vpop.f32.mrf.mxu0  ;;  %vm2166_vm5 = vcmp.gt.f32.partialorder %v2148_v41, 0.5  ;;  %v2152_v45 = vld [vmem:[%s5985_s5 + $0x48] sm:$0xff] }
 0x101   : > { %v4042_v17 = vpop.f32.mrf.mxu1  ;;  %v2181_v6 = vsel %vm2163_vm4, 1, %v4529_v22  ;;  %vm2170_vm7 = vcmp.gt.f32.partialorder %v2152_v45, 0.5 }
 0x102   : > { %v593_v24 = vpop.f32.mrf.mxu0  ;;  %2204 = vperm.xlu0 %4497, %v2181_v6  }
 0x103   : > { %v728_v27 = vpop.f32.mrf.mxu1 }
 0x104   : > { %v5047_v34 = vadd.f32 %v728_v27, %v593_v24  ;;  %v4005_v37 = vpop.f32.mrf.mxu0  ;;  %v2184_v24 = vsel %vm2166_vm5, 1, %v4529_v22  ;;  %v3766_v27 = vld [vmem:[%s5981_s1 + $0x10] sm:$0x3] }
 0x105   : > { %v4043_v52 = vpop.f32.mrf.mxu1  ;;  %v2150_v37 = vld [vmem:[%s5985_s5 + $0x38] sm:$0xff]  ;;  %v1937_v41 = vsel %vm544_vm0, %v3766_v27, 0  ;;  %v2188_v27 = vsel %vm2170_vm7, 1, %v4529_v22  ;;  %vm2363_vm7 = vcmask 1043456  }
 0x106   : > { %v598_v17 = vpop.f32.mrf.mxu0  ;;  %4183 = vmatmul.mubr.msk.bf16.gmra.mxu0 %vm441_vm2, %v1178_v28  ;;  %2213 = vperm.xlu0 %4497, %v2184_v24   ;;  %vm2168_vm6 = vcmp.gt.f32.partialorder %v2150_v37, 0.5  ;;  %v2154_v37 = vld [vmem:[%s5985_s5 + $0x58] sm:$0xff] }
 0x107   : > { %v733_v2 = vpop.f32.mrf.mxu1  ;;  %4221 = vmatmul.mubr.msk.bf16.gmra.mxu1 %vm441_vm2, %v1360_v30  ;;  %4226 = vmatprep.mubr.msk.bf16.mxu0 %vm4528_vm1, %v5991_v55  ;;  %vm2172_vm8 = vcmp.gt.f32.partialorder %v2154_v37, 0.5 }
 0x108   : > { %v5055_v54 = vadd.f32 %v733_v2, %v598_v17  ;;  %4264 = vmatprep.mubr.msk.bf16.mxu1 %vm4528_vm1, %v5991_v55  ;;  %v4008_v0 = vpop.f32.mrf.mxu0  ;;  %v1534_v2 = vpack.c.bf16 %v4721_v11, %v4698_v50 }
 0x109   : > { %v4046_v23 = vpop.f32.mrf.mxu1  ;;  %v2186_v0 = vsel %vm2168_vm6, 1, %v4529_v22 }
 0x10a   : > { %v601_v28 = vpop.f32.mrf.mxu0  ;;  %2219 = vperm.xlu0 %4497, %v2186_v0   ;;  %v2190_v0 = vsel %vm2172_vm8, 1, %v4529_v22 }
 0x10b   : > { %v736_v30 = vpop.f32.mrf.mxu1 }
 0x10c   : > { %v5072_v52 = vadd.f32 %v736_v30, %v601_v28  ;;  %v4009_v6 = vpop.f32.mrf.mxu0 }
 0x10d   : > { %v4047_v17 = vpop.f32.mrf.mxu1 }
 0x10e   : > { %v606_v23 = vpop.f32.mrf.mxu0  ;;  %4227 = vmatmul.mubr.msk.bf16.vlgmr.msra.gmra.mxu0 %vm441_vm2, %v1534_v2  ;;  %2225 = vperm.xlu0 %4497, %v2188_v27   ;;  %v1535_v2 = vpack.c.bf16 %v4757_v39, %v4727_v15  ;;  %v1536_v27 = vpack.c.bf16 %v4777_v46, %v4759_v40  ;;  %v2143_v40 = vld [vmem:[%s5985_s5] sm:$0xff] }
 0x10f   : > { %v741_v24 = vpop.f32.mrf.mxu1  ;;  %4265 = vmatmul.mubr.msk.bf16.vlgmr.msra.gmra.mxu1 %vm441_vm2, %v1716_v33  ;;  %4301 = vmatpush3.bf16.msra.mxu0 %v1937_v41  ;;  %v1717_v33 = vpack.c.bf16 %v4749_v35, %v4719_v10  ;;  %v2156_v10 = vld [vmem:[%s5985_s5 + $0x68] sm:$0xff]  ;;  %vm2161_vm12 = vcmp.gt.f32.partialorder %v2143_v40, 0.5  ;;  %v1538_v40 = vpack.c.bf16 %v4818_v4, %v4801_v61 }
 0x110   : > { %v5081_v50 = vadd.f32 %v741_v24, %v606_v23  ;;  %4230 = vmatprep.mubr.msk.bf16.mxu0 %vm4528_vm1, %v5991_v55  ;;  %v4012_v9 = vpop.f32.mrf.mxu0  ;;  %4268 = vmatprep.mubr.msk.bf16.mxu1 %vm4528_vm1, %v5991_v55  ;;  %vm2174_vm9 = vcmp.gt.f32.partialorder %v2156_v10, 0.5  ;;  %v2179_v10 = vsel %vm2161_vm12, 1, %v4529_v22 }
 0x111   : > { %v4050_v11 = vpop.f32.mrf.mxu1  ;;  %v2192_v45 = vsel %vm2174_vm9, 1, %v4529_v22 }
 0x112   : > { %v609_v28 = vpop.f32.mrf.mxu0  ;;  %2231 = vperm.xlu0 %4497, %v2190_v0  }
 0x113   : > { %v744_v30 = vpop.f32.mrf.mxu1 }
 0x114   : > { %v5095_v6 = vadd.f32 %v744_v30, %v609_v28  ;;  %v4013_v17 = vpop.f32.mrf.mxu0  ;;  %v1718_v28 = vpack.c.bf16 %v4769_v43, %v4755_v38  ;;  %v2158_v30 = vld [vmem:[%s5985_s5 + $0x78] sm:$0xff] }
 0x115   : > { %v4051_v41 = vpop.f32.mrf.mxu1  ;;  %vm2176_vm10 = vcmp.gt.f32.partialorder %v2158_v30, 0.5  ;;  %v2146_v38 = vld [vmem:[%s5985_s5 + $0x18] sm:$0xff] }
 0x116   : > { %v614_v23 = vpop.f32.mrf.mxu0  ;;  %4231 = vmatmul.mubr.msk.bf16.gmra.mxu0 %vm441_vm2, %v1535_v2  ;;  %2237 = vperm.xlu0 %4497, %v2192_v45   ;;  %v2194_v17 = vsel %vm2176_vm10, 1, %v4529_v22  ;;  %vm2164_vm11 = vcmp.gt.f32.partialorder %v2146_v38, 0.5  ;;  %v1537_v45 = vpack.c.bf16 %v4799_v60, %v4779_v47 }
 0x117   : > { %v749_v24 = vpop.f32.mrf.mxu1  ;;  %4269 = vmatmul.mubr.msk.bf16.gmra.mxu1 %vm441_vm2, %v1717_v33  ;;  %4234 = vmatprep.mubr.msk.bf16.mxu0 %vm4528_vm1, %v5991_v55 }
 0x118   : > { %v5103_v15 = vadd.f32 %v749_v24, %v614_v23  ;;  %4272 = vmatprep.mubr.msk.bf16.mxu1 %vm4528_vm1, %v5991_v55  ;;  %v4016_v35 = vpop.f32.mrf.mxu0  ;;  %v2182_v24 = vsel %vm2164_vm11, 1, %v4529_v22 }
 0x119   : > { %v4054_v39 = vpop.f32.mrf.mxu1  ;;  %2207 = vperm.xlu1 %4498, %v2182_v24  }
 0x11a   : > { %v617_v9 = vpop.f32.mrf.mxu0  ;;  %2243 = vperm.xlu0 %4497, %v2194_v17  }
 0x11b   : > { %v752_v11 = vpop.f32.mrf.mxu1 }
 0x11c   : > { %v5117_v2 = vadd.f32 %v752_v11, %v617_v9  ;;  %v4017_v33 = vpop.f32.mrf.mxu0  ;;  %v1719_v9 = vpack.c.bf16 %v4791_v58, %v4771_v44  ;;  %v2147_v11 = vld [vmem:[%s5985_s5 + $0x20] sm:$0xff]  ;;  %v2149_v44 = vld [vmem:[%s5985_s5 + $0x30] sm:$0xff] }
 0x11d   : > { %v4055_v37 = vpop.f32.mrf.mxu1  ;;  %vm2165_vm13 = vcmp.gt.f32.partialorder %v2147_v11, 0.5  ;;  %vm2167_vm14 = vcmp.gt.f32.partialorder %v2149_v44, 0.5 }
 0x11e   : > { %v622_v41 = vpop.f32.mrf.mxu0  ;;  %4235 = vmatmul.mubr.msk.bf16.gmra.mxu0 %vm441_vm2, %v1536_v27  ;;  %2198 = vperm.xlu0 %4497, %v2179_v10   ;;  %v2183_v33 = vsel %vm2165_vm13, 1, %v4529_v22 }
 0x11f   : > { %v757_v0 = vpop.f32.mrf.mxu1  ;;  %4273 = vmatmul.mubr.msk.bf16.gmra.mxu1 %vm441_vm2, %v1718_v28  ;;  %4238 = vmatprep.mubr.msk.bf16.mxu0 %vm4528_vm1, %v5991_v55 }
 0x120   : > { %v5128_v43 = vadd.f32 %v757_v0, %v622_v41  ;;  %4276 = vmatprep.mubr.msk.bf16.mxu1 %vm4528_vm1, %v5991_v55  ;;  %v4020_v46 = vpop.f32.mrf.mxu0  ;;  %2210 = vperm.xlu1 %4498, %v2183_v33   ;;  %v2185_v41 = vsel %vm2167_vm14, 1, %v4529_v22  ;;  %v1539_v33 = vpack.c.bf16 %v4836_v13, %v4820_v5 }
 0x121   : > { %v4058_v23 = vpop.f32.mrf.mxu1  ;;  %v1720_v46 = vpack.c.bf16 %v4810_v1, %v4797_v59  ;;  %v2153_v59 = vld [vmem:[%s5985_s5 + $0x50] sm:$0xff] }
 0x122   : > { %v625_v35 = vpop.f32.mrf.mxu0  ;;  %v2151_v23 = vld [vmem:[%s5985_s5 + $0x40] sm:$0xff]  ;;  %vm2171_vm0 = vcmp.gt.f32.partialorder %v2153_v59, 0.5 }
 0x123   : > { %v760_v39 = vpop.f32.mrf.mxu1  ;;  %vm2169_vm15 = vcmp.gt.f32.partialorder %v2151_v23, 0.5  ;;  %v2189_v11 = vsel %vm2171_vm0, 1, %v4529_v22 }
 0x124   : > { %v5143_v27 = vadd.f32 %v760_v39, %v625_v35  ;;  %v4021_v28 = vpop.f32.mrf.mxu0  ;;  %2216 = vperm.xlu1 %4498, %v2185_v41   ;;  %v2187_v39 = vsel %vm2169_vm15, 1, %v4529_v22 }
 0x125   : > { %v4059_v30 = vpop.f32.mrf.mxu1 }
 0x126   : > { %v630_v37 = vpop.f32.mrf.mxu0  ;;  %4239 = vmatmul.mubr.msk.bf16.gmra.mxu0 %vm441_vm2, %v1537_v45 }
 0x127   : > { %v765_v17 = vpop.f32.mrf.mxu1  ;;  %4277 = vmatmul.mubr.msk.bf16.gmra.mxu1 %vm441_vm2, %v1719_v9  ;;  %4242 = vmatprep.mubr.msk.bf16.mxu0 %vm4528_vm1, %v5991_v55 }
 0x128   : > { %v5151_v47 = vadd.f32 %v765_v17, %v630_v37  ;;  %4280 = vmatprep.mubr.msk.bf16.mxu1 %vm4528_vm1, %v5991_v55  ;;  %v4024_v58 = vpop.f32.mrf.mxu0  ;;  %2222 = vperm.xlu1 %4498, %v2187_v39   ;;  %v1721_v37 = vpack.c.bf16 %v4828_v8, %v4816_v3  ;;  %v2155_v17 = vld [vmem:[%s5985_s5 + $0x60] sm:$0xff]  ;;  %v2157_v3 = vld [vmem:[%s5985_s5 + $0x70] sm:$0xff] }
 0x129   : > { %v4062_v60 = vpop.f32.mrf.mxu1  ;;  %vm2173_vm3 = vcmp.gt.f32.partialorder %v2155_v17, 0.5  ;;  %vm2175_vm4 = vcmp.gt.f32.partialorder %v2157_v3, 0.5  ;;  %v2159_v39 = vld [vmem:[%s5985_s5 + $0x80] sm:$0xff] }
 0x12a   : > { %v633_v0 = vpop.f32.mrf.mxu0  ;;  %v2191_v41 = vsel %vm2173_vm3, 1, %v4529_v22  ;;  %vm2177_vm5 = vcmp.gt.f32.partialorder %v2159_v39, 0.5 }
 0x12b   : > { %v768_v38 = vpop.f32.mrf.mxu1  ;;  %v2195_v59 = vsel %vm2177_vm5, 1, %v4529_v22 }
 0x12c   : > { %v5165_v24 = vadd.f32 %v768_v38, %v633_v0  ;;  %v4025_v10 = vpop.f32.mrf.mxu0  ;;  %2228 = vperm.xlu1 %4498, %v2189_v11  }
 0x12d   : > { %v4063_v35 = vpop.f32.mrf.mxu1  ;;  %v1540_v10 = vpack.c.bf16 %v4854_v20, %v4838_v14  ;;  %v1531_v14 = vld [vmem:[#allocation2 + $0x93] sm:$0xff] }
 0x12e   : > { %v638_v45 = vpop.f32.mrf.mxu0  ;;  %4243 = vmatmul.mubr.msk.bf16.gmra.mxu0 %vm441_vm2, %v1538_v40  ;;  %v2193_v40 = vsel %vm2175_vm4, 1, %v4529_v22  ;;  %v1722_v35 = vpack.c.bf16 %v4846_v18, %v4834_v12  ;;  %v2160_v12 = vld [vmem:[%s5985_s5 + $0x88] sm:$0xff]  ;;  %v1713_v18 = vld [vmem:[#allocation2 + $0x94] sm:$0xff] }
 0x12f   : > { %v773_v9 = vpop.f32.mrf.mxu1  ;;  %4281 = vmatmul.mubr.msk.bf16.gmra.mxu1 %vm441_vm2, %v1720_v46  ;;  %4246 = vmatprep.mubr.msk.bf16.mxu0 %vm4528_vm1, %v5991_v55  ;;  %vm2178_vm6 = vcmp.gt.f32.partialorder %v2160_v12, 0.5  ;;  %v1723_v17 = vpack.c.bf16 %v1713_v18, %v4852_v19  ;;  %v1714_v19 = vld [vmem:[#allocation2 + $0x9c] sm:$0xff] }
 0x130   : > { %v5173_v61 = vadd.f32 %v773_v9, %v638_v45  ;;  %4284 = vmatprep.mubr.msk.bf16.mxu1 %vm4528_vm1, %v5991_v55  ;;  %v4028_v1 = vpop.f32.mrf.mxu0  ;;  %2234 = vperm.xlu1 %4498, %v2191_v41  }
 0x131   : > { %v4066_v4 = vpop.f32.mrf.mxu1 }
 0x132   : > { %v641_v28 = vpop.f32.mrf.mxu0 }
 0x133   : > { %v776_v30 = vpop.f32.mrf.mxu1 }
 0x134   : > { %v5187_v44 = vadd.f32 %v776_v30, %v641_v28  ;;  %v4029_v58 = vpop.f32.mrf.mxu0  ;;  %2240 = vperm.xlu1 %4498, %v2193_v40   ;;  %v2196_v28 = vsel %vm2178_vm6, 1, %v4529_v22  ;;  %v1532_v22 = vld [vmem:[#allocation2 + $0x9b] sm:$0xff] }
 0x135   : > { %v4067_v60 = vpop.f32.mrf.mxu1 }
 0x136   : > { %v646_v0 = vpop.f32.mrf.mxu0  ;;  %4247 = vmatmul.mubr.msk.bf16.gmra.mxu0 %vm441_vm2, %v1539_v33 }
 0x137   : > { %v781_v38 = vpop.f32.mrf.mxu1  ;;  %4285 = vmatmul.mubr.msk.bf16.gmra.mxu1 %vm441_vm2, %v1721_v37  ;;  %4250 = vmatprep.mubr.msk.bf16.mxu0 %vm4528_vm1, %v5991_v55  ;;  %v1541_v37 = vpack.c.bf16 %v1531_v14, %v4856_v21  ;;  %v1533_v21 = vld [vmem:[#allocation2 + $0xa3] sm:$0xff] }
 0x138   : > { %v5195_v5 = vadd.f32 %v781_v38, %v646_v0  ;;  %4288 = vmatprep.mubr.msk.bf16.mxu1 %vm4528_vm1, %v5991_v55  ;;  %v4032_v8 = vpop.f32.mrf.mxu0  ;;  %2246 = vperm.xlu1 %4498, %v2195_v59  }
 0x139   : > { %v4070_v13 = vpop.f32.mrf.mxu1 }
 0x13a   : > { %v649_v46 = vpop.f32.mrf.mxu0 }
 0x13b   : > { %v784_v23 = vpop.f32.mrf.mxu1 }
 0x13c   : > { %v4033_v45 = vpop.f32.mrf.mxu0  ;;  %2249 = vperm.xlu1 %4498, %v2196_v28   ;;  %v1898_v28 = vpack.c.bf16 %v4889_v49, %v4880_v36 }
 0x13d   : > { %v4071_v9 = vpop.f32.mrf.mxu1 }
 0x13e   : > { %v881_v1 = vpop.f32.mrf.mxu0  ;;  %4251 = vmatmul.mubr.msk.bf16.gmra.mxu0 %vm441_vm2, %v1540_v10 }
 0x13f   : > { %v1063_v4 = vpop.f32.mrf.mxu1  ;;  %4289 = vmatmul.mubr.msk.bf16.gmra.mxu1 %vm441_vm2, %v1722_v35  ;;  %4254 = vmatprep.mubr.msk.bf16.mxu0 %vm4528_vm1, %v5991_v55  ;;  %v1542_v35 = vpack.c.bf16 %v1533_v21, %v1532_v22 }
 0x140   : > { %4292 = vmatprep.mubr.msk.bf16.mxu1 %vm4528_vm1, %v5991_v55  ;;  %v4076_v20 = vpop.f32.mrf.mxu0 }
 0x141   : > { %v4114_v11 = vpop.f32.mrf.mxu1 }
 0x142   : > { %v884_v30 = vpop.f32.mrf.mxu0 }
 0x143   : > { %v1066_v33 = vpop.f32.mrf.mxu1  ;;  %v953_v58 = vadd.f32 %v884_v30, %v5028_v29  ;;  %v1715_v29 = vld [vmem:[#allocation2 + $0xa4] sm:$0xff] }
 0x144   : > { %v4077_v60 = vpop.f32.mrf.mxu0  ;;  %v1724_v39 = vpack.c.bf16 %v1715_v29, %v1714_v19 }
 0x145   : > { %v4115_v41 = vpop.f32.mrf.mxu1  ;;  %v5223_v0 = vadd.f32 %v1066_v33, %v953_v58 }
 0x146   : > { %v889_v38 = vpop.f32.mrf.mxu0  ;;  %4255 = vmatmul.mubr.msk.bf16.gmra.mxu0 %vm441_vm2, %v1541_v37 }
 0x147   : > { %v1071_v3 = vpop.f32.mrf.mxu1  ;;  %4293 = vmatmul.mubr.msk.bf16.gmra.mxu1 %vm441_vm2, %v1723_v17  ;;  %v954_v8 = vadd.f32 %v889_v38, %v5035_v53  ;;  %4258 = vmatprep.mubr.msk.bf16.mxu0 %vm4528_vm1, %v5991_v55 }
 0x148   : > { %4296 = vmatprep.mubr.msk.bf16.mxu1 %vm4528_vm1, %v5991_v55  ;;  %v4080_v13 = vpop.f32.mrf.mxu0 }
 0x149   : > { %v4118_v40 = vpop.f32.mrf.mxu1  ;;  %v5232_v46 = vadd.f32 %v1071_v3, %v954_v8 }
 0x14a   : > { %v892_v23 = vpop.f32.mrf.mxu0 }
 0x14b   : > { %v1074_v10 = vpop.f32.mrf.mxu1  ;;  %v955_v45 = vadd.f32 %v892_v23, %v5047_v34 }
 0x14c   : > { %v4081_v53 = vpop.f32.mrf.mxu0 }
 0x14d   : > { %v4119_v9 = vpop.f32.mrf.mxu1  ;;  %v5235_v59 = vadd.f32 %v1074_v10, %v955_v45 }
 0x14e   : > { %v897_v1 = vpop.f32.mrf.mxu0  ;;  %4259 = vmatmul.mubr.msk.bf16.gmra.mxu0 %vm441_vm2, %v1542_v35 }
 0x14f   : > { %v1079_v4 = vpop.f32.mrf.mxu1  ;;  %4297 = vmatmul.mubr.msk.bf16.gmra.mxu1 %vm441_vm2, %v1724_v39  ;;  %v956_v12 = vadd.f32 %v897_v1, %v5055_v54  ;;  %4302 = vmatprep.mubr.msk.bf16.mxu0 %vm4528_vm1, %v5991_v55 }
 0x150   : > { %v4084_v14 = vpop.f32.mrf.mxu0 }
 0x151   : > { %v4122_v18 = vpop.f32.mrf.mxu1  ;;  %v5242_v20 = vadd.f32 %v1079_v4, %v956_v12 }
 0x152   : > { %v900_v34 = vpop.f32.mrf.mxu0 }
 0x153   : > { %v1082_v11 = vpop.f32.mrf.mxu1  ;;  %v957_v30 = vadd.f32 %v900_v34, %v5072_v52  ;;  %v1899_v52 = vpack.c.bf16 %v4901_v56, %v4893_v51 }
 0x154   : > { %v4085_v33 = vpop.f32.mrf.mxu0 }
 0x155   : > { %v4123_v37 = vpop.f32.mrf.mxu1  ;;  %v5247_v17 = vadd.f32 %v1082_v11, %v957_v30 }
 0x156   : > { %v905_v58 = vpop.f32.mrf.mxu0  ;;  %4303 = vmatmul.mubr.msk.bf16.vlgmr.msra.gmra.mxu0 %vm441_vm2, %v1898_v28 }
 0x157   : > { %v1087_v54 = vpop.f32.mrf.mxu1  ;;  %v958_v60 = vadd.f32 %v905_v58, %v5081_v50  ;;  %4306 = vmatprep.mubr.msk.bf16.mxu0 %vm4528_vm1, %v5991_v55 }
 0x158   : > { %v4088_v41 = vpop.f32.mrf.mxu0 }
 0x159   : > { %v4126_v38 = vpop.f32.mrf.mxu1  ;;  %v5253_v3 = vadd.f32 %v1087_v54, %v958_v60 }
 0x15a   : > { %v908_v36 = vpop.f32.mrf.mxu0 }
 0x15b   : > { %v1090_v49 = vpop.f32.mrf.mxu1  ;;  %v959_v22 = vadd.f32 %v908_v36, %v5095_v6  ;;  %v1900_v6 = vpack.c.bf16 %v4913_v7, %v4905_v57 }
 0x15c   : > { %v4089_v8 = vpop.f32.mrf.mxu0 }
 0x15d   : > { %v4127_v21 = vpop.f32.mrf.mxu1  ;;  %v5258_v19 = vadd.f32 %v1090_v49, %v959_v22 }
 0x15e   : > { %v913_v29 = vpop.f32.mrf.mxu0  ;;  %4307 = vmatmul.mubr.msk.bf16.gmra.mxu0 %vm441_vm2, %v1899_v52 }
 0x15f   : > { %v1095_v50 = vpop.f32.mrf.mxu1  ;;  %v960_v13 = vadd.f32 %v913_v29, %v5103_v15  ;;  %4310 = vmatprep.mubr.msk.bf16.mxu0 %vm4528_vm1, %v5991_v55 }
 0x160   : > { %v4092_v40 = vpop.f32.mrf.mxu0 }
 0x161   : > { %v4130_v23 = vpop.f32.mrf.mxu1  ;;  %v5264_v10 = vadd.f32 %v1095_v50, %v960_v13 }
 0x162   : > { %v916_v51 = vpop.f32.mrf.mxu0 }
 0x163   : > { %v1098_v56 = vpop.f32.mrf.mxu1  ;;  %v961_v35 = vadd.f32 %v916_v51, %v5117_v2  ;;  %v1901_v2 = vpack.c.bf16 %v4925_v25, %v4917_v16 }
 0x164   : > { %v4093_v39 = vpop.f32.mrf.mxu0 }
 0x165   : > { %v4131_v45 = vpop.f32.mrf.mxu1  ;;  %v5269_v53 = vadd.f32 %v1098_v56, %v961_v35 }
 0x166   : > { %v921_v9 = vpop.f32.mrf.mxu0  ;;  %4311 = vmatmul.mubr.msk.bf16.gmra.mxu0 %vm441_vm2, %v1900_v6 }
 0x167   : > { %v1103_v15 = vpop.f32.mrf.mxu1  ;;  %v962_v1 = vadd.f32 %v921_v9, %v5128_v43  ;;  %4314 = vmatprep.mubr.msk.bf16.mxu0 %vm4528_vm1, %v5991_v55  ;;  %v3777_v9 = vld [vmem:[%s5983_s3 + $0x4] sm:$0xf] }
 0x168   : > { %v4096_v4 = vpop.f32.mrf.mxu0  ;;  %4464 = vmatprep.subr.msk.bf16.mxu1 %vm2363_vm7, %v3777_v9 }
 0x169   : > { %v4134_v12 = vpop.f32.mrf.mxu1  ;;  %v5275_v14 = vadd.f32 %v1103_v15, %v962_v1  ;;  %v2365_v1 = vsel %vm2363_vm7, %v3777_v9, 0  ;;  %v1895_v4 = vld [vmem:[#allocation2 + $0x95] sm:$0xff] }
 0x16a   : > { %v924_v57 = vpop.f32.mrf.mxu0  ;;  %4339 = vmatpush3.bf16.msra.mxu1 %v2365_v1 }
 0x16b   : > { %v1106_v7 = vpop.f32.mrf.mxu1  ;;  %v963_v18 = vadd.f32 %v924_v57, %v5143_v27  ;;  %v1902_v27 = vpack.c.bf16 %v4937_v31, %v4929_v26 }
 0x16c   : > { %v4097_v34 = vpop.f32.mrf.mxu0 }
 0x16d   : > { %v4135_v11 = vpop.f32.mrf.mxu1  ;;  %v5280_v28 = vadd.f32 %v1106_v7, %v963_v18  ;;  %v1905_v7 = vpack.c.bf16 %v1895_v4, %v4965_v63 }
 0x16e   : > { %v929_v30 = vpop.f32.mrf.mxu0  ;;  %4315 = vmatmul.mubr.msk.bf16.gmra.mxu0 %vm441_vm2, %v1901_v2 }
 0x16f   : > { %v1111_v43 = vpop.f32.mrf.mxu1  ;;  %v964_v33 = vadd.f32 %v929_v30, %v5151_v47  ;;  %4318 = vmatprep.mubr.msk.bf16.mxu0 %vm4528_vm1, %v5991_v55 }
 0x170   : > { %v4100_v37 = vpop.f32.mrf.mxu0 }
 0x171   : > { %v4138_v58 = vpop.f32.mrf.mxu1  ;;  %v5286_v54 = vadd.f32 %v1111_v43, %v964_v33  ;;  %v1896_v37 = vld [vmem:[#allocation2 + $0x9d] sm:$0xff] }
 0x172   : > { %v932_v16 = vpop.f32.mrf.mxu0  ;;  %v1897_v58 = vld [vmem:[#allocation2 + $0xa5] sm:$0xff] }
 0x173   : > { %v1114_v25 = vpop.f32.mrf.mxu1  ;;  %v965_v60 = vadd.f32 %v932_v16, %v5165_v24  ;;  %v1903_v24 = vpack.c.bf16 %v4949_v42, %v4941_v32 }
 0x174   : > { %v4101_v41 = vpop.f32.mrf.mxu0 }
 0x175   : > { %v4139_v38 = vpop.f32.mrf.mxu1  ;;  %v5291_v36 = vadd.f32 %v1114_v25, %v965_v60  ;;  %v1906_v60 = vpack.c.bf16 %v1897_v58, %v1896_v37 }
 0x176   : > { %v937_v49 = vpop.f32.mrf.mxu0  ;;  %4319 = vmatmul.mubr.msk.bf16.gmra.mxu0 %vm441_vm2, %v1902_v27 }
 0x177   : > { %v1119_v47 = vpop.f32.mrf.mxu1  ;;  %v966_v52 = vadd.f32 %v937_v49, %v5173_v61  ;;  %4322 = vmatprep.mubr.msk.bf16.mxu0 %vm4528_vm1, %v5991_v55 }
 0x178   : > { %v4104_v22 = vpop.f32.mrf.mxu0 }
 0x179   : > { %v4142_v8 = vpop.f32.mrf.mxu1  ;;  %v5297_v21 = vadd.f32 %v1119_v47, %v966_v52 }
 0x17a   : > { %v940_v26 = vpop.f32.mrf.mxu0 }
 0x17b   : > { %v1122_v31 = vpop.f32.mrf.mxu1  ;;  %v967_v29 = vadd.f32 %v940_v26, %v5187_v44  ;;  %v1904_v44 = vpack.c.bf16 %v4961_v62, %v4953_v48 }
 0x17c   : > { %v4105_v50 = vpop.f32.mrf.mxu0 }
 0x17d   : > { %v4143_v13 = vpop.f32.mrf.mxu1  ;;  %v5302_v40 = vadd.f32 %v1122_v31, %v967_v29 }
 0x17e   : > { %v945_v23 = vpop.f32.mrf.mxu0  ;;  %4323 = vmatmul.mubr.msk.bf16.gmra.mxu0 %vm441_vm2, %v1903_v24 }
 0x17f   : > { %v1127_v61 = vpop.f32.mrf.mxu1  ;;  %v968_v51 = vadd.f32 %v945_v23, %v5195_v5  ;;  %4326 = vmatprep.mubr.msk.bf16.mxu0 %vm4528_vm1, %v5991_v55 }
 0x180   : > { %v4108_v56 = vpop.f32.mrf.mxu0 }
 0x181   : > { %v4146_v6 = vpop.f32.mrf.mxu1  ;;  %v5308_v35 = vadd.f32 %v1127_v61, %v968_v51 }
 0x182   : > { %v948_v32 = vpop.f32.mrf.mxu0 }
 0x183   : > { %v1130_v42 = vpop.f32.mrf.mxu1 }
 0x184   : > { %v4109_v39 = vpop.f32.mrf.mxu0 }
 0x185   : > { %v4147_v45 = vpop.f32.mrf.mxu1 }
 0x186   : > { %v1245_v5 = vpop.f32.mrf.mxu0  ;;  %4327 = vmatmul.mubr.msk.bf16.gmra.mxu0 %vm441_vm2, %v1904_v44 }
 0x187   : > { %v1427_v15 = vpop.f32.mrf.mxu1  ;;  %4330 = vmatprep.mubr.msk.bf16.mxu0 %vm4528_vm1, %v5991_v55 }
 0x188   : > { %v4152_v48 = vpop.f32.mrf.mxu0 }
 0x189   : > { %v4190_v62 = vpop.f32.mrf.mxu1 }
 0x18a   : > { %v1248_v12 = vpop.f32.mrf.mxu0 }
 0x18b   : > { %v1430_v57 = vpop.f32.mrf.mxu1  ;;  %v1317_v2 = vadd.f32 %v1248_v12, %v5223_v0 }
 0x18c   : > { %v4153_v18 = vpop.f32.mrf.mxu0 }
 0x18d   : > { %v4191_v34 = vpop.f32.mrf.mxu1  ;;  %v5322_v11 = vadd.f32 %v1430_v57, %v1317_v2 }
 0x18e   : > { %v1253_v30 = vpop.f32.mrf.mxu0  ;;  %4331 = vmatmul.mubr.msk.bf16.gmra.mxu0 %vm441_vm2, %v1905_v7 }
 0x18f   : > { %v1435_v43 = vpop.f32.mrf.mxu1  ;;  %v1318_v33 = vadd.f32 %v1253_v30, %v5232_v46  ;;  %4334 = vmatprep.mubr.msk.bf16.mxu0 %vm4528_vm1, %v5991_v55  ;;  %vm2287_vm1 = vcmask 64512  }
 0x190   : > { %v4156_v16 = vpop.f32.mrf.mxu0 }
 0x191   : > { %v4194_v25 = vpop.f32.mrf.mxu1  ;;  %v5328_v63 = vadd.f32 %v1435_v43, %v1318_v33 }
 0x192   : > { %v1256_v0 = vpop.f32.mrf.mxu0 }
 0x193   : > { %v1438_v27 = vpop.f32.mrf.mxu1  ;;  %v1319_v41 = vadd.f32 %v1256_v0, %v5235_v59 }
 0x194   : > { %v4157_v38 = vpop.f32.mrf.mxu0 }
 0x195   : > { %v4195_v49 = vpop.f32.mrf.mxu1  ;;  %v5331_v47 = vadd.f32 %v1438_v27, %v1319_v41 }
 0x196   : > { %v1261_v52 = vpop.f32.mrf.mxu0  ;;  %4335 = vmatmul.mubr.msk.bf16.gmra.mxu0 %vm441_vm2, %v1906_v60 }
 0x197   : > { %v1443_v46 = vpop.f32.mrf.mxu1  ;;  %v1320_v55 = vadd.f32 %v1261_v52, %v5242_v20 }
 0x198   : > { %v4160_v22 = vpop.f32.mrf.mxu0 }
 0x199   : > { %v4198_v8 = vpop.f32.mrf.mxu1  ;;  %v5335_v26 = vadd.f32 %v1443_v46, %v1320_v55 }
 0x19a   : > { %v1264_v31 = vpop.f32.mrf.mxu0 }
 0x19b   : > { %v1446_v24 = vpop.f32.mrf.mxu1  ;;  %v1321_v29 = vadd.f32 %v1264_v31, %v5247_v17 }
 0x19c   : > { %v4161_v50 = vpop.f32.mrf.mxu0 }
 0x19d   : > { %v4199_v59 = vpop.f32.mrf.mxu1  ;;  %v5338_v13 = vadd.f32 %v1446_v24, %v1321_v29 }
 0x19e   : > { %v1269_v23 = vpop.f32.mrf.mxu0 }
 0x19f   : > { %v1451_v61 = vpop.f32.mrf.mxu1  ;;  %v1322_v51 = vadd.f32 %v1269_v23, %v5253_v3 }
 0x1a0   : > { %v4164_v56 = vpop.f32.mrf.mxu0 }
 0x1a1   : > { %v4202_v6 = vpop.f32.mrf.mxu1  ;;  %v5341_v32 = vadd.f32 %v1451_v61, %v1322_v51 }
 0x1a2   : > { %v1272_v20 = vpop.f32.mrf.mxu0 }
 0x1a3   : > { %v1454_v42 = vpop.f32.mrf.mxu1  ;;  %v1323_v44 = vadd.f32 %v1272_v20, %v5258_v19 }
 0x1a4   : > { %v4165_v39 = vpop.f32.mrf.mxu0 }
 0x1a5   : > { %v4203_v45 = vpop.f32.mrf.mxu1  ;;  %v5344_v9 = vadd.f32 %v1454_v42, %v1323_v44 }
 0x1a6   : > { %v1277_v17 = vpop.f32.mrf.mxu0 }
 0x1a7   : > { %v1459_v5 = vpop.f32.mrf.mxu1  ;;  %v1324_v15 = vadd.f32 %v1277_v17, %v5264_v10 }
 0x1a8   : > { %v4168_v1 = vpop.f32.mrf.mxu0 }
 0x1a9   : > { %v4206_v4 = vpop.f32.mrf.mxu1  ;;  %v5347_v48 = vadd.f32 %v1459_v5, %v1324_v15 }
 0x1aa   : > { %v1280_v3 = vpop.f32.mrf.mxu0 }
 0x1ab   : > { %v1462_v62 = vpop.f32.mrf.mxu1  ;;  %v1325_v12 = vadd.f32 %v1280_v3, %v5269_v53 }
 0x1ac   : > { %v4169_v57 = vpop.f32.mrf.mxu0 }
 0x1ad   : > { %v4207_v7 = vpop.f32.mrf.mxu1  ;;  %v5350_v2 = vadd.f32 %v1462_v62, %v1325_v12 }
 0x1ae   : > { %v1285_v19 = vpop.f32.mrf.mxu0 }
 0x1af   : > { %v1467_v18 = vpop.f32.mrf.mxu1  ;;  %v1326_v34 = vadd.f32 %v1285_v19, %v5275_v14 }
 0x1b0   : > { %v4172_v30 = vpop.f32.mrf.mxu0 }
 0x1b1   : > { %v4210_v43 = vpop.f32.mrf.mxu1  ;;  %v5353_v33 = vadd.f32 %v1467_v18, %v1326_v34 }
 0x1b2   : > { %v1288_v10 = vpop.f32.mrf.mxu0 }
 0x1b3   : > { %v1470_v37 = vpop.f32.mrf.mxu1  ;;  %v1327_v58 = vadd.f32 %v1288_v10, %v5280_v28  ;;  %v3797_v28 = vld [vmem:[%s5983_s3 + $0xc] sm:$0xf] }
 0x1b4   : > { %v4173_v16 = vpop.f32.mrf.mxu0  ;;  %4467 = vmatprep.subr.msk.bf16.mxu0 %vm2363_vm7, %v3797_v28 }
 0x1b5   : > { %v4211_v25 = vpop.f32.mrf.mxu1  ;;  %v5356_v0 = vadd.f32 %v1470_v37, %v1327_v58 }
 0x1b6   : > { %v1293_v53 = vpop.f32.mrf.mxu0 }
 0x1b7   : > { %v1475_v27 = vpop.f32.mrf.mxu1  ;;  %v1328_v60 = vadd.f32 %v1293_v53, %v5286_v54  ;;  %v2723_v54 = vsel %vm2363_vm7, %v3797_v28, 0 }
 0x1b8   : > { %v4176_v41 = vpop.f32.mrf.mxu0  ;;  %4381 = vmatpush3.bf16.msra.mxu0 %v2723_v54 }
 0x1b9   : > { %v4214_v38 = vpop.f32.mrf.mxu1  ;;  %v5359_v49 = vadd.f32 %v1475_v27, %v1328_v60 }
 0x1ba   : > { %v1296_v14 = vpop.f32.mrf.mxu0 }
 0x1bb   : > { %v1478_v52 = vpop.f32.mrf.mxu1  ;;  %v1329_v46 = vadd.f32 %v1296_v14, %v5291_v36 }
 0x1bc   : > { %v4177_v55 = vpop.f32.mrf.mxu0 }
 0x1bd   : > { %v4215_v22 = vpop.f32.mrf.mxu1  ;;  %v5365_v8 = vadd.f32 %v1478_v52, %v1329_v46 }
 0x1be   : > { %v1301_v31 = vpop.f32.mrf.mxu0 }
 0x1bf   : > { %v1483_v24 = vpop.f32.mrf.mxu1  ;;  %v1330_v29 = vadd.f32 %v1301_v31, %v5297_v21 }
 0x1c0   : > { %v4180_v50 = vpop.f32.mrf.mxu0 }
 0x1c1   : > { %v4218_v59 = vpop.f32.mrf.mxu1  ;;  %v5370_v36 = vadd.f32 %v1483_v24, %v1330_v29 }
 0x1c2   : > { %v1304_v23 = vpop.f32.mrf.mxu0 }
 0x1c3   : > { %v1486_v61 = vpop.f32.mrf.mxu1  ;;  %v1331_v51 = vadd.f32 %v1304_v23, %v5302_v40 }
 0x1c4   : > { %v4181_v56 = vpop.f32.mrf.mxu0 }
 0x1c5   : > { %v4219_v6 = vpop.f32.mrf.mxu1  ;;  %v5373_v20 = vadd.f32 %v1486_v61, %v1331_v51  ;;  %v5408_v61 = vpop.permute.xlu0 %2201 }
 0x1c6   : > { %v1309_v42 = vpop.f32.mrf.mxu0  ;;  %vm2252_vm2 = vcmp.eq.s32.totalorder %v5408_v61, 1 }
 0x1c7   : > { %v1491_v44 = vpop.f32.mrf.mxu1  ;;  %v1332_v39 = vadd.f32 %v1309_v42, %v5308_v35  ;;  %v5382_v35 = vld [vmem:[%s5983_s3] sm:$0xf] }
 0x1c8   : > { %v4184_v45 = vpop.f32.mrf.mxu0  ;;  %4465 = vmatprep.subr.msk.bf16.mxu1 %vm2363_vm7, %v5382_v35 }
 0x1c9   : > { %v4222_v17 = vpop.f32.mrf.mxu1  ;;  %v5376_v5 = vadd.f32 %v1491_v44, %v1332_v39 }
 0x1ca   : > { %v1312_v21 = vpop.f32.mrf.mxu0 }
 0x1cb   : > { %v1494_v15 = vpop.f32.mrf.mxu1  ;;  %v5415_v21 = vpop.permute.xlu0 %2204 }
 0x1cc   : > { %v4185_v1 = vpop.f32.mrf.mxu0  ;;  %vm2253_vm9 = vcmp.eq.s32.totalorder %v5415_v21, 1 }
 0x1cd   : > { %v4223_v4 = vpop.f32.mrf.mxu1 }
 0x1ce   : > { %v1609_v3 = vpop.f32.mrf.mxu0 }
 0x1cf   : > { %v1791_v62 = vpop.f32.mrf.mxu1 }
 0x1d0   : > { %v4228_v12 = vpop.f32.mrf.mxu0 }
 0x1d1   : > { %v4266_v40 = vpop.f32.mrf.mxu1 }
 0x1d2   : > { %v1612_v57 = vpop.f32.mrf.mxu0 }
 0x1d3   : > { %v1794_v7 = vpop.f32.mrf.mxu1  ;;  %v1681_v19 = vadd.f32 %v1612_v57, %v5322_v11 }
 0x1d4   : > { %v4229_v18 = vpop.f32.mrf.mxu0 }
 0x1d5   : > { %v4267_v34 = vpop.f32.mrf.mxu1  ;;  %v5386_v30 = vadd.f32 %v1794_v7, %v1681_v19  ;;  %v5421_v7 = vpop.permute.xlu0 %2213 }
 0x1d6   : > { %v1617_v43 = vpop.f32.mrf.mxu0  ;;  %vm2256_vm15 = vcmp.eq.s32.totalorder %v5421_v7, 1 }
 0x1d7   : > { %v1799_v10 = vpop.f32.mrf.mxu1  ;;  %v1682_v37 = vadd.f32 %v1617_v43, %v5328_v63 }
 0x1d8   : > { %v4232_v58 = vpop.f32.mrf.mxu0 }
 0x1d9   : > { %v4270_v16 = vpop.f32.mrf.mxu1  ;;  %v5389_v25 = vadd.f32 %v1799_v10, %v1682_v37 }
 0x1da   : > { %v1620_v11 = vpop.f32.mrf.mxu0  ;;  %v5428_v16 = vpop.permute.xlu0 %2219 }
 0x1db   : > { %v1802_v53 = vpop.f32.mrf.mxu1  ;;  %v1683_v27 = vadd.f32 %v1620_v11, %v5331_v47  ;;  %v5403_v47 = vld [vmem:[%s5983_s3 + $0x14] sm:$0xf]  ;;  %vm2258_vm5 = vcmp.eq.s32.totalorder %v5428_v16, 1  ;;  %v5511_v16 = vld [vmem:[%s5983_s3 + $0x8] sm:$0xf] }
 0x1dc   : > { %v4233_v60 = vpop.f32.mrf.mxu0  ;;  %4469 = vmatprep.subr.msk.bf16.mxu0 %vm2363_vm7, %v5403_v47 }
 0x1dd   : > { %v4271_v41 = vpop.f32.mrf.mxu1  ;;  %v5392_v38 = vadd.f32 %v1802_v53, %v1683_v27 }
 0x1de   : > { %v1625_v14 = vpop.f32.mrf.mxu0 }
 0x1df   : > { %v1807_v52 = vpop.f32.mrf.mxu1  ;;  %v1684_v46 = vadd.f32 %v1625_v14, %v5335_v26 }
 0x1e0   : > { %v4236_v55 = vpop.f32.mrf.mxu0 }
 0x1e1   : > { %v4274_v22 = vpop.f32.mrf.mxu1  ;;  %v5395_v28 = vadd.f32 %v1807_v52, %v1684_v46  ;;  %v5434_v55 = vpop.permute.xlu0 %2225 }
 0x1e2   : > { %v1628_v63 = vpop.f32.mrf.mxu0 }
 0x1e3   : > { %v1810_v54 = vpop.f32.mrf.mxu1  ;;  %v1685_v31 = vadd.f32 %v1628_v63, %v5338_v13 }
 0x1e4   : > { %v4237_v24 = vpop.f32.mrf.mxu0 }
 0x1e5   : > { %v4275_v29 = vpop.f32.mrf.mxu1  ;;  %v5398_v50 = vadd.f32 %v1810_v54, %v1685_v31 }
 0x1e6   : > { %v1633_v59 = vpop.f32.mrf.mxu0 }
 0x1e7   : > { %v1815_v23 = vpop.f32.mrf.mxu1  ;;  %v1686_v26 = vadd.f32 %v1633_v59, %v5341_v32 }
 0x1e8   : > { %v4240_v51 = vpop.f32.mrf.mxu0 }
 0x1e9   : > { %v4278_v13 = vpop.f32.mrf.mxu1  ;;  %v5410_v56 = vadd.f32 %v1815_v23, %v1686_v26  ;;  %v5441_v23 = vpop.permute.xlu0 %2231 }
 0x1ea   : > { %v1636_v6 = vpop.f32.mrf.mxu0 }
 0x1eb   : > { %v1818_v42 = vpop.f32.mrf.mxu1  ;;  %v1687_v44 = vadd.f32 %v1636_v6, %v5344_v9 }
 0x1ec   : > { %v4241_v39 = vpop.f32.mrf.mxu0 }
 0x1ed   : > { %v4279_v45 = vpop.f32.mrf.mxu1  ;;  %v5413_v17 = vadd.f32 %v1818_v42, %v1687_v44 }
 0x1ee   : > { %v1641_v15 = vpop.f32.mrf.mxu0 }
 0x1ef   : > { %v1823_v1 = vpop.f32.mrf.mxu1  ;;  %v1688_v32 = vadd.f32 %v1641_v15, %v5347_v48  ;;  %v5447_v15 = vpop.permute.xlu0 %2237 }
 0x1f0   : > { %v4244_v4 = vpop.f32.mrf.mxu0 }
 0x1f1   : > { %v4282_v3 = vpop.f32.mrf.mxu1  ;;  %v5418_v62 = vadd.f32 %v1823_v1, %v1688_v32 }
 0x1f2   : > { %v1644_v12 = vpop.f32.mrf.mxu0 }
 0x1f3   : > { %v1826_v40 = vpop.f32.mrf.mxu1  ;;  %v1689_v57 = vadd.f32 %v1644_v12, %v5350_v2 }
 0x1f4   : > { %v4245_v9 = vpop.f32.mrf.mxu0 }
 0x1f5   : > { %v4283_v19 = vpop.f32.mrf.mxu1  ;;  %v5423_v18 = vadd.f32 %v1826_v40, %v1689_v57  ;;  %v5454_v9 = vpop.permute.xlu0 %2243 }
 0x1f6   : > { %v1649_v34 = vpop.f32.mrf.mxu0 }
 0x1f7   : > { %v1831_v43 = vpop.f32.mrf.mxu1  ;;  %v1690_v10 = vadd.f32 %v1649_v34, %v5353_v33 }
 0x1f8   : > { %v4248_v37 = vpop.f32.mrf.mxu0 }
 0x1f9   : > { %v4286_v48 = vpop.f32.mrf.mxu1  ;;  %v5426_v58 = vadd.f32 %v1831_v43, %v1690_v10  ;;  %v5459_v37 = vld [vmem:[%s5982_s2] ss:$0 sm:$0xff] }
 0x1fa   : > { %v1652_v11 = vpop.f32.mrf.mxu0 }
 0x1fb   : > { %v1834_v53 = vpop.f32.mrf.mxu1  ;;  %v1691_v2 = vadd.f32 %v1652_v11, %v5356_v0  ;;  %v5461_v11 = vstv %s2087_s12 }
 0x1fc   : > { %v4249_v27 = vpop.f32.mrf.mxu0 }
 0x1fd   : > { %v4287_v60 = vpop.f32.mrf.mxu1  ;;  %v5431_v41 = vadd.f32 %v1834_v53, %v1691_v2 }
 0x1fe   : > { %v1657_v14 = vpop.f32.mrf.mxu0 }
 0x1ff   : > { %v1839_v52 = vpop.f32.mrf.mxu1  ;;  %v1692_v46 = vadd.f32 %v1657_v14, %v5359_v49 }
 0x200   : > { %v4252_v33 = vpop.f32.mrf.mxu0 }
 0x201   : > { %v4290_v22 = vpop.f32.mrf.mxu1  ;;  %v5436_v63 = vadd.f32 %v1839_v52, %v1692_v46 }
 0x202   : > { %v1660_v54 = vpop.f32.mrf.mxu0 }
 0x203   : > { %v1842_v31 = vpop.f32.mrf.mxu1  ;;  %v1693_v24 = vadd.f32 %v1660_v54, %v5365_v8 }
 0x204   : > { %v4253_v29 = vpop.f32.mrf.mxu0 }
 0x205   : > { %v4291_v0 = vpop.f32.mrf.mxu1  ;;  %v5439_v59 = vadd.f32 %v1842_v31, %v1693_v24  ;;  %v2208_v29 = vpop.permute.xlu1 %2207 }
 0x206   : > { %v1665_v26 = vpop.f32.mrf.mxu0  ;;  %vm2254_vm11 = vcmp.eq.s32.totalorder %v2208_v29, 1 }
 0x207   : > { %v1847_v51 = vpop.f32.mrf.mxu1  ;;  %v1694_v49 = vadd.f32 %v1665_v26, %v5370_v36 }
 0x208   : > { %v4256_v13 = vpop.f32.mrf.mxu0 }
 0x209   : > { %v4294_v6 = vpop.f32.mrf.mxu1  ;;  %v5444_v42 = vadd.f32 %v1847_v51, %v1694_v49 }
 0x20a   : > { %v1668_v44 = vpop.f32.mrf.mxu0 }
 0x20b   : > { %v1850_v39 = vpop.f32.mrf.mxu1  ;;  %v1695_v45 = vadd.f32 %v1668_v44, %v5373_v20 }
 0x20c   : > { %v4257_v8 = vpop.f32.mrf.mxu0 }
 0x20d   : > { %v4295_v1 = vpop.f32.mrf.mxu1  ;;  %v5449_v32 = vadd.f32 %v1850_v39, %v1695_v45 }
 0x20e   : > { %v1673_v4 = vpop.f32.mrf.mxu0 }
 0x20f   : > { %v1855_v3 = vpop.f32.mrf.mxu1  ;;  %v1696_v12 = vadd.f32 %v1673_v4, %v5376_v5  ;;  %v2199_v5 = vpop.permute.xlu0 %2198 }
 0x210   : > { %v4260_v40 = vpop.f32.mrf.mxu0 }
 0x211   : > { %v4298_v36 = vpop.f32.mrf.mxu1  ;;  %v5452_v57 = vadd.f32 %v1855_v3, %v1696_v12 }
 0x212   : > { %v1676_v19 = vpop.f32.mrf.mxu0 }
 0x213   : > { %v1858_v34 = vpop.f32.mrf.mxu1 }
 0x214   : > { %v4261_v20 = vpop.f32.mrf.mxu0 }
 0x215   : > { %v4299_v43 = vpop.f32.mrf.mxu1 }
 0x216   : > { %v1973_v10 = vpop.f32.mrf.mxu0 }
 0x218   : > { %v4304_v48 = vpop.f32.mrf.mxu0 }
 0x21a   : > { %v1976_v53 = vpop.f32.mrf.mxu0 }
 0x21b   : > { %v2045_v2 = vadd.f32 %v1976_v53, %v5386_v30 }
 0x21c   : > { %v4305_v27 = vpop.f32.mrf.mxu0 }
 0x21d   : > { %v2070_v60 = vadd.f32 %v5459_v37, %v2045_v2 }
 0x21e   : > { %v1981_v14 = vpop.f32.mrf.mxu0 }
 0x21f   : > { %vm2089_vm8 = vcmp.ge.f32.partialorder %v2070_v60, 0.0  ;;  %v2108_v52 = vmul.f32 %v5461_v11, %v2070_v60  ;;  %v2046_v46 = vadd.f32 %v1981_v14, %v5389_v25 }
 0x220   : > { %v4308_v33 = vpop.f32.mrf.mxu0 }
 0x221   : > { %v2126_v22 = vsel %vm2089_vm8, %v2070_v60, %v2108_v52  ;;  %v2071_v54 = vadd.f32 %v5459_v37, %v2046_v46 }
 0x222   : > { %v2270_v31 = vsel %vm2252_vm2, %v2126_v22, 0.0  ;;  %v1984_v24 = vpop.f32.mrf.mxu0 }
 0x223   : > { %2289 = vst.msk [vmem:[#allocation3 + $0x18] sm:$0xff] %vm2287_vm1, %v2270_v31  ;;  %vm2090_vm10 = vcmp.ge.f32.partialorder %v2071_v54, 0.0  ;;  %v2109_v30 = vmul.f32 %v5461_v11, %v2071_v54  ;;  %v2047_v61 = vadd.f32 %v1984_v24, %v5392_v38  ;;  %v2211_v38 = vpop.permute.xlu1 %2210 }
 0x224   : > { %v4309_v0 = vpop.f32.mrf.mxu0  ;;  %vm2255_vm13 = vcmp.eq.s32.totalorder %v2211_v38, 1 }
 0x225   : > { %v2127_v26 = vsel %vm2090_vm10, %v2071_v54, %v2109_v30  ;;  %v2072_v25 = vadd.f32 %v5459_v37, %v2047_v61  ;;  %vm2260_vm10 = vcmp.eq.s32.totalorder %v5434_v55, 1 }
 0x226   : > { %v2271_v51 = vsel %vm2253_vm9, %v2127_v26, 0.0  ;;  %v1989_v49 = vpop.f32.mrf.mxu0 }
 0x227   : > { %2290 = vst.msk [vmem:[#allocation3 + $0x20] sm:$0xff] %vm2287_vm1, %v2271_v51  ;;  %vm2091_vm12 = vcmp.ge.f32.partialorder %v2072_v25, 0.0  ;;  %v2110_v21 = vmul.f32 %v5461_v11, %v2072_v25  ;;  %v2048_v13 = vadd.f32 %v1989_v49, %v5395_v28  ;;  %v2217_v43 = vpop.permute.xlu1 %2216 }
 0x228   : > { %v4312_v6 = vpop.f32.mrf.mxu0  ;;  %vm2257_vm3 = vcmp.eq.s32.totalorder %v2217_v43, 1 }
 0x229   : > { %v2128_v44 = vsel %vm2091_vm12, %v2072_v25, %v2110_v21  ;;  %v2073_v39 = vadd.f32 %v5459_v37, %v2048_v13  ;;  %v2467_v21 = vsel %vm2363_vm7, %v5382_v35, 0 }
 0x22a   : > { %v2272_v45 = vsel %vm2254_vm11, %v2128_v44, 0.0  ;;  %v1992_v8 = vpop.f32.mrf.mxu0 }
 0x22b   : > { %2291 = vst.msk [vmem:[#allocation3 + $0x28] sm:$0xff] %vm2287_vm1, %v2272_v45  ;;  %vm2092_vm14 = vcmp.ge.f32.partialorder %v2073_v39, 0.0  ;;  %v2111_v1 = vmul.f32 %v5461_v11, %v2073_v39  ;;  %v2049_v4 = vadd.f32 %v1992_v8, %v5398_v50  ;;  %v2223_v61 = vpop.permute.xlu1 %2222 }
 0x22c   : > { %v4313_v3 = vpop.f32.mrf.mxu0  ;;  %vm2259_vm2 = vcmp.eq.s32.totalorder %v2223_v61, 1 }
 0x22d   : > { %v2129_v12 = vsel %vm2092_vm14, %v2073_v39, %v2111_v1  ;;  %v2074_v40 = vadd.f32 %v5459_v37, %v2049_v4  ;;  %v2991_v4 = vsel %vm2363_vm7, %v5403_v47, 0  ;;  %v5534_v47 = vld [vmem:[%s5983_s3 + $0x1c] sm:$0xf]  ;;  %vm2262_vm14 = vcmp.eq.s32.totalorder %v5441_v23, 1 }
 0x22e   : > { %v2273_v28 = vsel %vm2255_vm13, %v2129_v12, 0.0  ;;  %v1997_v36 = vpop.f32.mrf.mxu0  ;;  %v2325_v53 = vld [vmem:[#allocation3 + $0x1c] sm:$0xff] }
 0x22f   : > { %2292 = vst.msk [vmem:[#allocation3 + $0x30] sm:$0xff] %vm2287_vm1, %v2273_v28  ;;  %vm2093_vm0 = vcmp.ge.f32.partialorder %v2074_v40, 0.0  ;;  %v2112_v19 = vmul.f32 %v5461_v11, %v2074_v40  ;;  %v2050_v34 = vadd.f32 %v1997_v36, %v5410_v56 }
 0x230   : > { %v4316_v20 = vpop.f32.mrf.mxu0 }
 0x231   : > { %v2130_v10 = vsel %vm2093_vm0, %v2074_v40, %v2112_v19  ;;  %v2075_v50 = vadd.f32 %v5459_v37, %v2050_v34 }
 0x232   : > { %v2274_v48 = vsel %vm2256_vm15, %v2130_v10, 0.0  ;;  %v2000_v5 = vpop.f32.mrf.mxu0  ;;  %v2326_v2 = vld [vmem:[#allocation3 + $0x24] sm:$0xff] }
 0x233   : > { %2293 = vst.msk [vmem:[#allocation3 + $0x38] sm:$0xff] %vm2287_vm1, %v2274_v48  ;;  %vm2094_vm4 = vcmp.ge.f32.partialorder %v2075_v50, 0.0  ;;  %v2113_v7 = vmul.f32 %v5461_v11, %v2075_v50  ;;  %v2051_v27 = vadd.f32 %v2000_v5, %v5413_v17  ;;  %v2337_v60 = vpack.c.bf16 %v2326_v2, %v2325_v53  ;;  %v2684_v22 = vld [vmem:[#allocation3 + $0x27] sm:$0xff] }
 0x234   : > { %v4317_v14 = vpop.f32.mrf.mxu0 }
 0x235   : > { %v2131_v56 = vsel %vm2094_vm4, %v2075_v50, %v2113_v7  ;;  %v2076_v52 = vadd.f32 %v5459_v37, %v2051_v27  ;;  %4340 = vmatprep.mubr.msk.bf16.mxu1 %vm2287_vm1, %v2337_v60  ;;  %v2229_v27 = vpop.permute.xlu1 %2228  ;;  %vm2264_vm4 = vcmp.eq.s32.totalorder %v5447_v15, 1 }
 0x236   : > { %v2275_v46 = vsel %vm2257_vm3, %v2131_v56, 0.0  ;;  %v2005_v33 = vpop.f32.mrf.mxu0  ;;  %v2685_v54 = vld [vmem:[#allocation3 + $0x2f] sm:$0xff]  ;;  %vm2261_vm12 = vcmp.eq.s32.totalorder %v2229_v27, 1 }
 0x237   : > { %2294 = vst.msk [vmem:[#allocation3 + $0x40] sm:$0xff] %vm2287_vm1, %v2275_v46  ;;  %vm2095_vm6 = vcmp.ge.f32.partialorder %v2076_v52, 0.0  ;;  %v2114_v31 = vmul.f32 %v5461_v11, %v2076_v52  ;;  %v2052_v17 = vadd.f32 %v2005_v33, %v5418_v62  ;;  %v2696_v24 = vpack.c.bf16 %v2685_v54, %v2684_v22  ;;  %v2327_v51 = vld [vmem:[#allocation3 + $0x2c] sm:$0xff] }
 0x238   : > { %v4320_v30 = vpop.f32.mrf.mxu0 }
 0x239   : > { %v2132_v29 = vsel %vm2095_vm6, %v2076_v52, %v2114_v31  ;;  %v2077_v0 = vadd.f32 %v5459_v37, %v2052_v17  ;;  %4382 = vmatprep.mubr.msk.bf16.mxu0 %vm2287_vm1, %v2696_v24 }
 0x23a   : > { %v2276_v26 = vsel %vm2258_vm5, %v2132_v29, 0.0  ;;  %v2008_v25 = vpop.f32.mrf.mxu0  ;;  %v5500_v49 = vld [vmem:[#allocation3 + $0x34] sm:$0xff] }
 0x23b   : > { %2295 = vst.msk [vmem:[#allocation3 + $0x48] sm:$0xff] %vm2287_vm1, %v2276_v26  ;;  %vm2096_vm8 = vcmp.ge.f32.partialorder %v2077_v0, 0.0  ;;  %v2115_v62 = vmul.f32 %v5461_v11, %v2077_v0  ;;  %v2053_v13 = vadd.f32 %v2008_v25, %v5423_v18  ;;  %v2338_v6 = vpack.c.bf16 %v5500_v49, %v2327_v51  ;;  %v2686_v8 = vld [vmem:[#allocation3 + $0x37] sm:$0xff] }
 0x23c   : > { %v4321_v44 = vpop.f32.mrf.mxu0  ;;  %v5525_v28 = vld [vmem:[#allocation3 + $0x33] sm:$0xff] }
 0x23d   : > { %v2133_v39 = vsel %vm2096_vm8, %v2077_v0, %v2115_v62  ;;  %v2078_v38 = vadd.f32 %v5459_v37, %v2053_v13  ;;  %4341 = vmatmul.mubr.msk.bf16.vlgmr.msra.gmra.mxu1 %vm2287_vm1, %v2338_v6  ;;  %v5527_v36 = vld [vmem:[#allocation3 + $0x35] sm:$0xff]  ;;  %vm2266_vm8 = vcmp.eq.s32.totalorder %v5454_v9, 1 }
 0x23e   : > { %v2277_v35 = vsel %vm2259_vm2, %v2133_v39, 0.0  ;;  %v2013_v45 = vpop.f32.mrf.mxu0  ;;  %v2687_v1 = vld [vmem:[#allocation3 + $0x3f] sm:$0xff]  ;;  %4353 = vmatpush3.bf16.msra.mxu1 %v2467_v21  ;;  %v2235_v39 = vpop.permute.xlu1 %2234 }
 0x23f   : > { %v5516_v18 = vld [vmem:[#allocation3 + $0x3b] sm:$0xff]  ;;  %2296 = vst.msk [vmem:[#allocation3 + $0x50] sm:$0xff] %vm2287_vm1, %v2277_v35  ;;  %vm2097_vm9 = vcmp.ge.f32.partialorder %v2078_v38, 0.0  ;;  %v2116_v3 = vmul.f32 %v5461_v11, %v2078_v38  ;;  %v2054_v12 = vadd.f32 %v2013_v45, %v5426_v58  ;;  %v2697_v40 = vpack.c.bf16 %v2687_v1, %v2686_v8  ;;  %4466 = vmatprep.subr.msk.bf16.mxu1 %vm2363_vm7, %v5511_v16 }
 0x240   : > { %v5529_v19 = vld [vmem:[#allocation3 + $0x3d] sm:$0xff]  ;;  %v4324_v34 = vpop.f32.mrf.mxu0  ;;  %v3098_v20 = vpack.c.bf16 %v5516_v18, %v5525_v28  ;;  %vm2263_vm0 = vcmp.eq.s32.totalorder %v2235_v39, 1 }
 0x241   : > { %v3366_v58 = vpack.c.bf16 %v5529_v19, %v5527_v36  ;;  %v2134_v43 = vsel %vm2097_vm9, %v2078_v38, %v2116_v3  ;;  %v2079_v10 = vadd.f32 %v5459_v37, %v2054_v12  ;;  %4383 = vmatmul.mubr.msk.bf16.vlgmr.msra.gmra.mxu0 %vm2287_vm1, %v2697_v40  ;;  %v5543_v5 = vld [vmem:[#allocation3 + $0x3c] sm:$0xff] }
 0x242   : > { %v2278_v50 = vsel %vm2260_vm10, %v2134_v43, 0.0  ;;  %v2016_v48 = vpop.f32.mrf.mxu0  ;;  %v5545_v53 = vld [vmem:[#allocation3 + $0x44] sm:$0xff]  ;;  %4409 = vmatpush3.bf16.msra.mxu0 %v2991_v4 }
 0x243   : > { %2297 = vst.msk [vmem:[#allocation3 + $0x58] sm:$0xff] %vm2287_vm1, %v2278_v50  ;;  %vm2098_vm11 = vcmp.ge.f32.partialorder %v2079_v10, 0.0  ;;  %v2117_v2 = vmul.f32 %v5461_v11, %v2079_v10  ;;  %v2055_v7 = vadd.f32 %v2016_v48, %v5431_v41  ;;  %v2339_v55 = vpack.c.bf16 %v5545_v53, %v5543_v5  ;;  %4471 = vmatprep.subr.msk.bf16.mxu0 %vm2363_vm7, %v5534_v47  ;;  %v2688_v33 = vld [vmem:[#allocation3 + $0x47] sm:$0xff] }
 0x244   : > { %v4325_v60 = vpop.f32.mrf.mxu0  ;;  %v5556_v54 = vld [vmem:[#allocation3 + $0x43] sm:$0xff] }
 0x245   : > { %v2135_v14 = vsel %vm2098_vm11, %v2079_v10, %v2117_v2  ;;  %v2080_v56 = vadd.f32 %v5459_v37, %v2055_v7  ;;  %4344 = vmatprep.mubr.msk.bf16.mxu1 %vm2287_vm1, %v2339_v55  ;;  %v5563_v30 = vld [vmem:[#allocation3 + $0x45] sm:$0xff] }
 0x246   : > { %v2279_v52 = vsel %vm2261_vm12, %v2135_v14, 0.0  ;;  %v2021_v46 = vpop.f32.mrf.mxu0  ;;  %v2689_v22 = vld [vmem:[#allocation3 + $0x4f] sm:$0xff] }
 0x247   : > { %2298 = vst.msk [vmem:[#allocation3 + $0x60] sm:$0xff] %vm2287_vm1, %v2279_v52  ;;  %vm2099_vm13 = vcmp.ge.f32.partialorder %v2080_v56, 0.0  ;;  %v2118_v41 = vmul.f32 %v5461_v11, %v2080_v56  ;;  %v2056_v31 = vadd.f32 %v2021_v46, %v5436_v63  ;;  %v2698_v17 = vpack.c.bf16 %v2689_v22, %v2688_v33  ;;  %v5561_v24 = vld [vmem:[#allocation3 + $0x4b] sm:$0xff] }
 0x248   : > { %v5565_v61 = vld [vmem:[#allocation3 + $0x4d] sm:$0xff]  ;;  %v4328_v29 = vpop.f32.mrf.mxu0  ;;  %v3099_v0 = vpack.c.bf16 %v5561_v24, %v5556_v54 }
 0x249   : > { %v3367_v26 = vpack.c.bf16 %v5565_v61, %v5563_v30  ;;  %v2136_v25 = vsel %vm2099_vm13, %v2080_v56, %v2118_v41  ;;  %v2081_v51 = vadd.f32 %v5459_v37, %v2056_v31  ;;  %4386 = vmatprep.mubr.msk.bf16.mxu0 %vm2287_vm1, %v2698_v17  ;;  %v5574_v62 = vld [vmem:[#allocation3 + $0x4c] sm:$0xff] }
 0x24a   : > { %v2280_v63 = vsel %vm2262_vm14, %v2136_v25, 0.0  ;;  %v2024_v21 = vpop.f32.mrf.mxu0  ;;  %v5576_v13 = vld [vmem:[#allocation3 + $0x54] sm:$0xff] }
 0x24b   : > { %2299 = vst.msk [vmem:[#allocation3 + $0x68] sm:$0xff] %vm2287_vm1, %v2280_v63  ;;  %vm2100_vm15 = vcmp.ge.f32.partialorder %v2081_v51, 0.0  ;;  %v2119_v6 = vmul.f32 %v5461_v11, %v2081_v51  ;;  %v2057_v44 = vadd.f32 %v2024_v21, %v5439_v59  ;;  %v2340_v23 = vpack.c.bf16 %v5576_v13, %v5574_v62  ;;  %v2690_v4 = vld [vmem:[#allocation3 + $0x57] sm:$0xff] }
 0x24c   : > { %v4329_v38 = vpop.f32.mrf.mxu0  ;;  %v5590_v43 = vld [vmem:[#allocation3 + $0x53] sm:$0xff] }
 0x24d   : > { %v2137_v35 = vsel %vm2100_vm15, %v2081_v51, %v2119_v6  ;;  %v2082_v45 = vadd.f32 %v5459_v37, %v2057_v44  ;;  %4345 = vmatmul.mubr.msk.bf16.gmra.mxu1 %vm2287_vm1, %v2340_v23  ;;  %v5592_v10 = vld [vmem:[#allocation3 + $0x55] sm:$0xff] }
 0x24e   : > { %v2281_v8 = vsel %vm2263_vm0, %v2137_v35, 0.0  ;;  %v2029_v1 = vpop.f32.mrf.mxu0  ;;  %v2691_v3 = vld [vmem:[#allocation3 + $0x5f] sm:$0xff] }
 0x24f   : > { %v5585_v12 = vld [vmem:[#allocation3 + $0x5b] sm:$0xff]  ;;  %2300 = vst.msk [vmem:[#allocation3 + $0x70] sm:$0xff] %vm2287_vm1, %v2281_v8  ;;  %vm2101_vm3 = vcmp.ge.f32.partialorder %v2082_v45, 0.0  ;;  %v2120_v59 = vmul.f32 %v5461_v11, %v2082_v45  ;;  %v2058_v40 = vadd.f32 %v2029_v1, %v5444_v42  ;;  %v2699_v34 = vpack.c.bf16 %v2691_v3, %v2690_v4  ;;  %v2241_v42 = vpop.permute.xlu1 %2240  ;;  %v2307_v4 = vld [vmem:[#allocation3 + $0x23] sm:$0xff] }
 0x250   : > { %v5594_v50 = vld [vmem:[#allocation3 + $0x5d] sm:$0xff]  ;;  %v4332_v48 = vpop.f32.mrf.mxu0  ;;  %v3100_v2 = vpack.c.bf16 %v5585_v12, %v5590_v43  ;;  %vm2265_vm6 = vcmp.eq.s32.totalorder %v2241_v42, 1 }
 0x251   : > { %v3368_v7 = vpack.c.bf16 %v5594_v50, %v5592_v10  ;;  %v2138_v55 = vsel %vm2101_vm3, %v2082_v45, %v2120_v59  ;;  %v2083_v27 = vadd.f32 %v5459_v37, %v2058_v40  ;;  %4387 = vmatmul.mubr.msk.bf16.gmra.mxu0 %vm2287_vm1, %v2699_v34  ;;  %v5603_v56 = vld [vmem:[#allocation3 + $0x5c] sm:$0xff] }
 0x252   : > { %v2282_v60 = vsel %vm2264_vm4, %v2138_v55, 0.0  ;;  %v2032_v14 = vpop.f32.mrf.mxu0  ;;  %v5605_v52 = vld [vmem:[#allocation3 + $0x64] sm:$0xff]  ;;  %v2306_v55 = vld [vmem:[#allocation3 + $0x1b] sm:$0xff] }
 0x253   : > { %2301 = vst.msk [vmem:[#allocation3 + $0x78] sm:$0xff] %vm2287_vm1, %v2282_v60  ;;  %vm2102_vm5 = vcmp.ge.f32.partialorder %v2083_v27, 0.0  ;;  %v2121_v46 = vmul.f32 %v5461_v11, %v2083_v27  ;;  %v2059_v33 = vadd.f32 %v2032_v14, %v5449_v32  ;;  %v2341_v15 = vpack.c.bf16 %v5605_v52, %v5603_v56  ;;  %v2692_v25 = vld [vmem:[#allocation3 + $0x67] sm:$0xff]  ;;  %v2247_v38 = vpop.permute.xlu1 %2246  ;;  %v2953_v60 = vld [vmem:[#allocation3 + $0x31] sm:$0xff] }
 0x254   : > { %v4333_v22 = vpop.f32.mrf.mxu0  ;;  %v5614_v63 = vld [vmem:[#allocation3 + $0x63] sm:$0xff]  ;;  %vm2267_vm10 = vcmp.eq.s32.totalorder %v2247_v38, 1 }
 0x255   : > { %v2139_v41 = vsel %vm2102_vm5, %v2083_v27, %v2121_v46  ;;  %v2084_v31 = vadd.f32 %v5459_v37, %v2059_v33  ;;  %4348 = vmatprep.mubr.msk.bf16.mxu1 %vm2287_vm1, %v2341_v15  ;;  %v5621_v23 = vld [vmem:[#allocation3 + $0x65] sm:$0xff]  ;;  %v2318_v27 = vpack.c.bf16 %v2307_v4, %v2306_v55  ;;  %v2322_v4 = vpack.c.bf16 %v5614_v63, %v5585_v12 }
 0x256   : > { %v2283_v17 = vsel %vm2265_vm6, %v2139_v41, 0.0  ;;  %v2037_v29 = vpop.f32.mrf.mxu0  ;;  %v2693_v51 = vld [vmem:[#allocation3 + $0x6f] sm:$0xff] }
 0x257   : > { %2302 = vst.msk [vmem:[#allocation3 + $0x80] sm:$0xff] %vm2287_vm1, %v2283_v17  ;;  %vm2103_vm2 = vcmp.ge.f32.partialorder %v2084_v31, 0.0  ;;  %v2122_v32 = vmul.f32 %v5461_v11, %v2084_v31  ;;  %v2060_v21 = vadd.f32 %v2037_v29, %v5452_v57  ;;  %v2700_v6 = vpack.c.bf16 %v2693_v51, %v2692_v25  ;;  %v5619_v44 = vld [vmem:[#allocation3 + $0x6b] sm:$0xff]  ;;  %v2250_v14 = vpop.permute.xlu1 %2249  ;;  %v2955_v51 = vld [vmem:[#allocation3 + $0x41] sm:$0xff] }
 0x258   : > { %v5623_v39 = vld [vmem:[#allocation3 + $0x6d] sm:$0xff]  ;;  %v4336_v35 = vpop.f32.mrf.mxu0  ;;  %v3101_v45 = vpack.c.bf16 %v5619_v44, %v5614_v63  ;;  %v2589_v29 = vsel %vm2363_vm7, %v5511_v16, 0  ;;  %v2320_v25 = vpack.c.bf16 %v5556_v54, %v5516_v18  ;;  %v3259_v16 = vsel %vm2363_vm7, %v5534_v47, 0 }
 0x259   : > { %v3369_v8 = vpack.c.bf16 %v5623_v39, %v5621_v23  ;;  %v2140_v1 = vsel %vm2103_vm2, %v2084_v31, %v2122_v32  ;;  %v2085_v57 = vadd.f32 %v5459_v37, %v2060_v21  ;;  %4390 = vmatprep.mubr.msk.bf16.mxu0 %vm2287_vm1, %v2700_v6  ;;  %v5632_v40 = vld [vmem:[#allocation3 + $0x6c] sm:$0xff]  ;;  %v3804_v32 = vld [vmem:[%s5983_s3 + $0x10] sm:$0xf] }
 0x25a   : > { %v2284_v3 = vsel %vm2266_vm8, %v2140_v1, 0.0  ;;  %v2040_v59 = vpop.f32.mrf.mxu0  ;;  %v5634_v34 = vld [vmem:[#allocation3 + $0x74] sm:$0xff]  ;;  %v2952_v22 = vld [vmem:[#allocation3 + $0x29] sm:$0xff] }
 0x25b   : > { %2303 = vst.msk [vmem:[#allocation3 + $0x88] sm:$0xff] %vm2287_vm1, %v2284_v3  ;;  %vm2104_vm9 = vcmp.ge.f32.partialorder %v2085_v57, 0.0  ;;  %v2123_v48 = vmul.f32 %v5461_v11, %v2085_v57  ;;  %v2342_v9 = vpack.c.bf16 %v5634_v34, %v5632_v40  ;;  %v2694_v33 = vld [vmem:[#allocation3 + $0x77] sm:$0xff]  ;;  %v2964_v41 = vpack.c.bf16 %v2953_v60, %v2952_v22  ;;  %v2308_v31 = vld [vmem:[#allocation3 + $0x2b] sm:$0xff]  ;;  %v2959_v3 = vld [vmem:[#allocation3 + $0x61] sm:$0xff] }
 0x25c   : > { %v4337_v37 = vpop.f32.mrf.mxu0  ;;  %v2319_v17 = vpack.c.bf16 %v5525_v28, %v2308_v31  ;;  %v2957_v21 = vld [vmem:[#allocation3 + $0x51] sm:$0xff]  ;;  %v2954_v6 = vld [vmem:[#allocation3 + $0x39] sm:$0xff]  ;;  %v2956_v35 = vld [vmem:[#allocation3 + $0x49] sm:$0xff]  ;;  %v2857_v31 = vsel %vm2363_vm7, %v3804_v32, 0 }
 0x25d   : > { %v2141_v42 = vsel %vm2104_vm9, %v2085_v57, %v2123_v48  ;;  %4349 = vmatmul.mubr.msk.bf16.gmra.mxu1 %vm2287_vm1, %v2342_v9  ;;  %v2965_v38 = vpack.c.bf16 %v2955_v51, %v2954_v6  ;;  %v2966_v1 = vpack.c.bf16 %v2957_v21, %v2956_v35  ;;  %v2321_v57 = vpack.c.bf16 %v5590_v43, %v5561_v24  ;;  %v2961_v59 = vld [vmem:[#allocation3 + $0x71] sm:$0xff]  ;;  %v2958_v48 = vld [vmem:[#allocation3 + $0x59] sm:$0xff]  ;;  %v2960_v9 = vld [vmem:[#allocation3 + $0x69] sm:$0xff] }
 0x25e   : > { %v2285_v46 = vsel %vm2267_vm10, %v2141_v42, 0.0  ;;  %4354 = vmatprep.mubr.msk.bf16.mxu1 %vm2287_vm1, %v2318_v27  ;;  %v2695_v15 = vld [vmem:[#allocation3 + $0x7f] sm:$0xff]  ;;  %v2967_v47 = vpack.c.bf16 %v2959_v3, %v2958_v48  ;;  %v2968_v55 = vpack.c.bf16 %v2961_v59, %v2960_v9  ;;  %v5666_v27 = vld [vmem:[#allocation3 + $0x73] sm:$0xff]  ;;  %v2566_v51 = vpack.c.bf16 %v5621_v23, %v5594_v50  ;;  %v2818_v6 = vld [vmem:[#allocation3 + $0x28] sm:$0xff] }
 0x25f   : > { %2304 = vst.msk [vmem:[#allocation3 + $0x90] sm:$0xff] %vm2287_vm1, %v2285_v46  ;;  %v2701_v11 = vpack.c.bf16 %v2695_v15, %v2694_v33  ;;  %v2551_v37 = vld [vmem:[#allocation3 + $0x25] sm:$0xff]  ;;  %v2323_v42 = vpack.c.bf16 %v5666_v27, %v5619_v44  ;;  %v2550_v60 = vld [vmem:[#allocation3 + $0x1d] sm:$0xff]  ;;  %v2552_v22 = vld [vmem:[#allocation3 + $0x2d] sm:$0xff] }
 0x260   : > { %v2562_v14 = vpack.c.bf16 %v2551_v37, %v2550_v60  ;;  %v2962_v33 = vld [vmem:[#allocation3 + $0x79] sm:$0xff]  ;;  %v2822_v3 = vld [vmem:[#allocation3 + $0x48] sm:$0xff]  ;;  %v3832_v48 = vld [vmem:[%s5983_s3 + $0x20] sm:$0xf] }
 0x261   : > { %4391 = vmatmul.mubr.msk.bf16.gmra.mxu0 %vm2287_vm1, %v2701_v11  ;;  %v3232_v11 = vpack.c.bf16 %v5543_v5, %v5500_v49  ;;  %v3233_v49 = vpack.c.bf16 %v5574_v62, %v5545_v53  ;;  %v3234_v5 = vpack.c.bf16 %v5603_v56, %v5576_v13  ;;  %v3235_v53 = vpack.c.bf16 %v5632_v40, %v5605_v52  ;;  %v2561_v13 = vld [vmem:[#allocation3 + $0x75] sm:$0xff]  ;;  %v2821_v52 = vld [vmem:[#allocation3 + $0x40] sm:$0xff] }
 0x262   : > { %4410 = vmatprep.mubr.msk.bf16.mxu0 %vm2287_vm1, %v2964_v41  ;;  %v2963_v46 = vld [vmem:[#allocation3 + $0x81] sm:$0xff]  ;;  %v2563_v41 = vpack.c.bf16 %v5527_v36, %v2552_v22  ;;  %v2819_v56 = vld [vmem:[#allocation3 + $0x30] sm:$0xff]  ;;  %v2567_v21 = vpack.c.bf16 %v2561_v13, %v5623_v39 }
 0x263   : > { %v2969_v15 = vpack.c.bf16 %v2963_v46, %v2962_v33  ;;  %v2823_v40 = vld [vmem:[#allocation3 + $0x50] sm:$0xff]  ;;  %v2828_v46 = vld [vmem:[#allocation3 + $0x78] sm:$0xff]  ;;  %v3096_v28 = vld [vmem:[#allocation3 + $0x83] sm:$0xff] }
 0x264   : > { %v2832_v59 = vpack.c.bf16 %v2823_v40, %v2822_v3  ;;  %v2827_v9 = vld [vmem:[#allocation3 + $0x70] sm:$0xff]  ;;  %v3363_v54 = vld [vmem:[#allocation3 + $0x7d] sm:$0xff] }
 0x265   : > { %4355 = vmatmul.mubr.msk.bf16.vlgmr.msra.gmra.mxu1 %vm2287_vm1, %v2319_v17  ;;  %v2564_v17 = vpack.c.bf16 %v5563_v30, %v5529_v19  ;;  %v3370_v24 = vpack.c.bf16 %v3363_v54, %v2561_v13  ;;  %v3364_v19 = vld [vmem:[#allocation3 + $0x85] sm:$0xff] }
 0x266   : > { %4367 = vmatpush3.bf16.msra.mxu1 %v2589_v29  ;;  %4358 = vmatprep.mubr.msk.bf16.mxu1 %vm2287_vm1, %v2320_v25  ;;  %v3818_v29 = vld [vmem:[%s5983_s3 + $0x18] sm:$0xf]  ;;  %v2565_v25 = vpack.c.bf16 %v5592_v10, %v5565_v61  ;;  %v3231_v35 = vld [vmem:[#allocation3 + $0x8c] sm:$0xff] }
 0x267   : > { %4468 = vmatprep.subr.msk.bf16.mxu1 %vm2363_vm7, %v3804_v32  ;;  %v3229_v32 = vld [vmem:[#allocation3 + $0x7c] sm:$0xff]  ;;  %v3097_v18 = vld [vmem:[#allocation3 + $0x8b] sm:$0xff] }
 0x268   : > { %v3236_v62 = vpack.c.bf16 %v3229_v32, %v5634_v34  ;;  %v2820_v34 = vld [vmem:[#allocation3 + $0x38] sm:$0xff]  ;;  %v3365_v36 = vld [vmem:[#allocation3 + $0x8d] sm:$0xff] }
 0x269   : > { %4411 = vmatmul.mubr.msk.bf16.vlgmr.msra.gmra.mxu0 %vm2287_vm1, %v2965_v38  ;;  %v2830_v38 = vpack.c.bf16 %v2819_v56, %v2818_v6 }
 0x26a   : > { %4414 = vmatprep.mubr.msk.bf16.mxu0 %vm2287_vm1, %v2966_v1  ;;  %4437 = vmatpush3.bf16.msra.mxu0 %v3259_v16  ;;  %v3230_v16 = vld [vmem:[#allocation3 + $0x84] sm:$0xff] }
 0x26b   : > { %v3237_v1 = vpack.c.bf16 %v3231_v35, %v3230_v16 }
 0x26d   : > { %4359 = vmatmul.mubr.msk.bf16.gmra.mxu1 %vm2287_vm1, %v2321_v57  ;;  %v2831_v57 = vpack.c.bf16 %v2821_v52, %v2820_v34 }
 0x26e   : > { %4362 = vmatprep.mubr.msk.bf16.mxu1 %vm2287_vm1, %v2322_v4  ;;  %v3125_v4 = vsel %vm2363_vm7, %v3818_v29, 0 }
 0x271   : > { %4415 = vmatmul.mubr.msk.bf16.gmra.mxu0 %vm2287_vm1, %v2967_v47  ;;  %v2825_v47 = vld [vmem:[#allocation3 + $0x60] sm:$0xff] }
 0x272   : > { %4418 = vmatprep.mubr.msk.bf16.mxu0 %vm2287_vm1, %v2968_v55  ;;  %v2824_v55 = vld [vmem:[#allocation3 + $0x58] sm:$0xff] }
 0x273   : > { %v2833_v37 = vpack.c.bf16 %v2825_v47, %v2824_v55 }
 0x275   : > { %4363 = vmatmul.mubr.msk.bf16.gmra.mxu1 %vm2287_vm1, %v2323_v42  ;;  %v2826_v42 = vld [vmem:[#allocation3 + $0x68] sm:$0xff] }
 0x276   : > { %4368 = vmatprep.mubr.msk.bf16.mxu1 %vm2287_vm1, %v2562_v14  ;;  %v2834_v60 = vpack.c.bf16 %v2827_v9, %v2826_v42  ;;  %v2829_v14 = vld [vmem:[#allocation3 + $0x80] sm:$0xff] }
 0x277   : > { %v2835_v33 = vpack.c.bf16 %v2829_v14, %v2828_v46 }
 0x279   : > { %4419 = vmatmul.mubr.msk.bf16.gmra.mxu0 %vm2287_vm1, %v2969_v15  ;;  %v3393_v15 = vsel %vm2363_vm7, %v3832_v48, 0 }
 0x27a   : > { %4438 = vmatprep.mubr.msk.bf16.mxu0 %vm2287_vm1, %v3232_v11  ;;  %v3095_v11 = vld [vmem:[#allocation3 + $0x7b] sm:$0xff] }
 0x27b   : > { %v3102_v22 = vpack.c.bf16 %v3095_v11, %v5666_v27 }
 0x27d   : > { %4369 = vmatmul.mubr.msk.bf16.vlgmr.msra.gmra.mxu1 %vm2287_vm1, %v2563_v41 }
 0x27e   : > { %4395 = vmatpush3.bf16.msra.mxu1 %v2857_v31  ;;  %4372 = vmatprep.mubr.msk.bf16.mxu1 %vm2287_vm1, %v2564_v17 }
 0x27f   : > { %4470 = vmatprep.subr.msk.bf16.mxu1 %vm2363_vm7, %v3818_v29 }
 0x281   : > { %4439 = vmatmul.mubr.msk.bf16.vlgmr.msra.gmra.mxu0 %vm2287_vm1, %v3233_v49 }
 0x282   : > { %4442 = vmatprep.mubr.msk.bf16.mxu0 %vm2287_vm1, %v3234_v5 }
 0x285   : > { %4373 = vmatmul.mubr.msk.bf16.gmra.mxu1 %vm2287_vm1, %v2565_v25 }
 0x286   : > { %4376 = vmatprep.mubr.msk.bf16.mxu1 %vm2287_vm1, %v2566_v51 }
 0x289   : > { %4443 = vmatmul.mubr.msk.bf16.gmra.mxu0 %vm2287_vm1, %v3235_v53 }
 0x28a   : > { %4446 = vmatprep.mubr.msk.bf16.mxu0 %vm2287_vm1, %v3236_v62 }
 0x28d   : > { %4377 = vmatmul.mubr.msk.bf16.gmra.mxu1 %vm2287_vm1, %v2567_v21 }
 0x28e   : > { %4396 = vmatprep.mubr.msk.bf16.mxu1 %vm2287_vm1, %v2830_v38 }
 0x291   : > { %4447 = vmatmul.mubr.msk.bf16.gmra.mxu0 %vm2287_vm1, %v3237_v1 }
 0x295   : > { %4397 = vmatmul.mubr.msk.bf16.vlgmr.msra.gmra.mxu1 %vm2287_vm1, %v2831_v57 }
 0x296   : > { %4423 = vmatpush3.bf16.msra.mxu1 %v3125_v4  ;;  %4400 = vmatprep.mubr.msk.bf16.mxu1 %vm2287_vm1, %v2832_v59 }
 0x297   : > { %4472 = vmatprep.subr.msk.bf16.mxu1 %vm2363_vm7, %v3832_v48 }
 0x29d   : > { %4401 = vmatmul.mubr.msk.bf16.gmra.mxu1 %vm2287_vm1, %v2833_v37 }
 0x29e   : > { %4404 = vmatprep.mubr.msk.bf16.mxu1 %vm2287_vm1, %v2834_v60 }
 0x2a5   : > { %4405 = vmatmul.mubr.msk.bf16.gmra.mxu1 %vm2287_vm1, %v2835_v33 }
 0x2a6   : > { %4424 = vmatprep.mubr.msk.bf16.mxu1 %vm2287_vm1, %v3098_v20  ;;  %v3103_v20 = vpack.c.bf16 %v3097_v18, %v3096_v28 }
 0x2ad   : > { %4425 = vmatmul.mubr.msk.bf16.vlgmr.msra.gmra.mxu1 %vm2287_vm1, %v3099_v0 }
 0x2ae   : > { %4451 = vmatpush3.bf16.msra.mxu1 %v3393_v15  ;;  %4428 = vmatprep.mubr.msk.bf16.mxu1 %vm2287_vm1, %v3100_v2 }
 0x2b5   : > { %4429 = vmatmul.mubr.msk.bf16.gmra.mxu1 %vm2287_vm1, %v3101_v45 }
 0x2b6   : > { %4432 = vmatprep.mubr.msk.bf16.mxu1 %vm2287_vm1, %v3102_v22 }
 0x2bd   : > { %4433 = vmatmul.mubr.msk.bf16.gmra.mxu1 %vm2287_vm1, %v3103_v20 }
 0x2be   : > { %4452 = vmatprep.mubr.msk.bf16.mxu1 %vm2287_vm1, %v3366_v58  ;;  %v3371_v58 = vpack.c.bf16 %v3365_v36, %v3364_v19 }
 0x2c5   : > { %4453 = vmatmul.mubr.msk.bf16.vlgmr.msra.gmra.mxu1 %vm2287_vm1, %v3367_v26 }
 0x2c6   : > { %4456 = vmatprep.mubr.msk.bf16.mxu1 %vm2287_vm1, %v3368_v7 }
 0x2cd   : > { %4457 = vmatmul.mubr.msk.bf16.gmra.mxu1 %vm2287_vm1, %v3369_v8 }
 0x2ce   : > { %4460 = vmatprep.mubr.msk.bf16.mxu1 %vm2287_vm1, %v3370_v24 }
 0x2d5   : > { %4461 = vmatmul.mubr.msk.bf16.gmra.mxu1 %vm2287_vm1, %v3371_v58 }
 0x2fd   : > { %v4342_v30 = vpop.f32.mrf.mxu1 }
 0x2ff   : > { %v2401_v61 = vpop.f32.mrf.mxu1 }
 0x301   : > { %v4343_v0 = vpop.f32.mrf.mxu1  ;;  %v5757_v43 = vpop.f32.mrf.mxu0 }
 0x303   : > { %v2404_v26 = vpop.f32.mrf.mxu1  ;;  %v5759_v50 = vpop.f32.mrf.mxu0 }
 0x305   : > { %v5761_v7 = vpop.f32.mrf.mxu0 }
 0x307   : > { %v5763_v23 = vpop.f32.mrf.mxu0 }
 0x30d   : > { %v4346_v12 = vpop.f32.mrf.mxu1 }
 0x30f   : > { %v2417_v10 = vpop.f32.mrf.mxu1 }
 0x311   : > { %v4347_v2 = vpop.f32.mrf.mxu1  ;;  %v5765_v45 = vpop.f32.mrf.mxu0 }
 0x313   : > { %v2420_v63 = vpop.f32.mrf.mxu1  ;;  %v5767_v41 = vpop.f32.mrf.mxu0 }
 0x315   : > { %v5771_v49 = vpop.f32.mrf.mxu0 }
 0x317   : > { %v5777_v53 = vpop.f32.mrf.mxu0 }
 0x31d   : > { %v4350_v44 = vpop.f32.mrf.mxu1 }
 0x31f   : > { %v2433_v39 = vpop.f32.mrf.mxu1 }
 0x321   : > { %v4351_v8 = vpop.f32.mrf.mxu1  ;;  %v5781_v56 = vpop.f32.mrf.mxu0 }
 0x323   : > { %v2436_v27 = vpop.f32.mrf.mxu1  ;;  %v5787_v16 = vpop.f32.mrf.mxu0 }
 0x325   : > { %v4356_v31 = vpop.f32.mrf.mxu1  ;;  %v5793_v57 = vpop.f32.mrf.mxu0 }
 0x326   : > { %v5769_v17 = vadd.f32 %v4356_v31, %v4342_v30  ;;  %5992 = vst [vmem:[#allocation7_spill] sm:$0xff] %v5793_v57 }
 0x327   : > { %v2503_v29 = vpop.f32.mrf.mxu1  ;;  %v5799_v47 = vpop.f32.mrf.mxu0 }
 0x328   : > { %v5773_v5 = vadd.f32 %v2503_v29, %v2401_v61  ;;  %5993 = vst [vmem:[#allocation8_spill] sm:$0xff] %v5799_v47 }
 0x329   : > { %v4357_v25 = vpop.f32.mrf.mxu1  ;;  %v4412_v60 = vpop.f32.mrf.mxu0 }
 0x32a   : > { %v5775_v51 = vadd.f32 %v4357_v25, %v4343_v0 }
 0x32b   : > { %v2506_v32 = vpop.f32.mrf.mxu1  ;;  %v5805_v33 = vpop.f32.mrf.mxu0 }
 0x32c   : > { %v5779_v62 = vadd.f32 %v2506_v32, %v2404_v26 }
 0x32d   : > { %v4360_v13 = vpop.f32.mrf.mxu1  ;;  %v5807_v22 = vpop.f32.mrf.mxu0 }
 0x32e   : > { %v5783_v21 = vadd.f32 %v4360_v13, %v4346_v12 }
 0x32f   : > { %v2519_v6 = vpop.f32.mrf.mxu1  ;;  %v5809_v20 = vpop.f32.mrf.mxu0 }
 0x330   : > { %v5785_v38 = vadd.f32 %v2519_v6, %v2417_v10 }
 0x331   : > { %v4361_v35 = vpop.f32.mrf.mxu1  ;;  %v5811_v36 = vpop.f32.mrf.mxu0 }
 0x332   : > { %v5789_v1 = vadd.f32 %v4361_v35, %v4347_v2 }
 0x333   : > { %v2522_v52 = vpop.f32.mrf.mxu1  ;;  %v5817_v30 = vpop.f32.mrf.mxu0 }
 0x334   : > { %v5791_v40 = vadd.f32 %v2522_v52, %v2420_v63  ;;  %5994 = vst [vmem:[#allocation9_spill] sm:$0xff] %v5817_v30 }
 0x335   : > { %v4364_v34 = vpop.f32.mrf.mxu1  ;;  %v5821_v26 = vpop.f32.mrf.mxu0 }
 0x336   : > { %v5795_v4 = vadd.f32 %v4364_v34, %v4350_v44  ;;  %5995 = vst [vmem:[#allocation10_spill] sm:$0xff] %v5821_v26 }
 0x337   : > { %v2535_v3 = vpop.f32.mrf.mxu1  ;;  %v5823_v2 = vpop.f32.mrf.mxu0 }
 0x338   : > { %v5797_v59 = vadd.f32 %v2535_v3, %v2433_v39  ;;  %5996 = vst [vmem:[#allocation11_spill] sm:$0xff] %v5823_v2 }
 0x339   : > { %v4365_v48 = vpop.f32.mrf.mxu1  ;;  %v5825_v39 = vpop.f32.mrf.mxu0 }
 0x33a   : > { %v5801_v9 = vadd.f32 %v4365_v48, %v4351_v8  ;;  %5997 = vst [vmem:[#allocation12_spill] sm:$0xff] %v5825_v39 }
 0x33b   : > { %v2538_v55 = vpop.f32.mrf.mxu1  ;;  %v5829_v31 = vpop.f32.mrf.mxu0 }
 0x33c   : > { %v5803_v37 = vadd.f32 %v2538_v55, %v2436_v27  ;;  %5998 = vst [vmem:[#allocation13_spill] sm:$0xff] %v5829_v31 }
 0x33d   : > { %v4370_v42 = vpop.f32.mrf.mxu1  ;;  %v5833_v32 = vpop.f32.mrf.mxu0 }
 0x33e   : > { %6000 = vst [vmem:[#allocation15_spill] sm:$0xff] %v5833_v32  ;;  %v2674_v31 = vadd.f32 %v4370_v42, %v5769_v17 }
 0x33f   : > { %v2625_v14 = vpop.f32.mrf.mxu1  ;;  %v5839_v35 = vpop.f32.mrf.mxu0 }
 0x340   : > { %6003 = vst [vmem:[#allocation18_spill] sm:$0xff] %v5839_v35  ;;  %v2672_v47 = vadd.f32 %v2625_v14, %v5773_v5  ;;  %v2808_v35 = vadd.f32 %v5757_v43, %v2674_v31 }
 0x341   : > { %v4371_v46 = vpop.f32.mrf.mxu1  ;;  %v4440_v3 = vpop.f32.mrf.mxu0 }
 0x342   : > { %v2806_v57 = vadd.f32 %v5759_v50, %v2672_v47 }
 0x343   : > { %v2628_v15 = vpop.f32.mrf.mxu1  ;;  %v3295_v39 = vpop.f32.mrf.mxu0 }
 0x344   : > { %v2673_v17 = vadd.f32 %v2628_v15, %v5779_v62 }
 0x345   : > { %v4374_v11 = vpop.f32.mrf.mxu1  ;;  %v5845_v32 = vpop.f32.mrf.mxu0 }
 0x346   : > { %v2678_v42 = vadd.f32 %v4374_v11, %v5783_v21  ;;  %v2807_v21 = vadd.f32 %v5763_v23, %v2673_v17 }
 0x347   : > { %v2641_v18 = vpop.f32.mrf.mxu1  ;;  %v5853_v30 = vpop.f32.mrf.mxu0 }
 0x348   : > { %v2812_v47 = vadd.f32 %v5765_v45, %v2678_v42 }
 0x349   : > { %v4375_v28 = vpop.f32.mrf.mxu1 }
 0x34a   : > { %v2679_v50 = vadd.f32 %v4375_v28, %v5789_v1 }
 0x34b   : > { %v2644_v54 = vpop.f32.mrf.mxu1 }
 0x34c   : > { %v2677_v62 = vadd.f32 %v2644_v54, %v5791_v40  ;;  %v2813_v54 = vadd.f32 %v5771_v49, %v2679_v50  ;;  %v6013_v50 = vld [vmem:[#allocation11_spill] sm:$0xff] }
 0x34d   : > { %v4378_v24 = vpop.f32.mrf.mxu1 }
 0x34f   : > { %v5813_v19 = vpop.f32.mrf.mxu1 }
 0x350   : > { %v2680_v40 = vadd.f32 %v5813_v19, %v5797_v59 }
 0x351   : > { %v5815_v58 = vpop.f32.mrf.mxu1 }
 0x352   : > { %v2683_v23 = vadd.f32 %v5815_v58, %v5801_v9 }
 0x353   : > { %v5819_v61 = vpop.f32.mrf.mxu1 }
 0x355   : > { %v4398_v0 = vpop.f32.mrf.mxu1 }
 0x357   : > { %v2893_v12 = vpop.f32.mrf.mxu1 }
 0x358   : > { %v2940_v14 = vadd.f32 %v2893_v12, %v2806_v57 }
 0x359   : > { %v4399_v10 = vpop.f32.mrf.mxu1 }
 0x35b   : > { %v2896_v63 = vpop.f32.mrf.mxu1 }
 0x35c   : > { %v2941_v11 = vadd.f32 %v2896_v63, %v2807_v21 }
 0x35d   : > { %v4402_v44 = vpop.f32.mrf.mxu1 }
 0x35e   : > { %v3075_v63 = vadd.f32 %v5809_v20, %v2941_v11 }
 0x35f   : > { %v2909_v8 = vpop.f32.mrf.mxu1 }
 0x361   : > { %v5827_v27 = vpop.f32.mrf.mxu1 }
 0x362   : > { %v2947_v58 = vadd.f32 %v5827_v27, %v2813_v54  ;;  %v6016_v54 = vld [vmem:[#allocation13_spill] sm:$0xff] }
 0x363   : > { %v2912_v29 = vpop.f32.mrf.mxu1 }
 0x365   : > { %v5831_v25 = vpop.f32.mrf.mxu1 }
 0x366   : > { %5999 = vst [vmem:[#allocation14_spill] sm:$0xff] %v5831_v25  ;;  %v2942_v25 = vadd.f32 %v4398_v0, %v2808_v35  ;;  %v6008_v35 = vld [vmem:[#allocation9_spill] sm:$0xff] }
 0x367   : > { %v5835_v13 = vpop.f32.mrf.mxu1 }
 0x368   : > { %6001 = vst [vmem:[#allocation16_spill] sm:$0xff] %v5835_v13  ;;  %v3076_v0 = vadd.f32 %v4412_v60, %v2942_v25 }
 0x369   : > { %v5837_v6 = vpop.f32.mrf.mxu1 }
 0x36a   : > { %6002 = vst [vmem:[#allocation17_spill] sm:$0xff] %v5837_v6  ;;  %v2675_v6 = vadd.f32 %v4371_v46, %v5775_v51  ;;  %v2676_v51 = vadd.f32 %v2641_v18, %v5785_v38  ;;  %v5864_v46 = vpop.f32.mrf.mxu0  ;;  %v3074_v38 = vadd.f32 %v5805_v33, %v2940_v14  ;;  %v2946_v18 = vadd.f32 %v4402_v44, %v2812_v47  ;;  %v5897_v44 = vld [vmem:[%s5984_s4] ss:$0 sm:$0xff] }
 0x36b   : > { %v5841_v52 = vpop.f32.mrf.mxu1  ;;  %v2811_v33 = vadd.f32 %v5777_v53, %v2677_v62 }
 0x36c   : > { %6004 = vst [vmem:[#allocation19_spill] sm:$0xff] %v5841_v52  ;;  %v2810_v12 = vadd.f32 %v5767_v41, %v2676_v51  ;;  %v3311_v1 = vpop.f32.mrf.mxu0  ;;  %v5886_v41 = vstv %s3840_s27  ;;  %v3080_v49 = vadd.f32 %v5811_v36, %v2946_v18 }
 0x36d   : > { %v4426_v34 = vpop.f32.mrf.mxu1  ;;  %v6007_v27 = vld [vmem:[#allocation14_spill] sm:$0xff] }
 0x36e   : > { %v3210_v57 = vadd.f32 %v4426_v34, %v3076_v0  ;;  %v6012_v0 = vld [vmem:[#allocation10_spill] sm:$0xff] }
 0x36f   : > { %v3161_v48 = vpop.f32.mrf.mxu1 }
 0x370   : > { %v3208_v45 = vadd.f32 %v3161_v48, %v3074_v38  ;;  %v3344_v9 = vadd.f32 %v4440_v3, %v3210_v57  ;;  %v6009_v3 = vld [vmem:[#allocation8_spill] sm:$0xff] }
 0x371   : > { %v4427_v55 = vpop.f32.mrf.mxu1  ;;  %v6014_v57 = vld [vmem:[#allocation12_spill] sm:$0xff] }
 0x373   : > { %v3164_v2 = vpop.f32.mrf.mxu1 }
 0x375   : > { %v4430_v26 = vpop.f32.mrf.mxu1 }
 0x376   : > { %v3214_v20 = vadd.f32 %v4430_v26, %v3080_v49 }
 0x377   : > { %v5847_v13 = vpop.f32.mrf.mxu1 }
 0x378   : > { %6005 = vst [vmem:[#allocation20_spill] sm:$0xff] %v5847_v13  ;;  %v2809_v13 = vadd.f32 %v5761_v7, %v2675_v6  ;;  %v2682_v7 = vadd.f32 %v4378_v24, %v5795_v4  ;;  %v2944_v4 = vadd.f32 %v2909_v8, %v2810_v12  ;;  %v4445_v8 = vpop.f32.mrf.mxu0  ;;  %v3209_v6 = vadd.f32 %v3164_v2, %v3075_v63 }
 0x379   : > { %v5851_v52 = vpop.f32.mrf.mxu1  ;;  %v3348_v12 = vadd.f32 %v5864_v46, %v3214_v20 }
 0x37a   : > { %v2943_v31 = vadd.f32 %v4399_v10, %v2809_v13  ;;  %v2681_v10 = vadd.f32 %v5819_v61, %v5803_v37  ;;  %v2816_v59 = vadd.f32 %v5781_v56, %v2682_v7  ;;  %v2814_v37 = vadd.f32 %v5787_v16, %v2680_v40  ;;  %v6006_v61 = vld [vmem:[#allocation7_spill] sm:$0xff]  ;;  %v6010_v16 = vld [vmem:[#allocation16_spill] sm:$0xff]  ;;  %v3314_v26 = vpop.f32.mrf.mxu0 }
 0x37b   : > { %v5858_v5 = vpop.f32.mrf.mxu1  ;;  %v2817_v56 = vadd.f32 %v6006_v61, %v2683_v23  ;;  %v3342_v13 = vadd.f32 %v3295_v39, %v3208_v45  ;;  %v3078_v36 = vadd.f32 %v6008_v35, %v2944_v4  ;;  %v3081_v39 = vadd.f32 %v6012_v0, %v2947_v58  ;;  %v6017_v58 = vld [vmem:[#allocation19_spill] sm:$0xff] }
 0x37c   : > { %v3077_v28 = vadd.f32 %v5807_v22, %v2943_v31  ;;  %v2945_v22 = vadd.f32 %v2912_v29, %v2811_v33  ;;  %v2950_v29 = vadd.f32 %v6007_v27, %v2816_v59  ;;  %v2815_v48 = vadd.f32 %v6009_v3, %v2681_v10  ;;  %v6018_v27 = vld [vmem:[#allocation15_spill] sm:$0xff] }
 0x37d   : > { %v5862_v43 = vpop.f32.mrf.mxu1  ;;  %v2948_v14 = vadd.f32 %v6010_v16, %v2814_v37  ;;  %v3215_v7 = vadd.f32 %v5851_v52, %v3081_v39  ;;  %v3343_v11 = vadd.f32 %v5853_v30, %v3209_v6  ;;  %v4448_v30 = vpop.f32.mrf.mxu0  ;;  %v6019_v16 = vld [vmem:[#allocation18_spill] sm:$0xff] }
 0x37e   : > { %v3211_v19 = vadd.f32 %v4427_v55, %v3077_v28  ;;  %v3079_v62 = vadd.f32 %v6013_v50, %v2945_v22  ;;  %v3084_v38 = vadd.f32 %v6014_v57, %v2950_v29  ;;  %v6015_v28 = vld [vmem:[#allocation17_spill] sm:$0xff]  ;;  %v2949_v22 = vadd.f32 %v6017_v58, %v2815_v48 }
 0x37f   : > { %v5870_v15 = vpop.f32.mrf.mxu1  ;;  %v6011_v51 = vld [vmem:[#allocation20_spill] sm:$0xff]  ;;  %v2951_v4 = vadd.f32 %v6015_v28, %v2817_v56  ;;  %v3082_v33 = vadd.f32 %v6016_v54, %v2948_v14  ;;  %v3327_v6 = vpop.f32.mrf.mxu0 }
 0x380   : > { %v3345_v42 = vadd.f32 %v5845_v32, %v3211_v19  ;;  %v3212_v31 = vadd.f32 %v6011_v51, %v3078_v36  ;;  %v3213_v63 = vadd.f32 %v5858_v5, %v3079_v62  ;;  %v3218_v49 = vadd.f32 %v5862_v43, %v3084_v38 }
 0x381   : > { %v5875_v60 = vpop.f32.mrf.mxu1  ;;  %v3085_v29 = vadd.f32 %v6018_v27, %v2951_v4  ;;  %v3083_v14 = vadd.f32 %v6019_v16, %v2949_v22  ;;  %v4449_v0 = vpop.f32.mrf.mxu0 }
 0x382   : > { %v3346_v59 = vadd.f32 %v3311_v1, %v3212_v31  ;;  %v3352_v48 = vadd.f32 %v4448_v30, %v3218_v49 }
 0x383   : > { %v5884_v24 = vpop.f32.mrf.mxu1 }
 0x385   : > { %v4454_v53 = vpop.f32.mrf.mxu1 }
 0x386   : > { %v3478_v25 = vadd.f32 %v4454_v53, %v3344_v9 }
 0x387   : > { %v3429_v34 = vpop.f32.mrf.mxu1 }
 0x388   : > { %v3497_v55 = vadd.f32 %v5897_v44, %v3478_v25  ;;  %v3476_v17 = vadd.f32 %v3429_v34, %v3342_v13  ;;  %v3349_v25 = vadd.f32 %v4445_v8, %v3215_v7  ;;  %v3216_v13 = vadd.f32 %v5870_v15, %v3082_v33 }
 0x389   : > { %v4455_v2 = vpop.f32.mrf.mxu1  ;;  %v3219_v8 = vadd.f32 %v5875_v60, %v3085_v29  ;;  %v3347_v34 = vadd.f32 %v3314_v26, %v3213_v63 }
 0x38a   : > { %vm3510_vm7 = vcmp.ge.f32.partialorder %v3497_v55, 0.0  ;;  %v3523_v21 = vmul.f32 %v5886_v41, %v3497_v55  ;;  %v3495_v32 = vadd.f32 %v5897_v44, %v3476_v17  ;;  %v3479_v47 = vadd.f32 %v4455_v2, %v3345_v42 }
 0x38b   : > { %v3432_v18 = vpop.f32.mrf.mxu1  ;;  %v3350_v31 = vadd.f32 %v3327_v6, %v3216_v13  ;;  %v3217_v2 = vadd.f32 %v5884_v24, %v3083_v14  ;;  %v3353_v57 = vadd.f32 %v4449_v0, %v3219_v8 }
 0x38c   : > { %v3535_v40 = vsel %vm3510_vm7, %v3497_v55, %v3523_v21  ;;  %vm3508_vm11 = vcmp.ge.f32.partialorder %v3495_v32, 0.0  ;;  %v3521_v23 = vmul.f32 %v5886_v41, %v3495_v32  ;;  %v3498_v45 = vadd.f32 %v5897_v44, %v3479_v47 }
 0x38d   : > { %3547 = vst.msk [vmem:[%s5914_s9 + $0x10] sm:$0xff] %vm2287_vm1, %v3535_v40  ;;  %v3477_v52 = vadd.f32 %v3432_v18, %v3343_v11  ;;  %v4458_v10 = vpop.f32.mrf.mxu1  ;;  %v3330_v18 = vpop.f32.mrf.mxu0 }
 0x38e   : > { %v3533_v19 = vsel %vm3508_vm11, %v3495_v32, %v3521_v23  ;;  %vm3511_vm12 = vcmp.ge.f32.partialorder %v3498_v45, 0.0  ;;  %v3524_v46 = vmul.f32 %v5886_v41, %v3498_v45  ;;  %v3482_v9 = vadd.f32 %v4458_v10, %v3348_v12 }
 0x38f   : > { %3545 = vst.msk [vmem:[%s5914_s9] sm:$0xff] %vm2287_vm1, %v3533_v19  ;;  %v3496_v53 = vadd.f32 %v5897_v44, %v3477_v52  ;;  %v3445_v37 = vpop.f32.mrf.mxu1 }
 0x390   : > { %v3536_v61 = vsel %vm3511_vm12, %v3498_v45, %v3524_v46  ;;  %v3501_v1 = vadd.f32 %v5897_v44, %v3482_v9  ;;  %v3480_v56 = vadd.f32 %v3445_v37, %v3346_v59  ;;  %v3351_v45 = vadd.f32 %v3330_v18, %v3217_v2 }
 0x391   : > { %3548 = vst.msk [vmem:[%s5914_s9 + $0x18] sm:$0xff] %vm2287_vm1, %v3536_v61  ;;  %vm3509_vm13 = vcmp.ge.f32.partialorder %v3496_v53, 0.0  ;;  %v3522_v5 = vmul.f32 %v5886_v41, %v3496_v53  ;;  %v4459_v43 = vpop.f32.mrf.mxu1 }
 0x392   : > { %vm3514_vm14 = vcmp.ge.f32.partialorder %v3501_v1, 0.0  ;;  %v3527_v20 = vmul.f32 %v5886_v41, %v3501_v1  ;;  %v3499_v35 = vadd.f32 %v5897_v44, %v3480_v56  ;;  %v3483_v36 = vadd.f32 %v4459_v43, %v3349_v25 }
 0x393   : > { %v3534_v15 = vsel %vm3509_vm13, %v3496_v53, %v3522_v5  ;;  %v3448_v3 = vpop.f32.mrf.mxu1 }
 0x394   : > { %3546 = vst.msk [vmem:[%s5914_s9 + $0x8] sm:$0xff] %vm2287_vm1, %v3534_v15  ;;  %v3539_v55 = vsel %vm3514_vm14, %v3501_v1, %v3527_v20  ;;  %vm3512_vm15 = vcmp.ge.f32.partialorder %v3499_v35, 0.0  ;;  %v3525_v17 = vmul.f32 %v5886_v41, %v3499_v35  ;;  %v3502_v42 = vadd.f32 %v5897_v44, %v3483_v36 }
 0x395   : > { %3551 = vst.msk [vmem:[%s5914_s9 + $0x30] sm:$0xff] %vm2287_vm1, %v3539_v55  ;;  %v3481_v51 = vadd.f32 %v3448_v3, %v3347_v34  ;;  %v4462_v60 = vpop.f32.mrf.mxu1 }
 0x396   : > { %v3537_v39 = vsel %vm3512_vm15, %v3499_v35, %v3525_v17  ;;  %vm3515_vm0 = vcmp.ge.f32.partialorder %v3502_v42, 0.0  ;;  %v3528_v50 = vmul.f32 %v5886_v41, %v3502_v42  ;;  %v3486_v62 = vadd.f32 %v4462_v60, %v3352_v48 }
 0x397   : > { %3549 = vst.msk [vmem:[%s5914_s9 + $0x20] sm:$0xff] %vm2287_vm1, %v3537_v39  ;;  %v3500_v26 = vadd.f32 %v5897_v44, %v3481_v51  ;;  %v3461_v21 = vpop.f32.mrf.mxu1 }
 0x398   : > { %v3540_v32 = vsel %vm3515_vm0, %v3502_v42, %v3528_v50  ;;  %v3505_v47 = vadd.f32 %v5897_v44, %v3486_v62  ;;  %v3484_v7 = vadd.f32 %v3461_v21, %v3350_v31 }
 0x399   : > { %3552 = vst.msk [vmem:[%s5914_s9 + $0x38] sm:$0xff] %vm2287_vm1, %v3540_v32  ;;  %vm3513_vm3 = vcmp.ge.f32.partialorder %v3500_v26, 0.0  ;;  %v3526_v38 = vmul.f32 %v5886_v41, %v3500_v26  ;;  %v4463_v11 = vpop.f32.mrf.mxu1 }
 0x39a   : > { %vm3518_vm4 = vcmp.ge.f32.partialorder %v3505_v47, 0.0  ;;  %v3531_v24 = vmul.f32 %v5886_v41, %v3505_v47  ;;  %v3503_v12 = vadd.f32 %v5897_v44, %v3484_v7  ;;  %v3487_v40 = vadd.f32 %v4463_v11, %v3353_v57 }
 0x39b   : > { %v3538_v23 = vsel %vm3513_vm3, %v3500_v26, %v3526_v38  ;;  %v3464_v28 = vpop.f32.mrf.mxu1 }
 0x39c   : > { %3550 = vst.msk [vmem:[%s5914_s9 + $0x28] sm:$0xff] %vm2287_vm1, %v3538_v23  ;;  %v3543_v4 = vsel %vm3518_vm4, %v3505_v47, %v3531_v24  ;;  %vm3516_vm5 = vcmp.ge.f32.partialorder %v3503_v12, 0.0  ;;  %v3529_v54 = vmul.f32 %v5886_v41, %v3503_v12  ;;  %v3506_v33 = vadd.f32 %v5897_v44, %v3487_v40 }
 0x39d   : > { %3555 = vst.msk [vmem:[%s5914_s9 + $0x50] sm:$0xff] %vm2287_vm1, %v3543_v4  ;;  %v3485_v52 = vadd.f32 %v3464_v28, %v3351_v45 }
 0x39e   : > { %v3541_v10 = vsel %vm3516_vm5, %v3503_v12, %v3529_v54  ;;  %vm3519_vm6 = vcmp.ge.f32.partialorder %v3506_v33, 0.0  ;;  %v3532_v59 = vmul.f32 %v5886_v41, %v3506_v33 }
 0x39f   : > { %3553 = vst.msk [vmem:[%s5914_s9 + $0x40] sm:$0xff] %vm2287_vm1, %v3541_v10  ;;  %v3504_v30 = vadd.f32 %v5897_v44, %v3485_v52 }
 0x3a0   : > { %v3544_v19 = vsel %vm3519_vm6, %v3506_v33, %v3532_v59 }
 0x3a1   : > { %3556 = vst.msk [vmem:[%s5914_s9 + $0x58] sm:$0xff] %vm2287_vm1, %v3544_v19  ;;  %vm3517_vm2 = vcmp.ge.f32.partialorder %v3504_v30, 0.0  ;;  %v3530_v46 = vmul.f32 %v5886_v41, %v3504_v30 }
 0x3a3   : > { %v3542_v9 = vsel %vm3517_vm2, %v3504_v30, %v3530_v46 }
 0x3a4   : > { %3554 = vst.msk [vmem:[%s5914_s9 + $0x48] sm:$0xff] %vm2287_vm1, %v3542_v9 }
 0x3a5 PF: > { %s18_s24 = sadd.s32 1, %s4524_s24  }
 0x3a6   : > { %p15_p1 = scmp.ge.s32.totalorder %s18_s24, 4  }
 0x3a8   :  { %17 = sbr.rel (!%p15_p1) target bundleno = 1 (0x1), region = 102 }
 0x3ad   :  { %3578 = vsyncpa [#allocation5], 1 }
 0x3ae   :  { %3580 = vsyncpa [#allocation5 + $0x1], 1 }

</bundles_post_ra>
